<compile_context>
chip_gen: v7x
topology: tpu7x:2x2x1
jax: 0.10.0
libtpu: 0.0.40
codegen_flags: <defaults>
</compile_context>

<pallas_src>
import jax
import jax.numpy as jnp
from jax.experimental import pallas as pl
from jax.experimental.pallas import tpu as pltpu

LATENT_DIM = 16
LRELU_SLOPE = 0.2
BN_EPS = 1e-5
FLATTEN_SIZE = 4 * 4 * 128      # 28x28 input: 28 -> 14 -> 7 -> 4
MM_DTYPE = jnp.bfloat16         # matmul operand dtype (f32 accumulate)

_VMEM = pl.BlockSpec(memory_space=pltpu.MemorySpace.VMEM)


# ----------------------------- Pallas kernels ------------------------------


def _mm_bn_lrelu_kernel(x_ref, w_ref, b_ref, g_ref, bt_ref, o_ref):
    """o = leaky_relu(batchnorm(x @ w + b), 0.2); BN over all rows per column."""
    y = jnp.dot(x_ref[...], w_ref[...], preferred_element_type=jnp.float32)
    y = y + b_ref[...]
    mean = jnp.mean(y, axis=0, keepdims=True)
    var = jnp.mean(y * y, axis=0, keepdims=True) - mean * mean
    yn = (y - mean) * jax.lax.rsqrt(var + BN_EPS)
    yn = yn * g_ref[...] + bt_ref[...]
    o_ref[...] = jnp.where(yn > 0, yn, LRELU_SLOPE * yn)


def _mm_bn4_lrelu_kernel(x_ref, w_ref, b_ref, g_ref, bt_ref, o_ref):
    """Phase-decomposed ConvTranspose2d + BatchNorm(train) + LeakyReLU.

    Output columns are grouped [phase(0,0) | (0,1) | (1,0) | (1,1)], Cout each.
    BN statistics for channel c are reduced over all rows AND the 4 phase
    groups (= all N*H_out*W_out positions), matching nn.BatchNorm2d.
    """
    cout = o_ref.shape[1] // 4
    y = jnp.dot(x_ref[...], w_ref[...], preferred_element_type=jnp.float32)
    y = y + b_ref[...]                       # bias tiled to (1, 4*Cout)
    s = jnp.sum(y, axis=0, keepdims=True)
    sq = jnp.sum(y * y, axis=0, keepdims=True)
    s_c = (s[:, 0:cout] + s[:, cout:2 * cout]
           + s[:, 2 * cout:3 * cout] + s[:, 3 * cout:4 * cout])
    sq_c = (sq[:, 0:cout] + sq[:, cout:2 * cout]
            + sq[:, 2 * cout:3 * cout] + sq[:, 3 * cout:4 * cout])
    cnt = jnp.float32(4 * y.shape[0])
    mean_c = s_c / cnt
    var_c = sq_c / cnt - mean_c * mean_c
    inv_c = jax.lax.rsqrt(var_c + BN_EPS)
    mean = jnp.concatenate([mean_c] * 4, axis=1)
    inv = jnp.concatenate([inv_c] * 4, axis=1)
    yn = (y - mean) * inv
    yn = yn * g_ref[...] + bt_ref[...]       # gamma/beta tiled to (1, 4*Cout)
    o_ref[...] = jnp.where(yn > 0, yn, LRELU_SLOPE * yn)


def _latent_kernel(x_ref, wml_ref, bml_ref, eps_ref, wd_ref, bd_ref,
                   mu_ref, lv_ref, d_ref):
    """Fused latent path: [mu|logvar] = x @ [W_mu|W_lv] + b ;
    z = mu + eps*exp(0.5*logvar) ; d = z @ W_dec + b_dec."""
    y = jnp.dot(x_ref[...], wml_ref[...], preferred_element_type=jnp.float32)
    y = y + bml_ref[...]
    mu = y[:, :LATENT_DIM]
    logvar = y[:, LATENT_DIM:]
    z = mu + eps_ref[...] * jnp.exp(0.5 * logvar)
    d = jnp.dot(z.astype(wd_ref.dtype), wd_ref[...],
                preferred_element_type=jnp.float32)
    mu_ref[...] = mu
    lv_ref[...] = logvar
    d_ref[...] = d + bd_ref[...]


def _matT_bias_sigmoid_kernel(wt_ref, pt_ref, b_ref, o_ref):
    """Operand-swapped final deconv: o = sigmoid(W^T @ P^T + b); the row tile
    of output positions sits on the lane axis (lane-dense store)."""
    y = jnp.dot(wt_ref[...], pt_ref[...], preferred_element_type=jnp.float32)
    o_ref[...] = jax.nn.sigmoid(y + b_ref[...])


# ------------------------------- JAX glue ----------------------------------


def _im2col_nhwc(x, k, stride, pad):
    """x: (N,H,W,C) -> patches (N*Ho*Wo, k*k*C) in (kh, kw, c) feature order."""
    n, h, w, c = x.shape
    xp = jnp.pad(x, ((0, 0), (pad, pad), (pad, pad), (0, 0)))
    ho = (h + 2 * pad - k) // stride + 1
    wo = (w + 2 * pad - k) // stride + 1
    taps = []
    for i in range(k):
        for j in range(k):
            taps.append(xp[:, i:i + stride * (ho - 1) + 1:stride,
                           j:j + stride * (wo - 1) + 1:stride, :])
    patches = jnp.concatenate(taps, axis=-1).reshape(n * ho * wo, k * k * c)
    return patches, ho, wo


def _conv_bn_lrelu(x, p):
    """3x3 / stride-2 / pad-1 Conv2d + BN(train) + LeakyReLU.  NHWC in/out."""
    n, _, _, cin = x.shape
    cout = p["w"].shape[0]
    patches, ho, wo = _im2col_nhwc(x, k=3, stride=2, pad=1)
    wmat = p["w"].transpose(2, 3, 1, 0).reshape(9 * cin, cout)   # (kh,kw,ci,co)
    y = pl.pallas_call(
        _mm_bn_lrelu_kernel,
        out_shape=jax.ShapeDtypeStruct((patches.shape[0], cout), jnp.float32),
        in_specs=[_VMEM] * 5,
        out_specs=_VMEM,
    )(patches.astype(MM_DTYPE), wmat.astype(MM_DTYPE),
      p["b"].reshape(1, -1), p["gamma"].reshape(1, -1), p["beta"].reshape(1, -1))
    return y.reshape(n, ho, wo, cout)


def _phase_patches_nhwc(x):
    """2x2 patches of the high-padded input: (N*H*W, 4*C), tap order (a, b)."""
    n, h, w, c = x.shape
    xp = jnp.pad(x, ((0, 0), (0, 1), (0, 1), (0, 0)))
    taps = [xp[:, a:a + h, b:b + w, :] for a in (0, 1) for b in (0, 1)]
    return jnp.concatenate(taps, axis=-1).reshape(n * h * w, 4 * c)


def _deconv_phase_weight(w):
    """ConvTranspose2d(k=3,s=2,p=1,op=1) weight (Cin,Cout,3,3) -> (4*Cin, 4*Cout).

    Sub-pixel decomposition: output phase (ph, pw) at (h, w) equals
      sum_{a,b in {0,1}} x_pad[h+a, w+b] . w[:, :, ph+1-2a, pw+1-2b]
    (taps falling outside the 3x3 kernel are structurally zero)."""
    cin, cout = w.shape[0], w.shape[1]
    m = jnp.zeros((2, 2, cin, 2, 2, cout), w.dtype)   # [a, b, ci, ph, pw, co]
    for ph in (0, 1):
        for pw in (0, 1):
            for a in (0, 1):
                for b in (0, 1):
                    i = ph + 1 - 2 * a
                    j = pw + 1 - 2 * b
                    if 0 <= i <= 2 and 0 <= j <= 2:
                        m = m.at[a, b, :, ph, pw, :].set(w[:, :, i, j])
    return m.reshape(4 * cin, 4 * cout)


def _deconv_bn_lrelu(x, p):
    """ConvTranspose2d(3, s=2, p=1, op=1) + BN(train) + LeakyReLU via phase
    decomposition.  NHWC in, (N, 2H, 2W, Cout) NHWC out."""
    n, h, w, cin = x.shape
    cout = p["w"].shape[1]
    patches = _phase_patches_nhwc(x)                           # (N*H*W, 4*Cin)
    wmat = _deconv_phase_weight(p["w"])                        # (4*Cin, 4*Cout)
    b4 = jnp.tile(p["b"], 4).reshape(1, -1)
    g4 = jnp.tile(p["gamma"], 4).reshape(1, -1)
    bt4 = jnp.tile(p["beta"], 4).reshape(1, -1)
    y = pl.pallas_call(
        _mm_bn4_lrelu_kernel,
        out_shape=jax.ShapeDtypeStruct((n * h * w, 4 * cout), jnp.float32),
        in_specs=[_VMEM] * 5,
        out_specs=_VMEM,
    )(patches.astype(MM_DTYPE), wmat.astype(MM_DTYPE), b4, g4, bt4)
    # interleave phases: column group (ph, pw) -> out[2h+ph, 2w+pw]
    y = y.reshape(n, h, w, 2, 2, cout).transpose(0, 1, 3, 2, 4, 5)
    return y.reshape(n, 2 * h, 2 * w, cout)


def _deconv_sigmoid(x, p, row_tile=128):
    """Final ConvTranspose2d (Cout=1) + sigmoid, operand-swapped so output
    positions lie on the lane axis; row-tiled parallel grid.  Returns (N,2H,2W)."""
    n, h, w, cin = x.shape
    rows = n * h * w                          # N*256 -> always a multiple of 128
    # transposed 2x2 phase patches: (4*Cin, rows)
    xt = jnp.pad(x.transpose(3, 0, 1, 2), ((0, 0), (0, 0), (0, 1), (0, 1)))
    taps = [xt[:, :, a:a + h, b:b + w] for a in (0, 1) for b in (0, 1)]
    pt = jnp.stack(taps, axis=0).reshape(4 * cin, rows)
    wt = _deconv_phase_weight(p["w"]).T                        # (4, 4*Cin)
    y = pl.pallas_call(
        _matT_bias_sigmoid_kernel,
        out_shape=jax.ShapeDtypeStruct((4, rows), jnp.float32),
        grid=(rows // row_tile,),
        in_specs=[
            pl.BlockSpec((4, 4 * cin), lambda i: (0, 0)),
            pl.BlockSpec((4 * cin, row_tile), lambda i: (0, i)),
            pl.BlockSpec((1, 1), lambda i: (0, 0)),
        ],
        out_specs=pl.BlockSpec((4, row_tile), lambda i: (0, i)),
        compiler_params=pltpu.CompilerParams(dimension_semantics=("parallel",)),
    )(wt.astype(MM_DTYPE), pt.astype(MM_DTYPE), p["b"].reshape(1, 1))
    # y[ph*2+pw, n*H*W + h*W + w] -> out[n, 2h+ph, 2w+pw]
    y = y.reshape(2, 2, n, h, w).transpose(2, 3, 0, 4, 1)
    return y.reshape(n, 2 * h, 2 * w)


def _latent_path(flat, p_mu, p_lv, p_dec, eps):
    n = flat.shape[0]
    wml = jnp.concatenate([p_mu["w"], p_lv["w"]], axis=1)      # (2048, 2*latent)
    bml = jnp.concatenate([p_mu["b"], p_lv["b"]]).reshape(1, -1)
    mu, logvar, d = pl.pallas_call(
        _latent_kernel,
        out_shape=(jax.ShapeDtypeStruct((n, LATENT_DIM), jnp.float32),
                   jax.ShapeDtypeStruct((n, LATENT_DIM), jnp.float32),
                   jax.ShapeDtypeStruct((n, FLATTEN_SIZE), jnp.float32)),
        in_specs=[_VMEM] * 6,
        out_specs=(_VMEM, _VMEM, _VMEM),
    )(flat.astype(MM_DTYPE), wml.astype(MM_DTYPE), bml, eps,
      p_dec["w"].astype(MM_DTYPE), p_dec["b"].reshape(1, -1))
    return mu, logvar, d


# ------------------------------ VAE forward --------------------------------


def vae_forward(params, x, eps):
    n = x.shape[0]
    xh = x.transpose(0, 2, 3, 1)                               # NCHW -> NHWC (once)
    h = _conv_bn_lrelu(xh, params["conv1"])                    # (N, 14, 14, 32)
    h = _conv_bn_lrelu(h, params["conv2"])                     # (N, 7, 7, 64)
    h = _conv_bn_lrelu(h, params["conv3"])                     # (N, 4, 4, 128)
    # PyTorch x.view(-1, 2048) flattens NCHW -> channel-major feature order.
    flat = h.transpose(0, 3, 1, 2).reshape(n, FLATTEN_SIZE)
    mu, logvar, d = _latent_path(flat, params["fc_mu"], params["fc_logvar"],
                                 params["fc_decoder"], eps)
    d = d.reshape(n, 128, 4, 4).transpose(0, 2, 3, 1)          # torch view + NHWC
    d = _deconv_bn_lrelu(d, params["deconv1"])                 # (N, 8, 8, 64)
    d = _deconv_bn_lrelu(d, params["deconv2"])                 # (N, 16, 16, 32)
    r = _deconv_sigmoid(d, params["deconv3"])                  # (N, 32, 32)
    x_recon = r[:, :-4, :-4][:, None, :, :]                    # ZeroPad2d((0,-4,0,-4)), NCHW
    return x_recon, mu, logvar


# --------------------------- parameter creation -----------------------------


def init_params(key):
    keys = jax.random.split(key, 9)

    def conv_p(k, cout, cin):
        return dict(
            w=jax.random.normal(k, (cout, cin, 3, 3), jnp.float32) * 0.05,
            b=jnp.zeros((cout,), jnp.float32),
            gamma=jnp.ones((cout,), jnp.float32),
            beta=jnp.zeros((cout,), jnp.float32))

    def deconv_p(k, cin, cout, bn=True):
        p = dict(
            w=jax.random.normal(k, (cin, cout, 3, 3), jnp.float32) * 0.05,
            b=jnp.zeros((cout,), jnp.float32))
        if bn:
            p["gamma"] = jnp.ones((cout,), jnp.float32)
            p["beta"] = jnp.zeros((cout,), jnp.float32)
        return p

    def lin_p(k, din, dout):
        return dict(
            w=jax.random.normal(k, (din, dout), jnp.float32) * 0.02,
            b=jnp.zeros((dout,), jnp.float32))

    return dict(
        conv1=conv_p(keys[0], 32, 1),
        conv2=conv_p(keys[1], 64, 32),
        conv3=conv_p(keys[2], 128, 64),
        fc_mu=lin_p(keys[3], FLATTEN_SIZE, LATENT_DIM),
        fc_logvar=lin_p(keys[4], FLATTEN_SIZE, LATENT_DIM),
        fc_decoder=lin_p(keys[5], LATENT_DIM, FLATTEN_SIZE),
        deconv1=deconv_p(keys[6], 128, 64, bn=True),
        deconv2=deconv_p(keys[7], 64, 32, bn=True),
        deconv3=deconv_p(keys[8], 32, 1, bn=False))


if __name__ == "__main__":
    key = jax.random.PRNGKey(0)
    pkey, xkey, ekey = jax.random.split(key, 3)
    params = init_params(pkey)
    x = jax.random.normal(xkey, (2, 1, 28, 28), jnp.float32)       # NCHW
    eps = jax.random.normal(ekey, (2, LATENT_DIM), jnp.float32)    # reparam noise

    fwd = jax.jit(vae_forward)
    x_recon, mu, logvar = fwd(params, x, eps)
    jax.block_until_ready((x_recon, mu, logvar))

    assert x_recon.shape == (2, 1, 28, 28)
    assert mu.shape == (2, LATENT_DIM) and logvar.shape == (2, LATENT_DIM)
    assert bool(jnp.isfinite(x_recon).all())
    assert bool(jnp.isfinite(mu).all()) and bool(jnp.isfinite(logvar).all())
    print("KERNEL_OK")
</pallas_src>

<mosaic_0001>
module attributes {stable_mosaic.version = 11 : i64} {
  func.func @_mm_bn_lrelu_kernel(%arg0: memref<392x9xbf16, #tpu.memory_space<vmem>>, %arg1: memref<9x32xbf16, #tpu.memory_space<vmem>>, %arg2: memref<1x32xf32, #tpu.memory_space<vmem>>, %arg3: memref<1x32xf32, #tpu.memory_space<vmem>>, %arg4: memref<1x32xf32, #tpu.memory_space<vmem>>, %arg5: memref<392x32xf32, #tpu.memory_space<vmem>>) attributes {dimension_semantics = [], scalar_prefetch = 0 : i64, scratch_operands = 0 : i64, tpu.core_type = #tpu.core_type<tc>} {
    %c0 = arith.constant 0 : index
    %c0_0 = arith.constant 0 : index
    %0 = vector.load %arg0[%c0, %c0_0] : memref<392x9xbf16, #tpu.memory_space<vmem>>, vector<392x9xbf16>
    %c0_1 = arith.constant 0 : index
    %c0_2 = arith.constant 0 : index
    %1 = vector.load %arg1[%c0_1, %c0_2] : memref<9x32xbf16, #tpu.memory_space<vmem>>, vector<9x32xbf16>
    %cst = arith.constant dense<0.000000e+00> : vector<392x32xf32>
    %2 = tpu.matmul %0, %1, %cst {dimension_numbers = #tpu.dot_dimension_numbers<[1], [0], [0], [1], [0, 0, 1, 1], [], []>} : vector<392x9xbf16>, vector<9x32xbf16>, vector<392x32xf32> -> vector<392x32xf32>
    %c0_3 = arith.constant 0 : index
    %c0_4 = arith.constant 0 : index
    %3 = vector.load %arg2[%c0_3, %c0_4] : memref<1x32xf32, #tpu.memory_space<vmem>>, vector<1x32xf32>
    %4 = vector.broadcast %3 : vector<1x32xf32> to vector<392x32xf32>
    %5 = arith.addf %2, %4 : vector<392x32xf32>
    %cst_5 = arith.constant dense<0.000000e+00> : vector<32xf32>
    %6 = vector.multi_reduction <add>, %5, %cst_5 [0] : vector<392x32xf32> to vector<32xf32>
    %7 = vector.shape_cast %6 : vector<32xf32> to vector<1x32xf32>
    %cst_6 = arith.constant 3.920000e+02 : f32
    %8 = vector.broadcast %cst_6 : f32 to vector<1x32xf32>
    %9 = arith.divf %7, %8 : vector<1x32xf32>
    %10 = arith.mulf %5, %5 : vector<392x32xf32>
    %cst_7 = arith.constant dense<0.000000e+00> : vector<32xf32>
    %11 = vector.multi_reduction <add>, %10, %cst_7 [0] : vector<392x32xf32> to vector<32xf32>
    %12 = vector.shape_cast %11 : vector<32xf32> to vector<1x32xf32>
    %cst_8 = arith.constant 3.920000e+02 : f32
    %13 = vector.broadcast %cst_8 : f32 to vector<1x32xf32>
    %14 = arith.divf %12, %13 : vector<1x32xf32>
    %15 = arith.mulf %9, %9 : vector<1x32xf32>
    %16 = arith.subf %14, %15 : vector<1x32xf32>
    %17 = vector.broadcast %9 : vector<1x32xf32> to vector<392x32xf32>
    %18 = arith.subf %5, %17 : vector<392x32xf32>
    %cst_9 = arith.constant 9.99999974E-6 : f32
    %19 = vector.broadcast %cst_9 : f32 to vector<1x32xf32>
    %20 = arith.addf %16, %19 : vector<1x32xf32>
    %21 = math.rsqrt %20 : vector<1x32xf32>
    %22 = vector.broadcast %21 : vector<1x32xf32> to vector<392x32xf32>
    %23 = arith.mulf %18, %22 : vector<392x32xf32>
    %c0_10 = arith.constant 0 : index
    %c0_11 = arith.constant 0 : index
    %24 = vector.load %arg3[%c0_10, %c0_11] : memref<1x32xf32, #tpu.memory_space<vmem>>, vector<1x32xf32>
    %25 = vector.broadcast %24 : vector<1x32xf32> to vector<392x32xf32>
    %26 = arith.mulf %23, %25 : vector<392x32xf32>
    %c0_12 = arith.constant 0 : index
    %c0_13 = arith.constant 0 : index
    %27 = vector.load %arg4[%c0_12, %c0_13] : memref<1x32xf32, #tpu.memory_space<vmem>>, vector<1x32xf32>
    %28 = vector.broadcast %27 : vector<1x32xf32> to vector<392x32xf32>
    %29 = arith.addf %26, %28 : vector<392x32xf32>
    %cst_14 = arith.constant 0.000000e+00 : f32
    %30 = vector.broadcast %cst_14 : f32 to vector<392x32xf32>
    %31 = arith.cmpf ogt, %29, %30 : vector<392x32xf32>
    %cst_15 = arith.constant 2.000000e-01 : f32
    %32 = vector.broadcast %cst_15 : f32 to vector<392x32xf32>
    %33 = arith.mulf %32, %29 : vector<392x32xf32>
    %34 = arith.select %31, %29, %33 : vector<392x32xi1>, vector<392x32xf32>
    %c0_16 = arith.constant 0 : index
    %c0_17 = arith.constant 0 : index
    %35 = vector.load %arg5[%c0_16, %c0_17] : memref<392x32xf32, #tpu.memory_space<vmem>>, vector<392x32xf32>
    tpu.vector_store %arg5[%c0_16, %c0_17], %34 {strides = array<i32>} : memref<392x32xf32, #tpu.memory_space<vmem>>, vector<392x32xf32>,
    return
  }
}

module attributes {stable_mosaic.version = 11 : i64} {
  func.func @_mm_bn_lrelu_kernel(%arg0: memref<98x288xbf16, #tpu.memory_space<vmem>>, %arg1: memref<288x64xbf16, #tpu.memory_space<vmem>>, %arg2: memref<1x64xf32, #tpu.memory_space<vmem>>, %arg3: memref<1x64xf32, #tpu.memory_space<vmem>>, %arg4: memref<1x64xf32, #tpu.memory_space<vmem>>, %arg5: memref<98x64xf32, #tpu.memory_space<vmem>>) attributes {dimension_semantics = [], scalar_prefetch = 0 : i64, scratch_operands = 0 : i64, tpu.core_type = #tpu.core_type<tc>} {
    %c0 = arith.constant 0 : index
    %c0_0 = arith.constant 0 : index
    %0 = vector.load %arg0[%c0, %c0_0] : memref<98x288xbf16, #tpu.memory_space<vmem>>, vector<98x288xbf16>
    %c0_1 = arith.constant 0 : index
    %c0_2 = arith.constant 0 : index
    %1 = vector.load %arg1[%c0_1, %c0_2] : memref<288x64xbf16, #tpu.memory_space<vmem>>, vector<288x64xbf16>
    %cst = arith.constant dense<0.000000e+00> : vector<98x64xf32>
    %2 = tpu.matmul %0, %1, %cst {dimension_numbers = #tpu.dot_dimension_numbers<[1], [0], [0], [1], [0, 0, 1, 1], [], []>} : vector<98x288xbf16>, vector<288x64xbf16>, vector<98x64xf32> -> vector<98x64xf32>
    %c0_3 = arith.constant 0 : index
    %c0_4 = arith.constant 0 : index
    %3 = vector.load %arg2[%c0_3, %c0_4] : memref<1x64xf32, #tpu.memory_space<vmem>>, vector<1x64xf32>
    %4 = vector.broadcast %3 : vector<1x64xf32> to vector<98x64xf32>
    %5 = arith.addf %2, %4 : vector<98x64xf32>
    %cst_5 = arith.constant dense<0.000000e+00> : vector<64xf32>
    %6 = vector.multi_reduction <add>, %5, %cst_5 [0] : vector<98x64xf32> to vector<64xf32>
    %7 = vector.shape_cast %6 : vector<64xf32> to vector<1x64xf32>
    %cst_6 = arith.constant 9.800000e+01 : f32
    %8 = vector.broadcast %cst_6 : f32 to vector<1x64xf32>
    %9 = arith.divf %7, %8 : vector<1x64xf32>
    %10 = arith.mulf %5, %5 : vector<98x64xf32>
    %cst_7 = arith.constant dense<0.000000e+00> : vector<64xf32>
    %11 = vector.multi_reduction <add>, %10, %cst_7 [0] : vector<98x64xf32> to vector<64xf32>
    %12 = vector.shape_cast %11 : vector<64xf32> to vector<1x64xf32>
    %cst_8 = arith.constant 9.800000e+01 : f32
    %13 = vector.broadcast %cst_8 : f32 to vector<1x64xf32>
    %14 = arith.divf %12, %13 : vector<1x64xf32>
    %15 = arith.mulf %9, %9 : vector<1x64xf32>
    %16 = arith.subf %14, %15 : vector<1x64xf32>
    %17 = vector.broadcast %9 : vector<1x64xf32> to vector<98x64xf32>
    %18 = arith.subf %5, %17 : vector<98x64xf32>
    %cst_9 = arith.constant 9.99999974E-6 : f32
    %19 = vector.broadcast %cst_9 : f32 to vector<1x64xf32>
    %20 = arith.addf %16, %19 : vector<1x64xf32>
    %21 = math.rsqrt %20 : vector<1x64xf32>
    %22 = vector.broadcast %21 : vector<1x64xf32> to vector<98x64xf32>
    %23 = arith.mulf %18, %22 : vector<98x64xf32>
    %c0_10 = arith.constant 0 : index
    %c0_11 = arith.constant 0 : index
    %24 = vector.load %arg3[%c0_10, %c0_11] : memref<1x64xf32, #tpu.memory_space<vmem>>, vector<1x64xf32>
    %25 = vector.broadcast %24 : vector<1x64xf32> to vector<98x64xf32>
    %26 = arith.mulf %23, %25 : vector<98x64xf32>
    %c0_12 = arith.constant 0 : index
    %c0_13 = arith.constant 0 : index
    %27 = vector.load %arg4[%c0_12, %c0_13] : memref<1x64xf32, #tpu.memory_space<vmem>>, vector<1x64xf32>
    %28 = vector.broadcast %27 : vector<1x64xf32> to vector<98x64xf32>
    %29 = arith.addf %26, %28 : vector<98x64xf32>
    %cst_14 = arith.constant 0.000000e+00 : f32
    %30 = vector.broadcast %cst_14 : f32 to vector<98x64xf32>
    %31 = arith.cmpf ogt, %29, %30 : vector<98x64xf32>
    %cst_15 = arith.constant 2.000000e-01 : f32
    %32 = vector.broadcast %cst_15 : f32 to vector<98x64xf32>
    %33 = arith.mulf %32, %29 : vector<98x64xf32>
    %34 = arith.select %31, %29, %33 : vector<98x64xi1>, vector<98x64xf32>
    %c0_16 = arith.constant 0 : index
    %c0_17 = arith.constant 0 : index
    %35 = vector.load %arg5[%c0_16, %c0_17] : memref<98x64xf32, #tpu.memory_space<vmem>>, vector<98x64xf32>
    tpu.vector_store %arg5[%c0_16, %c0_17], %34 {strides = array<i32>} : memref<98x64xf32, #tpu.memory_space<vmem>>, vector<98x64xf32>,
    return
  }
}

module attributes {stable_mosaic.version = 11 : i64} {
  func.func @_mm_bn_lrelu_kernel(%arg0: memref<32x576xbf16, #tpu.memory_space<vmem>>, %arg1: memref<576x128xbf16, #tpu.memory_space<vmem>>, %arg2: memref<1x128xf32, #tpu.memory_space<vmem>>, %arg3: memref<1x128xf32, #tpu.memory_space<vmem>>, %arg4: memref<1x128xf32, #tpu.memory_space<vmem>>, %arg5: memref<32x128xf32, #tpu.memory_space<vmem>>) attributes {dimension_semantics = [], scalar_prefetch = 0 : i64, scratch_operands = 0 : i64, tpu.core_type = #tpu.core_type<tc>} {
    %c0 = arith.constant 0 : index
    %c0_0 = arith.constant 0 : index
    %0 = vector.load %arg0[%c0, %c0_0] : memref<32x576xbf16, #tpu.memory_space<vmem>>, vector<32x576xbf16>
    %c0_1 = arith.constant 0 : index
    %c0_2 = arith.constant 0 : index
    %1 = vector.load %arg1[%c0_1, %c0_2] : memref<576x128xbf16, #tpu.memory_space<vmem>>, vector<576x128xbf16>
    %cst = arith.constant dense<0.000000e+00> : vector<32x128xf32>
    %2 = tpu.matmul %0, %1, %cst {dimension_numbers = #tpu.dot_dimension_numbers<[1], [0], [0], [1], [0, 0, 1, 1], [], []>} : vector<32x576xbf16>, vector<576x128xbf16>, vector<32x128xf32> -> vector<32x128xf32>
    %c0_3 = arith.constant 0 : index
    %c0_4 = arith.constant 0 : index
    %3 = vector.load %arg2[%c0_3, %c0_4] : memref<1x128xf32, #tpu.memory_space<vmem>>, vector<1x128xf32>
    %4 = vector.broadcast %3 : vector<1x128xf32> to vector<32x128xf32>
    %5 = arith.addf %2, %4 : vector<32x128xf32>
    %cst_5 = arith.constant dense<0.000000e+00> : vector<128xf32>
    %6 = vector.multi_reduction <add>, %5, %cst_5 [0] : vector<32x128xf32> to vector<128xf32>
    %7 = vector.shape_cast %6 : vector<128xf32> to vector<1x128xf32>
    %cst_6 = arith.constant 3.200000e+01 : f32
    %8 = vector.broadcast %cst_6 : f32 to vector<1x128xf32>
    %9 = arith.divf %7, %8 : vector<1x128xf32>
    %10 = arith.mulf %5, %5 : vector<32x128xf32>
    %cst_7 = arith.constant dense<0.000000e+00> : vector<128xf32>
    %11 = vector.multi_reduction <add>, %10, %cst_7 [0] : vector<32x128xf32> to vector<128xf32>
    %12 = vector.shape_cast %11 : vector<128xf32> to vector<1x128xf32>
    %cst_8 = arith.constant 3.200000e+01 : f32
    %13 = vector.broadcast %cst_8 : f32 to vector<1x128xf32>
    %14 = arith.divf %12, %13 : vector<1x128xf32>
    %15 = arith.mulf %9, %9 : vector<1x128xf32>
    %16 = arith.subf %14, %15 : vector<1x128xf32>
    %17 = vector.broadcast %9 : vector<1x128xf32> to vector<32x128xf32>
    %18 = arith.subf %5, %17 : vector<32x128xf32>
    %cst_9 = arith.constant 9.99999974E-6 : f32
    %19 = vector.broadcast %cst_9 : f32 to vector<1x128xf32>
    %20 = arith.addf %16, %19 : vector<1x128xf32>
    %21 = math.rsqrt %20 : vector<1x128xf32>
    %22 = vector.broadcast %21 : vector<1x128xf32> to vector<32x128xf32>
    %23 = arith.mulf %18, %22 : vector<32x128xf32>
    %c0_10 = arith.constant 0 : index
    %c0_11 = arith.constant 0 : index
    %24 = vector.load %arg3[%c0_10, %c0_11] : memref<1x128xf32, #tpu.memory_space<vmem>>, vector<1x128xf32>
    %25 = vector.broadcast %24 : vector<1x128xf32> to vector<32x128xf32>
    %26 = arith.mulf %23, %25 : vector<32x128xf32>
    %c0_12 = arith.constant 0 : index
    %c0_13 = arith.constant 0 : index
    %27 = vector.load %arg4[%c0_12, %c0_13] : memref<1x128xf32, #tpu.memory_space<vmem>>, vector<1x128xf32>
    %28 = vector.broadcast %27 : vector<1x128xf32> to vector<32x128xf32>
    %29 = arith.addf %26, %28 : vector<32x128xf32>
    %cst_14 = arith.constant 0.000000e+00 : f32
    %30 = vector.broadcast %cst_14 : f32 to vector<32x128xf32>
    %31 = arith.cmpf ogt, %29, %30 : vector<32x128xf32>
    %cst_15 = arith.constant 2.000000e-01 : f32
    %32 = vector.broadcast %cst_15 : f32 to vector<32x128xf32>
    %33 = arith.mulf %32, %29 : vector<32x128xf32>
    %34 = arith.select %31, %29, %33 : vector<32x128xi1>, vector<32x128xf32>
    %c0_16 = arith.constant 0 : index
    %c0_17 = arith.constant 0 : index
    %35 = vector.load %arg5[%c0_16, %c0_17] : memref<32x128xf32, #tpu.memory_space<vmem>>, vector<32x128xf32>
    tpu.vector_store %arg5[%c0_16, %c0_17], %34 {strides = array<i32>} : memref<32x128xf32, #tpu.memory_space<vmem>>, vector<32x128xf32>,
    return
  }
}

module attributes {stable_mosaic.version = 11 : i64} {
  func.func @_latent_kernel(%arg0: memref<2x2048xbf16, #tpu.memory_space<vmem>>, %arg1: memref<2048x32xbf16, #tpu.memory_space<vmem>>, %arg2: memref<1x32xf32, #tpu.memory_space<vmem>>, %arg3: memref<2x16xf32, #tpu.memory_space<vmem>>, %arg4: memref<16x2048xbf16, #tpu.memory_space<vmem>>, %arg5: memref<1x2048xf32, #tpu.memory_space<vmem>>, %arg6: memref<2x16xf32, #tpu.memory_space<vmem>>, %arg7: memref<2x16xf32, #tpu.memory_space<vmem>>, %arg8: memref<2x2048xf32, #tpu.memory_space<vmem>>) attributes {dimension_semantics = [], scalar_prefetch = 0 : i64, scratch_operands = 0 : i64, tpu.core_type = #tpu.core_type<tc>} {
    %c0 = arith.constant 0 : index
    %c0_0 = arith.constant 0 : index
    %0 = vector.load %arg0[%c0, %c0_0] : memref<2x2048xbf16, #tpu.memory_space<vmem>>, vector<2x2048xbf16>
    %c0_1 = arith.constant 0 : index
    %c0_2 = arith.constant 0 : index
    %1 = vector.load %arg1[%c0_1, %c0_2] : memref<2048x32xbf16, #tpu.memory_space<vmem>>, vector<2048x32xbf16>
    %cst = arith.constant dense<0.000000e+00> : vector<2x32xf32>
    %2 = tpu.matmul %0, %1, %cst {dimension_numbers = #tpu.dot_dimension_numbers<[1], [0], [0], [1], [0, 0, 1, 1], [], []>} : vector<2x2048xbf16>, vector<2048x32xbf16>, vector<2x32xf32> -> vector<2x32xf32>
    %c0_3 = arith.constant 0 : index
    %c0_4 = arith.constant 0 : index
    %3 = vector.load %arg2[%c0_3, %c0_4] : memref<1x32xf32, #tpu.memory_space<vmem>>, vector<1x32xf32>
    %4 = vector.broadcast %3 : vector<1x32xf32> to vector<2x32xf32>
    %5 = arith.addf %2, %4 : vector<2x32xf32>
    %6 = vector.extract_strided_slice %5 {offsets = [0, 0], sizes = [2, 16], strides = [1, 1]} : vector<2x32xf32> to vector<2x16xf32>
    %7 = vector.extract_strided_slice %5 {offsets = [0, 16], sizes = [2, 16], strides = [1, 1]} : vector<2x32xf32> to vector<2x16xf32>
    %c0_5 = arith.constant 0 : index
    %c0_6 = arith.constant 0 : index
    %8 = vector.load %arg3[%c0_5, %c0_6] : memref<2x16xf32, #tpu.memory_space<vmem>>, vector<2x16xf32>
    %cst_7 = arith.constant 5.000000e-01 : f32
    %9 = vector.broadcast %cst_7 : f32 to vector<2x16xf32>
    %10 = arith.mulf %9, %7 : vector<2x16xf32>
    %11 = math.exp %10 : vector<2x16xf32>
    %12 = arith.mulf %8, %11 : vector<2x16xf32>
    %13 = arith.addf %6, %12 : vector<2x16xf32>
    %14 = arith.truncf %13 : vector<2x16xf32> to vector<2x16xbf16>
    %c0_8 = arith.constant 0 : index
    %c0_9 = arith.constant 0 : index
    %15 = vector.load %arg4[%c0_8, %c0_9] : memref<16x2048xbf16, #tpu.memory_space<vmem>>, vector<16x2048xbf16>
    %cst_10 = arith.constant dense<0.000000e+00> : vector<2x2048xf32>
    %16 = tpu.matmul %14, %15, %cst_10 {dimension_numbers = #tpu.dot_dimension_numbers<[1], [0], [0], [1], [0, 0, 1, 1], [], []>} : vector<2x16xbf16>, vector<16x2048xbf16>, vector<2x2048xf32> -> vector<2x2048xf32>
    %c0_11 = arith.constant 0 : index
    %c0_12 = arith.constant 0 : index
    %17 = vector.load %arg6[%c0_11, %c0_12] : memref<2x16xf32, #tpu.memory_space<vmem>>, vector<2x16xf32>
    tpu.vector_store %arg6[%c0_11, %c0_12], %6 {strides = array<i32>} : memref<2x16xf32, #tpu.memory_space<vmem>>, vector<2x16xf32>,
    %c0_13 = arith.constant 0 : index
    %c0_14 = arith.constant 0 : index
    %18 = vector.load %arg7[%c0_13, %c0_14] : memref<2x16xf32, #tpu.memory_space<vmem>>, vector<2x16xf32>
    tpu.vector_store %arg7[%c0_13, %c0_14], %7 {strides = array<i32>} : memref<2x16xf32, #tpu.memory_space<vmem>>, vector<2x16xf32>,
    %c0_15 = arith.constant 0 : index
    %c0_16 = arith.constant 0 : index
    %19 = vector.load %arg5[%c0_15, %c0_16] : memref<1x2048xf32, #tpu.memory_space<vmem>>, vector<1x2048xf32>
    %20 = vector.broadcast %19 : vector<1x2048xf32> to vector<2x2048xf32>
    %21 = arith.addf %16, %20 : vector<2x2048xf32>
    %c0_17 = arith.constant 0 : index
    %c0_18 = arith.constant 0 : index
    %22 = vector.load %arg8[%c0_17, %c0_18] : memref<2x2048xf32, #tpu.memory_space<vmem>>, vector<2x2048xf32>
    tpu.vector_store %arg8[%c0_17, %c0_18], %21 {strides = array<i32>} : memref<2x2048xf32, #tpu.memory_space<vmem>>, vector<2x2048xf32>,
    return
  }
}

module attributes {stable_mosaic.version = 11 : i64} {
  func.func @_mm_bn4_lrelu_kernel(%arg0: memref<32x512xbf16, #tpu.memory_space<vmem>>, %arg1: memref<512x256xbf16, #tpu.memory_space<vmem>>, %arg2: memref<1x256xf32, #tpu.memory_space<vmem>>, %arg3: memref<1x256xf32, #tpu.memory_space<vmem>>, %arg4: memref<1x256xf32, #tpu.memory_space<vmem>>, %arg5: memref<32x256xf32, #tpu.memory_space<vmem>>) attributes {dimension_semantics = [], scalar_prefetch = 0 : i64, scratch_operands = 0 : i64, tpu.core_type = #tpu.core_type<tc>} {
    %c0 = arith.constant 0 : index
    %c0_0 = arith.constant 0 : index
    %0 = vector.load %arg0[%c0, %c0_0] : memref<32x512xbf16, #tpu.memory_space<vmem>>, vector<32x512xbf16>
    %c0_1 = arith.constant 0 : index
    %c0_2 = arith.constant 0 : index
    %1 = vector.load %arg1[%c0_1, %c0_2] : memref<512x256xbf16, #tpu.memory_space<vmem>>, vector<512x256xbf16>
    %cst = arith.constant dense<0.000000e+00> : vector<32x256xf32>
    %2 = tpu.matmul %0, %1, %cst {dimension_numbers = #tpu.dot_dimension_numbers<[1], [0], [0], [1], [0, 0, 1, 1], [], []>} : vector<32x512xbf16>, vector<512x256xbf16>, vector<32x256xf32> -> vector<32x256xf32>
    %c0_3 = arith.constant 0 : index
    %c0_4 = arith.constant 0 : index
    %3 = vector.load %arg2[%c0_3, %c0_4] : memref<1x256xf32, #tpu.memory_space<vmem>>, vector<1x256xf32>
    %4 = vector.broadcast %3 : vector<1x256xf32> to vector<32x256xf32>
    %5 = arith.addf %2, %4 : vector<32x256xf32>
    %cst_5 = arith.constant dense<0.000000e+00> : vector<256xf32>
    %6 = vector.multi_reduction <add>, %5, %cst_5 [0] : vector<32x256xf32> to vector<256xf32>
    %7 = vector.shape_cast %6 : vector<256xf32> to vector<1x256xf32>
    %8 = arith.mulf %5, %5 : vector<32x256xf32>
    %cst_6 = arith.constant dense<0.000000e+00> : vector<256xf32>
    %9 = vector.multi_reduction <add>, %8, %cst_6 [0] : vector<32x256xf32> to vector<256xf32>
    %10 = vector.shape_cast %9 : vector<256xf32> to vector<1x256xf32>
    %11 = vector.extract_strided_slice %7 {offsets = [0, 0], sizes = [1, 64], strides = [1, 1]} : vector<1x256xf32> to vector<1x64xf32>
    %12 = vector.extract_strided_slice %7 {offsets = [0, 64], sizes = [1, 64], strides = [1, 1]} : vector<1x256xf32> to vector<1x64xf32>
    %13 = arith.addf %11, %12 : vector<1x64xf32>
    %14 = vector.extract_strided_slice %7 {offsets = [0, 128], sizes = [1, 64], strides = [1, 1]} : vector<1x256xf32> to vector<1x64xf32>
    %15 = arith.addf %13, %14 : vector<1x64xf32>
    %16 = vector.extract_strided_slice %7 {offsets = [0, 192], sizes = [1, 64], strides = [1, 1]} : vector<1x256xf32> to vector<1x64xf32>
    %17 = arith.addf %15, %16 : vector<1x64xf32>
    %18 = vector.extract_strided_slice %10 {offsets = [0, 0], sizes = [1, 64], strides = [1, 1]} : vector<1x256xf32> to vector<1x64xf32>
    %19 = vector.extract_strided_slice %10 {offsets = [0, 64], sizes = [1, 64], strides = [1, 1]} : vector<1x256xf32> to vector<1x64xf32>
    %20 = arith.addf %18, %19 : vector<1x64xf32>
    %21 = vector.extract_strided_slice %10 {offsets = [0, 128], sizes = [1, 64], strides = [1, 1]} : vector<1x256xf32> to vector<1x64xf32>
    %22 = arith.addf %20, %21 : vector<1x64xf32>
    %23 = vector.extract_strided_slice %10 {offsets = [0, 192], sizes = [1, 64], strides = [1, 1]} : vector<1x256xf32> to vector<1x64xf32>
    %24 = arith.addf %22, %23 : vector<1x64xf32>
    %cst_7 = arith.constant 1.280000e+02 : f32
    %25 = vector.broadcast %cst_7 : f32 to vector<1x64xf32>
    %26 = arith.divf %17, %25 : vector<1x64xf32>
    %cst_8 = arith.constant 1.280000e+02 : f32
    %27 = vector.broadcast %cst_8 : f32 to vector<1x64xf32>
    %28 = arith.divf %24, %27 : vector<1x64xf32>
    %29 = arith.mulf %26, %26 : vector<1x64xf32>
    %30 = arith.subf %28, %29 : vector<1x64xf32>
    %cst_9 = arith.constant 9.99999974E-6 : f32
    %31 = vector.broadcast %cst_9 : f32 to vector<1x64xf32>
    %32 = arith.addf %30, %31 : vector<1x64xf32>
    %33 = math.rsqrt %32 : vector<1x64xf32>
    %34 = tpu.concatenate %26, %26, %26, %26 in 1 : vector<1x64xf32>, vector<1x64xf32>, vector<1x64xf32>, vector<1x64xf32> -> vector<1x256xf32>
    %35 = tpu.concatenate %33, %33, %33, %33 in 1 : vector<1x64xf32>, vector<1x64xf32>, vector<1x64xf32>, vector<1x64xf32> -> vector<1x256xf32>
    %36 = vector.broadcast %34 : vector<1x256xf32> to vector<32x256xf32>
    %37 = arith.subf %5, %36 : vector<32x256xf32>
    %38 = vector.broadcast %35 : vector<1x256xf32> to vector<32x256xf32>
    %39 = arith.mulf %37, %38 : vector<32x256xf32>
    %c0_10 = arith.constant 0 : index
    %c0_11 = arith.constant 0 : index
    %40 = vector.load %arg3[%c0_10, %c0_11] : memref<1x256xf32, #tpu.memory_space<vmem>>, vector<1x256xf32>
    %41 = vector.broadcast %40 : vector<1x256xf32> to vector<32x256xf32>
    %42 = arith.mulf %39, %41 : vector<32x256xf32>
    %c0_12 = arith.constant 0 : index
    %c0_13 = arith.constant 0 : index
    %43 = vector.load %arg4[%c0_12, %c0_13] : memref<1x256xf32, #tpu.memory_space<vmem>>, vector<1x256xf32>
    %44 = vector.broadcast %43 : vector<1x256xf32> to vector<32x256xf32>
    %45 = arith.addf %42, %44 : vector<32x256xf32>
    %cst_14 = arith.constant 0.000000e+00 : f32
    %46 = vector.broadcast %cst_14 : f32 to vector<32x256xf32>
    %47 = arith.cmpf ogt, %45, %46 : vector<32x256xf32>
    %cst_15 = arith.constant 2.000000e-01 : f32
    %48 = vector.broadcast %cst_15 : f32 to vector<32x256xf32>
    %49 = arith.mulf %48, %45 : vector<32x256xf32>
    %50 = arith.select %47, %45, %49 : vector<32x256xi1>, vector<32x256xf32>
    %c0_16 = arith.constant 0 : index
    %c0_17 = arith.constant 0 : index
    %51 = vector.load %arg5[%c0_16, %c0_17] : memref<32x256xf32, #tpu.memory_space<vmem>>, vector<32x256xf32>
    tpu.vector_store %arg5[%c0_16, %c0_17], %50 {strides = array<i32>} : memref<32x256xf32, #tpu.memory_space<vmem>>, vector<32x256xf32>,
    return
  }
}

module attributes {stable_mosaic.version = 11 : i64} {
  func.func @_mm_bn4_lrelu_kernel(%arg0: memref<128x256xbf16, #tpu.memory_space<vmem>>, %arg1: memref<256x128xbf16, #tpu.memory_space<vmem>>, %arg2: memref<1x128xf32, #tpu.memory_space<vmem>>, %arg3: memref<1x128xf32, #tpu.memory_space<vmem>>, %arg4: memref<1x128xf32, #tpu.memory_space<vmem>>, %arg5: memref<128x128xf32, #tpu.memory_space<vmem>>) attributes {dimension_semantics = [], scalar_prefetch = 0 : i64, scratch_operands = 0 : i64, tpu.core_type = #tpu.core_type<tc>} {
    %c0 = arith.constant 0 : index
    %c0_0 = arith.constant 0 : index
    %0 = vector.load %arg0[%c0, %c0_0] : memref<128x256xbf16, #tpu.memory_space<vmem>>, vector<128x256xbf16>
    %c0_1 = arith.constant 0 : index
    %c0_2 = arith.constant 0 : index
    %1 = vector.load %arg1[%c0_1, %c0_2] : memref<256x128xbf16, #tpu.memory_space<vmem>>, vector<256x128xbf16>
    %cst = arith.constant dense<0.000000e+00> : vector<128x128xf32>
    %2 = tpu.matmul %0, %1, %cst {dimension_numbers = #tpu.dot_dimension_numbers<[1], [0], [0], [1], [0, 0, 1, 1], [], []>} : vector<128x256xbf16>, vector<256x128xbf16>, vector<128x128xf32> -> vector<128x128xf32>
    %c0_3 = arith.constant 0 : index
    %c0_4 = arith.constant 0 : index
    %3 = vector.load %arg2[%c0_3, %c0_4] : memref<1x128xf32, #tpu.memory_space<vmem>>, vector<1x128xf32>
    %4 = vector.broadcast %3 : vector<1x128xf32> to vector<128x128xf32>
    %5 = arith.addf %2, %4 : vector<128x128xf32>
    %cst_5 = arith.constant dense<0.000000e+00> : vector<128xf32>
    %6 = vector.multi_reduction <add>, %5, %cst_5 [0] : vector<128x128xf32> to vector<128xf32>
    %7 = vector.shape_cast %6 : vector<128xf32> to vector<1x128xf32>
    %8 = arith.mulf %5, %5 : vector<128x128xf32>
    %cst_6 = arith.constant dense<0.000000e+00> : vector<128xf32>
    %9 = vector.multi_reduction <add>, %8, %cst_6 [0] : vector<128x128xf32> to vector<128xf32>
    %10 = vector.shape_cast %9 : vector<128xf32> to vector<1x128xf32>
    %11 = vector.extract_strided_slice %7 {offsets = [0, 0], sizes = [1, 32], strides = [1, 1]} : vector<1x128xf32> to vector<1x32xf32>
    %12 = vector.extract_strided_slice %7 {offsets = [0, 32], sizes = [1, 32], strides = [1, 1]} : vector<1x128xf32> to vector<1x32xf32>
    %13 = arith.addf %11, %12 : vector<1x32xf32>
    %14 = vector.extract_strided_slice %7 {offsets = [0, 64], sizes = [1, 32], strides = [1, 1]} : vector<1x128xf32> to vector<1x32xf32>
    %15 = arith.addf %13, %14 : vector<1x32xf32>
    %16 = vector.extract_strided_slice %7 {offsets = [0, 96], sizes = [1, 32], strides = [1, 1]} : vector<1x128xf32> to vector<1x32xf32>
    %17 = arith.addf %15, %16 : vector<1x32xf32>
    %18 = vector.extract_strided_slice %10 {offsets = [0, 0], sizes = [1, 32], strides = [1, 1]} : vector<1x128xf32> to vector<1x32xf32>
    %19 = vector.extract_strided_slice %10 {offsets = [0, 32], sizes = [1, 32], strides = [1, 1]} : vector<1x128xf32> to vector<1x32xf32>
    %20 = arith.addf %18, %19 : vector<1x32xf32>
    %21 = vector.extract_strided_slice %10 {offsets = [0, 64], sizes = [1, 32], strides = [1, 1]} : vector<1x128xf32> to vector<1x32xf32>
    %22 = arith.addf %20, %21 : vector<1x32xf32>
    %23 = vector.extract_strided_slice %10 {offsets = [0, 96], sizes = [1, 32], strides = [1, 1]} : vector<1x128xf32> to vector<1x32xf32>
    %24 = arith.addf %22, %23 : vector<1x32xf32>
    %cst_7 = arith.constant 5.120000e+02 : f32
    %25 = vector.broadcast %cst_7 : f32 to vector<1x32xf32>
    %26 = arith.divf %17, %25 : vector<1x32xf32>
    %cst_8 = arith.constant 5.120000e+02 : f32
    %27 = vector.broadcast %cst_8 : f32 to vector<1x32xf32>
    %28 = arith.divf %24, %27 : vector<1x32xf32>
    %29 = arith.mulf %26, %26 : vector<1x32xf32>
    %30 = arith.subf %28, %29 : vector<1x32xf32>
    %cst_9 = arith.constant 9.99999974E-6 : f32
    %31 = vector.broadcast %cst_9 : f32 to vector<1x32xf32>
    %32 = arith.addf %30, %31 : vector<1x32xf32>
    %33 = math.rsqrt %32 : vector<1x32xf32>
    %34 = tpu.concatenate %26, %26, %26, %26 in 1 : vector<1x32xf32>, vector<1x32xf32>, vector<1x32xf32>, vector<1x32xf32> -> vector<1x128xf32>
    %35 = tpu.concatenate %33, %33, %33, %33 in 1 : vector<1x32xf32>, vector<1x32xf32>, vector<1x32xf32>, vector<1x32xf32> -> vector<1x128xf32>
    %36 = vector.broadcast %34 : vector<1x128xf32> to vector<128x128xf32>
    %37 = arith.subf %5, %36 : vector<128x128xf32>
    %38 = vector.broadcast %35 : vector<1x128xf32> to vector<128x128xf32>
    %39 = arith.mulf %37, %38 : vector<128x128xf32>
    %c0_10 = arith.constant 0 : index
    %c0_11 = arith.constant 0 : index
    %40 = vector.load %arg3[%c0_10, %c0_11] : memref<1x128xf32, #tpu.memory_space<vmem>>, vector<1x128xf32>
    %41 = vector.broadcast %40 : vector<1x128xf32> to vector<128x128xf32>
    %42 = arith.mulf %39, %41 : vector<128x128xf32>
    %c0_12 = arith.constant 0 : index
    %c0_13 = arith.constant 0 : index
    %43 = vector.load %arg4[%c0_12, %c0_13] : memref<1x128xf32, #tpu.memory_space<vmem>>, vector<1x128xf32>
    %44 = vector.broadcast %43 : vector<1x128xf32> to vector<128x128xf32>
    %45 = arith.addf %42, %44 : vector<128x128xf32>
    %cst_14 = arith.constant 0.000000e+00 : f32
    %46 = vector.broadcast %cst_14 : f32 to vector<128x128xf32>
    %47 = arith.cmpf ogt, %45, %46 : vector<128x128xf32>
    %cst_15 = arith.constant 2.000000e-01 : f32
    %48 = vector.broadcast %cst_15 : f32 to vector<128x128xf32>
    %49 = arith.mulf %48, %45 : vector<128x128xf32>
    %50 = arith.select %47, %45, %49 : vector<128x128xi1>, vector<128x128xf32>
    %c0_16 = arith.constant 0 : index
    %c0_17 = arith.constant 0 : index
    %51 = vector.load %arg5[%c0_16, %c0_17] : memref<128x128xf32, #tpu.memory_space<vmem>>, vector<128x128xf32>
    tpu.vector_store %arg5[%c0_16, %c0_17], %50 {strides = array<i32>} : memref<128x128xf32, #tpu.memory_space<vmem>>, vector<128x128xf32>,
    return
  }
}

module attributes {stable_mosaic.version = 11 : i64} {
  func.func @_matT_bias_sigmoid_kernel(%arg0: i32, %arg1: memref<4x128xbf16, #tpu.memory_space<vmem>>, %arg2: memref<128x128xbf16, #tpu.memory_space<vmem>>, %arg3: memref<1x1xf32, #tpu.memory_space<vmem>>, %arg4: memref<4x128xf32, #tpu.memory_space<vmem>>) attributes {dimension_semantics = [#tpu.dimension_semantics<parallel>], iteration_bounds = array<i64: 4>, scalar_prefetch = 0 : i64, scratch_operands = 0 : i64, tpu.core_type = #tpu.core_type<tc>, window_params = [{pipeline_mode = #tpu.pipeline_mode<synchronous>, transform_indices = @transform_0, window_bounds = array<i64: 4, 128>}, {transform_indices = @transform_1, window_bounds = array<i64: 128, 128>}, {pipeline_mode = #tpu.pipeline_mode<synchronous>, transform_indices = @transform_2, window_bounds = array<i64: 1, 1>}, {transform_indices = @transform_3, window_bounds = array<i64: 4, 128>}]} {
    %c0 = arith.constant 0 : index
    %c0_0 = arith.constant 0 : index
    %0 = vector.load %arg1[%c0, %c0_0] : memref<4x128xbf16, #tpu.memory_space<vmem>>, vector<4x128xbf16>
    %c0_1 = arith.constant 0 : index
    %c0_2 = arith.constant 0 : index
    %1 = vector.load %arg2[%c0_1, %c0_2] : memref<128x128xbf16, #tpu.memory_space<vmem>>, vector<128x128xbf16>
    %cst = arith.constant dense<0.000000e+00> : vector<4x128xf32>
    %2 = tpu.matmul %0, %1, %cst {dimension_numbers = #tpu.dot_dimension_numbers<[1], [0], [0], [1], [0, 0, 1, 1], [], []>} : vector<4x128xbf16>, vector<128x128xbf16>, vector<4x128xf32> -> vector<4x128xf32>
    %c0_3 = arith.constant 0 : index
    %c0_4 = arith.constant 0 : index
    %3 = vector.load %arg3[%c0_3, %c0_4] : memref<1x1xf32, #tpu.memory_space<vmem>>, vector<1x1xf32>
    %4 = vector.broadcast %3 : vector<1x1xf32> to vector<4x128xf32>
    %5 = arith.addf %2, %4 : vector<4x128xf32>
    %6 = arith.negf %5 : vector<4x128xf32>
    %7 = math.exp %6 : vector<4x128xf32>
    %cst_5 = arith.constant 1.000000e+00 : f32
    %8 = vector.broadcast %cst_5 : f32 to vector<4x128xf32>
    %9 = arith.addf %8, %7 : vector<4x128xf32>
    %10 = arith.divf %8, %9 : vector<4x128xf32>
    %c0_6 = arith.constant 0 : index
    %c0_7 = arith.constant 0 : index
    %11 = vector.load %arg4[%c0_6, %c0_7] : memref<4x128xf32, #tpu.memory_space<vmem>>, vector<4x128xf32>
    tpu.vector_store %arg4[%c0_6, %c0_7], %10 {strides = array<i32>} : memref<4x128xf32, #tpu.memory_space<vmem>>, vector<4x128xf32>,
    return
  }
  func.func @transform_0(%arg0: i32) -> (i32, i32) {
    %c0_i32 = arith.constant 0 : i32
    %c0_i32_0 = arith.constant 0 : i32
    %c0_i32_1 = arith.constant 0 : i32
    return %c0_i32, %c0_i32_0 : i32, i32
  }
  func.func @transform_1(%arg0: i32) -> (i32, i32) {
    %c0_i32 = arith.constant 0 : i32
    %c0_i32_0 = arith.constant 0 : i32
    return %c0_i32, %arg0 : i32, i32
  }
  func.func @transform_2(%arg0: i32) -> (i32, i32) {
    %c0_i32 = arith.constant 0 : i32
    %c0_i32_0 = arith.constant 0 : i32
    %c0_i32_1 = arith.constant 0 : i32
    return %c0_i32, %c0_i32_0 : i32, i32
  }
  func.func @transform_3(%arg0: i32) -> (i32, i32) {
    %c0_i32 = arith.constant 0 : i32
    %c0_i32_0 = arith.constant 0 : i32
    return %c0_i32, %arg0 : i32, i32
  }
}

</mosaic_0001>

<bundles_post_ra>
// kernel: vae_forward.7
= control target key start
LH: loop header
LB: loop body
LE: loop exit
PB: predicated region body
PF: predicated region fallthrough
CT: control target
= control target key end

     0   :  { %vm283_vm0 = vcmask 1043456   ;;  %vm284_vm1 = vcmask 1044480   ;;  %v1410_v0 = vmov 0.0   ;;  %v1411_v2 = vmov 65535   ;;  %s2900_s1 = inlined_call_operand.vmem [shape: bf16[9,32], index: 1, kind: input, shape index: {}]   ;;  %s2901_s0 = inlined_call_operand.vmem [shape: bf16[392,9], index: 0, kind: input, shape index: {}]   ;;  %s2902_s2 = inlined_call_operand.vmem [shape: f32[1,32], index: 2, kind: input, shape index: {}]   ;;  %s2903_s3 = inlined_call_operand.vmem [shape: f32[1,32], index: 3, kind: input, shape index: {}]   ;;  %s2904_s4 = inlined_call_operand.vmem [shape: f32[1,32], index: 4, kind: input, shape index: {}]   ;;  %s2905_s5 = inlined_call_operand.vmem [shape: f32[392,32], index: 5, kind: output, shape index: {}]  }
   0x1   :  { %1275 = vmatprep.subr.bf16.mxu0 %v1410_v0  ;;  %v1382_v1 = vld [vmem:[%s2900_s1] sm:$0x1f]   ;;  %1377 = vmatprep.subr.bf16.mxu1 %v1410_v0  ;;  %v285_v3 = vsel %vm283_vm0, 4294967295, %v1411_v2  ;;  %vm1412_vm2 = vmmov 0   ;;  %vm207_vm3 = vcmask 72704   ;;  %v1390_v7 = vld [vmem:[%s2901_s0 + $0x68] sm:$0xff]  }
   0x2   :  { %v286_v4 = vsel %vm284_vm1, %v285_v3, 0  ;;  %1277 = vmatprep.mubr.msk.bf16.mxu0 %vm1412_vm2, %v1410_v0  ;;  %1329 = vmatprep.mubr.msk.bf16.mxu1 %vm1412_vm2, %v1410_v0  ;;  %v1383_v6 = vld [vmem:[%s2901_s0] sm:$0xff]   ;;  %v1384_v8 = vld [vmem:[%s2901_s0 + $0x8] sm:$0xff]   ;;  %v1392_v9 = vld [vmem:[%s2901_s0 + $0x70] sm:$0xff]   ;;  %vm522_vm4 = vcmask 261120  }
   0x3   :  { %v288_v5 = vand.u32 %v1382_v1, %v286_v4  ;;  %v1385_v10 = vld [vmem:[%s2901_s0 + $0x10] sm:$0xff]   ;;  %v1394_v11 = vld [vmem:[%s2901_s0 + $0x78] sm:$0xff]   ;;  %v1396_v13 = vld [vmem:[%s2901_s0 + $0x80] sm:$0xff]  }
   0x4   :  { %v1386_v12 = vld [vmem:[%s2901_s0 + $0x18] sm:$0xff]   ;;  %v1387_v14 = vld [vmem:[%s2901_s0 + $0x20] sm:$0xff]   ;;  %v1398_v15 = vld [vmem:[%s2901_s0 + $0x88] sm:$0xff]  }
   0x5   :  { %1276 = vmatpush3.bf16.msra.mxu0 %v288_v5  ;;  %1378 = vmatpush3.bf16.msra.mxu1 %v288_v5  ;;  %v1388_v16 = vld [vmem:[%s2901_s0 + $0x28] sm:$0xff]   ;;  %v1400_v17 = vld [vmem:[%s2901_s0 + $0x90] sm:$0xff]   ;;  %v1402_v19 = vld [vmem:[%s2901_s0 + $0x98] sm:$0xff]  }
   0x6   :  { %v1389_v18 = vld [vmem:[%s2901_s0 + $0x30] sm:$0xff]   ;;  %v1391_v20 = vld [vmem:[%s2901_s0 + $0x38] sm:$0xff]   ;;  %v1403_v21 = vld [vmem:[%s2901_s0 + $0xa0] sm:$0xff]  }
   0x7   :  { %v1393_v22 = vld [vmem:[%s2901_s0 + $0x40] sm:$0xff]   ;;  %v1404_v23 = vld [vmem:[%s2901_s0 + $0xa8] sm:$0xff]   ;;  %v1405_v25 = vld [vmem:[%s2901_s0 + $0xb0] sm:$0xff]  }
   0x8   :  { %1278 = vmatmul.mubr.msk.bf16.vlgmr.msra.gmra.mrb[0].mxu0 %vm207_vm3, %v1383_v6  ;;  %1330 = vmatmul.mubr.msk.bf16.vlgmr.msra.gmra.mrb[0].mxu1 %vm207_vm3, %v1390_v7  ;;  %v1395_v24 = vld [vmem:[%s2901_s0 + $0x48] sm:$0xff]   ;;  %v1397_v26 = vld [vmem:[%s2901_s0 + $0x50] sm:$0xff]   ;;  %v1406_v27 = vld [vmem:[%s2901_s0 + $0xb8] sm:$0xff]  }
   0x9   :  { %1281 = vmatprep.mubr.msk.bf16.mxu0 %vm1412_vm2, %v1410_v0  ;;  %1333 = vmatprep.mubr.msk.bf16.mxu1 %vm1412_vm2, %v1410_v0  ;;  %v1399_v28 = vld [vmem:[%s2901_s0 + $0x58] sm:$0xff]   ;;  %v1407_v29 = vld [vmem:[%s2901_s0 + $0xc0] ss:$0 sps:$4 sm:$0xff]  }
   0xa   :  { %v1401_v30 = vld [vmem:[%s2901_s0 + $0x60] sm:$0xff]  }
   0xb   :  { %v1613_v54 = vld [vmem:[%s2902_s2] ss:$0 sm:$0xff] }
  0x10   :  { %1282 = vmatmul.mubr.msk.bf16.gmra.mrb[4].mxu0 %vm207_vm3, %v1384_v8  ;;  %1334 = vmatmul.mubr.msk.bf16.gmra.mrb[4].mxu1 %vm207_vm3, %v1392_v9 }
  0x11   :  { %1285 = vmatprep.mubr.msk.bf16.mxu0 %vm1412_vm2, %v1410_v0  ;;  %1337 = vmatprep.mubr.msk.bf16.mxu1 %vm1412_vm2, %v1410_v0 }
  0x18   :  { %1286 = vmatmul.mubr.msk.bf16.gmra.mrb[8].mxu0 %vm207_vm3, %v1385_v10  ;;  %1338 = vmatmul.mubr.msk.bf16.gmra.mrb[8].mxu1 %vm207_vm3, %v1394_v11 }
  0x19   :  { %1289 = vmatprep.mubr.msk.bf16.mxu0 %vm1412_vm2, %v1410_v0  ;;  %1341 = vmatprep.mubr.msk.bf16.mxu1 %vm1412_vm2, %v1410_v0 }
  0x20   :  { %1290 = vmatmul.mubr.msk.bf16.gmra.mrb[12].mxu0 %vm207_vm3, %v1386_v12  ;;  %1342 = vmatmul.mubr.msk.bf16.gmra.mrb[12].mxu1 %vm207_vm3, %v1396_v13 }
  0x21   :  { %1293 = vmatprep.mubr.msk.bf16.mxu0 %vm1412_vm2, %v1410_v0  ;;  %1345 = vmatprep.mubr.msk.bf16.mxu1 %vm1412_vm2, %v1410_v0 }
  0x28   :  { %1294 = vmatmul.mubr.msk.bf16.gmra.mrb[16].mxu0 %vm207_vm3, %v1387_v14  ;;  %1346 = vmatmul.mubr.msk.bf16.gmra.mrb[16].mxu1 %vm207_vm3, %v1398_v15 }
  0x29   :  { %1297 = vmatprep.mubr.msk.bf16.mxu0 %vm1412_vm2, %v1410_v0  ;;  %1349 = vmatprep.mubr.msk.bf16.mxu1 %vm1412_vm2, %v1410_v0 }
  0x30   :  { %1298 = vmatmul.mubr.msk.bf16.gmra.mrb[20].mxu0 %vm207_vm3, %v1388_v16  ;;  %1350 = vmatmul.mubr.msk.bf16.gmra.mrb[20].mxu1 %vm207_vm3, %v1400_v17 }
  0x31   :  { %1301 = vmatprep.mubr.msk.bf16.mxu0 %vm1412_vm2, %v1410_v0  ;;  %1353 = vmatprep.mubr.msk.bf16.mxu1 %vm1412_vm2, %v1410_v0 }
  0x38   :  { %1302 = vmatmul.mubr.msk.bf16.gmra.mrb[24].mxu0 %vm207_vm3, %v1389_v18  ;;  %1354 = vmatmul.mubr.msk.bf16.gmra.mrb[24].mxu1 %vm207_vm3, %v1402_v19 }
  0x39   :  { %1305 = vmatprep.mubr.msk.bf16.mxu0 %vm1412_vm2, %v1410_v0  ;;  %1357 = vmatprep.mubr.msk.bf16.mxu1 %vm1412_vm2, %v1410_v0 }
  0x40   :  { %1306 = vmatmul.mubr.msk.bf16.gmra.mrb[28].mxu0 %vm207_vm3, %v1391_v20  ;;  %1358 = vmatmul.mubr.msk.bf16.gmra.mrb[28].mxu1 %vm207_vm3, %v1403_v21 }
  0x41   :  { %1309 = vmatprep.mubr.msk.bf16.mxu0 %vm1412_vm2, %v1410_v0  ;;  %1361 = vmatprep.mubr.msk.bf16.mxu1 %vm1412_vm2, %v1410_v0 }
  0x48   :  { %1310 = vmatmul.mubr.msk.bf16.gmra.mrb[32].mxu0 %vm207_vm3, %v1393_v22  ;;  %1362 = vmatmul.mubr.msk.bf16.gmra.mrb[32].mxu1 %vm207_vm3, %v1404_v23 }
  0x49   :  { %1313 = vmatprep.mubr.msk.bf16.mxu0 %vm1412_vm2, %v1410_v0  ;;  %1365 = vmatprep.mubr.msk.bf16.mxu1 %vm1412_vm2, %v1410_v0 }
  0x50   :  { %1314 = vmatmul.mubr.msk.bf16.gmra.mrb[36].mxu0 %vm207_vm3, %v1395_v24  ;;  %1366 = vmatmul.mubr.msk.bf16.gmra.mrb[36].mxu1 %vm207_vm3, %v1405_v25 }
  0x51   :  { %1317 = vmatprep.mubr.msk.bf16.mxu0 %vm1412_vm2, %v1410_v0  ;;  %1369 = vmatprep.mubr.msk.bf16.mxu1 %vm1412_vm2, %v1410_v0 }
  0x58   :  { %1318 = vmatmul.mubr.msk.bf16.gmra.mrb[40].mxu0 %vm207_vm3, %v1397_v26  ;;  %1370 = vmatmul.mubr.msk.bf16.gmra.mrb[40].mxu1 %vm207_vm3, %v1406_v27 }
  0x59   :  { %1321 = vmatprep.mubr.msk.bf16.mxu0 %vm1412_vm2, %v1410_v0  ;;  %1373 = vmatprep.mubr.msk.bf16.mxu1 %vm1412_vm2, %v1410_v0 }
  0x60   :  { %1322 = vmatmul.mubr.msk.bf16.gmra.mrb[44].mxu0 %vm207_vm3, %v1399_v28  ;;  %1374 = vmatmul.mubr.msk.bf16.gmra.mrb[44].mxu1 %vm207_vm3, %v1407_v29 }
  0x61   :  { %1325 = vmatprep.mubr.msk.bf16.mxu0 %vm1412_vm2, %v1410_v0 }
  0x68   :  { %1326 = vmatmul.mubr.msk.bf16.gmra.mrb[48].mxu0 %vm207_vm3, %v1401_v30 }
  0xdb   :  { %v324_v31 = vpop.f32.mrb[0].mxu0  ;;  %v1598_v35 = vpop.f32.mrb[0].mxu1 }
  0xdc   :  { %v1279_v32 = vpop.f32.mrb[1].mxu0  ;;  %v1331_v36 = vpop.f32.mrb[1].mxu1  ;;  %v1619_v58 = vadd.f32 %v1613_v54, %v324_v31 }
  0xdd   :  { %v327_v33 = vpop.f32.mrb[2].mxu0  ;;  %v1600_v37 = vpop.f32.mrb[2].mxu1 }
  0xde   :  { %v1280_v34 = vpop.f32.mrb[3].mxu0  ;;  %v1332_v38 = vpop.f32.mrb[3].mxu1  ;;  %v1616_v56 = vadd.f32 %v1613_v54, %v327_v33  ;;  %v628_v2 = vmul.f32 %v1619_v58, %v1619_v58  ;;  %v523_v8 = vsel %vm522_vm4, %v1619_v58, 0.0 }
  0xe0   :  { %v629_v62 = vmul.f32 %v1616_v56, %v1616_v56  ;;  %v524_v3 = vsel %vm522_vm4, %v1616_v56, 0.0  ;;  %v677_v14 = vsel %vm522_vm4, %v628_v2, 0.0 }
  0xe1   :  { %v525_v12 = vadd.f32 %v524_v3, %v523_v8 }
  0xe2   :  { %v678_v9 = vsel %vm522_vm4, %v629_v62, 0.0 }
  0xe3   :  { %v332_v39 = vpop.f32.mrb[4].mxu0  ;;  %v1602_v43 = vpop.f32.mrb[4].mxu1  ;;  %v679_v18 = vadd.f32 %v678_v9, %v677_v14 }
  0xe4   :  { %v1283_v40 = vpop.f32.mrb[5].mxu0  ;;  %v1335_v44 = vpop.f32.mrb[5].mxu1  ;;  %v1622_v59 = vadd.f32 %v1613_v54, %v332_v39 }
  0xe5   :  { %v335_v41 = vpop.f32.mrb[6].mxu0  ;;  %v1604_v45 = vpop.f32.mrb[6].mxu1 }
  0xe6   :  { %v1284_v42 = vpop.f32.mrb[7].mxu0  ;;  %v1336_v46 = vpop.f32.mrb[7].mxu1  ;;  %v630_v4 = vmul.f32 %v1622_v59, %v1622_v59  ;;  %v1635_v5 = vadd.f32 %v1613_v54, %v335_v41  ;;  %v526_v10 = vsel %vm522_vm4, %v1622_v59, 0.0 }
  0xe7   :  { %v527_v19 = vadd.f32 %v526_v10, %v525_v12 }
  0xe8   :  { %v680_v15 = vsel %vm522_vm4, %v630_v4, 0.0  ;;  %v631_v16 = vmul.f32 %v1635_v5, %v1635_v5  ;;  %v528_v21 = vsel %vm522_vm4, %v1635_v5, 0.0 }
  0xe9   :  { %v681_v26 = vadd.f32 %v680_v15, %v679_v18  ;;  %v529_v32 = vadd.f32 %v528_v21, %v527_v19 }
  0xea   :  { %v682_v28 = vsel %vm522_vm4, %v631_v16, 0.0 }
  0xeb   :  { %v340_v47 = vpop.f32.mrb[8].mxu0  ;;  %v1606_v51 = vpop.f32.mrb[8].mxu1  ;;  %v683_v38 = vadd.f32 %v682_v28, %v681_v26 }
  0xec   :  { %v1287_v48 = vpop.f32.mrb[9].mxu0  ;;  %v1339_v52 = vpop.f32.mrb[9].mxu1  ;;  %v1645_v11 = vadd.f32 %v1613_v54, %v340_v47 }
  0xed   :  { %v343_v49 = vpop.f32.mrb[10].mxu0  ;;  %v1608_v53 = vpop.f32.mrb[10].mxu1 }
  0xee   :  { %v1288_v50 = vpop.f32.mrb[11].mxu0  ;;  %v1340_v55 = vpop.f32.mrb[11].mxu1  ;;  %v632_v22 = vmul.f32 %v1645_v11, %v1645_v11  ;;  %v1656_v23 = vadd.f32 %v1613_v54, %v343_v49  ;;  %v530_v29 = vsel %vm522_vm4, %v1645_v11, 0.0 }
  0xef   :  { %v531_v39 = vadd.f32 %v530_v29, %v529_v32 }
  0xf0   :  { %v684_v34 = vsel %vm522_vm4, %v632_v22, 0.0  ;;  %v633_v36 = vmul.f32 %v1656_v23, %v1656_v23  ;;  %v532_v41 = vsel %vm522_vm4, %v1656_v23, 0.0 }
  0xf1   :  { %v685_v47 = vadd.f32 %v684_v34, %v683_v38 }
  0xf2   :  { %v686_v49 = vsel %vm522_vm4, %v633_v36, 0.0 }
  0xf3   :  { %v348_v57 = vpop.f32.mrb[12].mxu0  ;;  %v1626_v0 = vpop.f32.mrb[12].mxu1  ;;  %v687_v2 = vadd.f32 %v686_v49, %v685_v47 }
  0xf4   :  { %v1291_v60 = vpop.f32.mrb[13].mxu0  ;;  %v1343_v1 = vpop.f32.mrb[13].mxu1  ;;  %v1664_v30 = vadd.f32 %v1613_v54, %v348_v57 }
  0xf5   :  { %v351_v61 = vpop.f32.mrb[14].mxu0  ;;  %v1637_v6 = vpop.f32.mrb[14].mxu1  ;;  %v533_v60 = vadd.f32 %v532_v41, %v531_v39 }
  0xf6   :  { %v1292_v63 = vpop.f32.mrb[15].mxu0  ;;  %v1344_v7 = vpop.f32.mrb[15].mxu1  ;;  %v634_v42 = vmul.f32 %v1664_v30, %v1664_v30  ;;  %v1676_v44 = vadd.f32 %v1613_v54, %v351_v61  ;;  %v534_v50 = vsel %vm522_vm4, %v1664_v30, 0.0 }
  0xf7   :  { %v535_v3 = vadd.f32 %v534_v50, %v533_v60 }
  0xf8   :  { %v688_v63 = vsel %vm522_vm4, %v634_v42, 0.0  ;;  %v635_v61 = vmul.f32 %v1676_v44, %v1676_v44  ;;  %v536_v7 = vsel %vm522_vm4, %v1676_v44, 0.0 }
  0xf9   :  { %v689_v10 = vadd.f32 %v688_v63, %v687_v2 }
  0xfb   :  { %v356_v13 = vpop.f32.mrb[16].mxu0  ;;  %v1658_v25 = vpop.f32.mrb[16].mxu1 }
  0xfc   :  { %v1295_v17 = vpop.f32.mrb[17].mxu0  ;;  %v1347_v27 = vpop.f32.mrb[17].mxu1  ;;  %v1682_v52 = vadd.f32 %v1613_v54, %v356_v13  ;;  %v690_v13 = vsel %vm522_vm4, %v635_v61, 0.0 }
  0xfd   :  { %v359_v20 = vpop.f32.mrb[18].mxu0  ;;  %v1666_v31 = vpop.f32.mrb[18].mxu1  ;;  %v537_v17 = vadd.f32 %v536_v7, %v535_v3 }
  0xfe   :  { %v1296_v24 = vpop.f32.mrb[19].mxu0  ;;  %v1348_v33 = vpop.f32.mrb[19].mxu1  ;;  %v636_v8 = vmul.f32 %v1682_v52, %v1682_v52  ;;  %v1696_v9 = vadd.f32 %v1613_v54, %v359_v20  ;;  %v538_v14 = vsel %vm522_vm4, %v1682_v52, 0.0 }
  0xff   :  { %v691_v24 = vadd.f32 %v690_v13, %v689_v10  ;;  %v539_v26 = vadd.f32 %v538_v14, %v537_v17 }
 0x100   :  { %v692_v19 = vsel %vm522_vm4, %v636_v8, 0.0  ;;  %v637_v21 = vmul.f32 %v1696_v9, %v1696_v9  ;;  %v540_v28 = vsel %vm522_vm4, %v1696_v9, 0.0 }
 0x101   :  { %v693_v34 = vadd.f32 %v692_v19, %v691_v24  ;;  %v541_v41 = vadd.f32 %v540_v28, %v539_v26 }
 0x102   :  { %v694_v38 = vsel %vm522_vm4, %v637_v21, 0.0 }
 0x103   :  { %v364_v40 = vpop.f32.mrb[20].mxu0  ;;  %v1684_v57 = vpop.f32.mrb[20].mxu1  ;;  %v695_v49 = vadd.f32 %v694_v38, %v693_v34 }
 0x104   :  { %v1299_v46 = vpop.f32.mrb[21].mxu0  ;;  %v1351_v62 = vpop.f32.mrb[21].mxu1  ;;  %v1702_v15 = vadd.f32 %v1613_v54, %v364_v40 }
 0x105   :  { %v367_v48 = vpop.f32.mrb[22].mxu0  ;;  %v1689_v1 = vpop.f32.mrb[22].mxu1 }
 0x106   :  { %v1300_v55 = vpop.f32.mrb[23].mxu0  ;;  %v1352_v4 = vpop.f32.mrb[23].mxu1  ;;  %v638_v29 = vmul.f32 %v1702_v15, %v1702_v15  ;;  %v1714_v32 = vadd.f32 %v1613_v54, %v367_v48  ;;  %v542_v39 = vsel %vm522_vm4, %v1702_v15, 0.0 }
 0x107   :  { %v543_v50 = vadd.f32 %v542_v39, %v541_v41 }
 0x108   :  { %v696_v46 = vsel %vm522_vm4, %v638_v29, 0.0  ;;  %v639_v47 = vmul.f32 %v1714_v32, %v1714_v32  ;;  %v544_v60 = vsel %vm522_vm4, %v1714_v32, 0.0 }
 0x109   :  { %v697_v3 = vadd.f32 %v696_v46, %v695_v49  ;;  %v545_v13 = vadd.f32 %v544_v60, %v543_v50 }
 0x10a   :  { %v698_v7 = vsel %vm522_vm4, %v639_v47, 0.0 }
 0x10b   :  { %v372_v12 = vpop.f32.mrb[24].mxu0  ;;  %v1707_v22 = vpop.f32.mrb[24].mxu1 }
 0x10c   :  { %v1303_v16 = vpop.f32.mrb[25].mxu0  ;;  %v1355_v27 = vpop.f32.mrb[25].mxu1  ;;  %v1722_v40 = vadd.f32 %v1613_v54, %v372_v12 }
 0x10d   :  { %v375_v18 = vpop.f32.mrb[26].mxu0  ;;  %v1716_v33 = vpop.f32.mrb[26].mxu1 }
 0x10e   :  { %v1304_v20 = vpop.f32.mrb[27].mxu0  ;;  %v1356_v36 = vpop.f32.mrb[27].mxu1  ;;  %v640_v62 = vmul.f32 %v1722_v40, %v1722_v40  ;;  %v1732_v63 = vadd.f32 %v1613_v54, %v375_v18  ;;  %v546_v8 = vsel %vm522_vm4, %v1722_v40, 0.0  ;;  %v699_v18 = vadd.f32 %v698_v7, %v697_v3 }
 0x10f   :  { %v547_v19 = vadd.f32 %v546_v8, %v545_v13 }
 0x110   :  { %v700_v16 = vsel %vm522_vm4, %v640_v62, 0.0  ;;  %v641_v17 = vmul.f32 %v1732_v63, %v1732_v63  ;;  %v548_v20 = vsel %vm522_vm4, %v1732_v63, 0.0 }
 0x111   :  { %v701_v28 = vadd.f32 %v700_v16, %v699_v18 }
 0x112   :  { %v702_v34 = vsel %vm522_vm4, %v641_v17, 0.0 }
 0x113   :  { %v380_v42 = vpop.f32.mrb[28].mxu0  ;;  %v1734_v2 = vpop.f32.mrb[28].mxu1  ;;  %v703_v50 = vadd.f32 %v702_v34, %v701_v28 }
 0x114   :  { %v1307_v48 = vpop.f32.mrb[29].mxu0  ;;  %v1359_v4 = vpop.f32.mrb[29].mxu1  ;;  %v1740_v10 = vadd.f32 %v1613_v54, %v380_v42  ;;  %v549_v42 = vadd.f32 %v548_v20, %v547_v19 }
 0x115   :  { %v383_v55 = vpop.f32.mrb[30].mxu0  ;;  %v1742_v12 = vpop.f32.mrb[30].mxu1 }
 0x116   :  { %v1308_v61 = vpop.f32.mrb[31].mxu0  ;;  %v1360_v14 = vpop.f32.mrb[31].mxu1  ;;  %v642_v24 = vmul.f32 %v1740_v10, %v1740_v10  ;;  %v1752_v26 = vadd.f32 %v1613_v54, %v383_v55  ;;  %v550_v36 = vsel %vm522_vm4, %v1740_v10, 0.0 }
 0x117   :  { %v551_v55 = vadd.f32 %v550_v36, %v549_v42 }
 0x118   :  { %v704_v47 = vsel %vm522_vm4, %v642_v24, 0.0  ;;  %v643_v48 = vmul.f32 %v1752_v26, %v1752_v26  ;;  %v552_v62 = vsel %vm522_vm4, %v1752_v26, 0.0 }
 0x119   :  { %v705_v4 = vadd.f32 %v704_v47, %v703_v50  ;;  %v553_v17 = vadd.f32 %v552_v62, %v551_v55 }
 0x11a   :  { %v706_v8 = vsel %vm522_vm4, %v643_v48, 0.0 }
 0x11b   :  { %v388_v21 = vpop.f32.mrb[32].mxu0  ;;  %v1760_v41 = vpop.f32.mrb[32].mxu1 }
 0x11c   :  { %v1311_v27 = vpop.f32.mrb[33].mxu0  ;;  %v1758_v38 = vadd.f32 %v1613_v54, %v388_v21  ;;  %v1363_v46 = vpop.f32.mrb[33].mxu1 }
 0x11d   :  { %v391_v29 = vpop.f32.mrb[34].mxu0  ;;  %v1765_v49 = vpop.f32.mrb[34].mxu1  ;;  %v707_v27 = vadd.f32 %v706_v8, %v705_v4 }
 0x11e   :  { %v1312_v39 = vpop.f32.mrb[35].mxu0  ;;  %v1364_v60 = vpop.f32.mrb[35].mxu1  ;;  %v644_v61 = vmul.f32 %v1758_v38, %v1758_v38  ;;  %v1772_v3 = vadd.f32 %v1613_v54, %v391_v29  ;;  %v554_v13 = vsel %vm522_vm4, %v1758_v38, 0.0 }
 0x11f   :  { %v555_v28 = vadd.f32 %v554_v13, %v553_v17 }
 0x120   :  { %v708_v19 = vsel %vm522_vm4, %v644_v61, 0.0  ;;  %v645_v21 = vmul.f32 %v1772_v3, %v1772_v3  ;;  %v556_v34 = vsel %vm522_vm4, %v1772_v3, 0.0 }
 0x121   :  { %v709_v46 = vadd.f32 %v708_v19, %v707_v27  ;;  %v557_v55 = vadd.f32 %v556_v34, %v555_v28 }
 0x122   :  { %v710_v48 = vsel %vm522_vm4, %v645_v21, 0.0 }
 0x123   :  { %v396_v7 = vpop.f32.mrb[36].mxu0  ;;  %v1783_v24 = vpop.f32.mrb[36].mxu1  ;;  %v711_v8 = vadd.f32 %v710_v48, %v709_v46 }
 0x124   :  { %v1778_v14 = vadd.f32 %v1613_v54, %v396_v7  ;;  %v1315_v16 = vpop.f32.mrb[37].mxu0  ;;  %v1367_v29 = vpop.f32.mrb[37].mxu1 }
 0x125   :  { %v399_v18 = vpop.f32.mrb[38].mxu0  ;;  %v1792_v42 = vpop.f32.mrb[38].mxu1 }
 0x126   :  { %v1316_v20 = vpop.f32.mrb[39].mxu0  ;;  %v646_v36 = vmul.f32 %v1778_v14, %v1778_v14  ;;  %v1790_v39 = vadd.f32 %v1613_v54, %v399_v18  ;;  %v1368_v47 = vpop.f32.mrb[39].mxu1  ;;  %v558_v50 = vsel %vm522_vm4, %v1778_v14, 0.0 }
 0x127   :  { %v559_v13 = vadd.f32 %v558_v50, %v557_v55 }
 0x128   :  { %v712_v62 = vsel %vm522_vm4, %v646_v36, 0.0  ;;  %v647_v61 = vmul.f32 %v1790_v39, %v1790_v39  ;;  %v560_v17 = vsel %vm522_vm4, %v1790_v39, 0.0 }
 0x129   :  { %v713_v27 = vadd.f32 %v712_v62, %v711_v8  ;;  %v561_v46 = vadd.f32 %v560_v17, %v559_v13 }
 0x12a   :  { %v714_v29 = vsel %vm522_vm4, %v647_v61, 0.0 }
 0x12b   :  { %v404_v60 = vpop.f32.mrb[40].mxu0  ;;  %v1810_v20 = vpop.f32.mrb[40].mxu1  ;;  %v715_v55 = vadd.f32 %v714_v29, %v713_v27 }
 0x12c   :  { %v1801_v4 = vadd.f32 %v1613_v54, %v404_v60  ;;  %v1319_v7 = vpop.f32.mrb[41].mxu0  ;;  %v1371_v28 = vpop.f32.mrb[41].mxu1 }
 0x12d   :  { %v407_v16 = vpop.f32.mrb[42].mxu0  ;;  %v1815_v36 = vpop.f32.mrb[42].mxu1 }
 0x12e   :  { %v648_v18 = vmul.f32 %v1801_v4, %v1801_v4  ;;  %v1808_v19 = vadd.f32 %v1613_v54, %v407_v16  ;;  %v1320_v21 = vpop.f32.mrb[43].mxu0  ;;  %v562_v34 = vsel %vm522_vm4, %v1801_v4, 0.0  ;;  %v1372_v47 = vpop.f32.mrb[43].mxu1 }
 0x12f   :  { %v563_v60 = vadd.f32 %v562_v34, %v561_v46 }
 0x130   :  { %2946 = vst [vmem:[#allocation2_spill] sm:$0xff] %v1808_v19  ;;  %v716_v48 = vsel %vm522_vm4, %v648_v18, 0.0  ;;  %v649_v50 = vmul.f32 %v1808_v19, %v1808_v19  ;;  %v564_v62 = vsel %vm522_vm4, %v1808_v19, 0.0 }
 0x131   :  { %v717_v16 = vadd.f32 %v716_v48, %v715_v55  ;;  %v565_v34 = vadd.f32 %v564_v62, %v563_v60 }
 0x132   :  { %v718_v13 = vsel %vm522_vm4, %v649_v50, 0.0 }
 0x133   :  { %v412_v7 = vpop.f32.mrb[44].mxu0  ;;  %v1833_v29 = vpop.f32.mrb[44].mxu1  ;;  %v719_v55 = vadd.f32 %v718_v13, %v717_v16  ;;  %v1850_v16 = vadd.f32 %v1613_v54, %v1600_v37 }
 0x134   :  { %v1823_v61 = vadd.f32 %v1613_v54, %v412_v7  ;;  %v1323_v8 = vpop.f32.mrb[45].mxu0  ;;  %v1375_v46 = vpop.f32.mrb[45].mxu1 }
 0x135   :  { %v415_v21 = vpop.f32.mrb[46].mxu0  ;;  %v519_v50 = vpop.f32.mrb[46].mxu1 }
 0x136   :  { %2947 = vst [vmem:[#allocation3_spill] sm:$0xff] %v1823_v61  ;;  %v566_v17 = vsel %vm522_vm4, %v1823_v61, 0.0  ;;  %v650_v18 = vmul.f32 %v1823_v61, %v1823_v61  ;;  %v1831_v27 = vadd.f32 %v1613_v54, %v415_v21  ;;  %v1324_v28 = vpop.f32.mrb[47].mxu0  ;;  %v1376_v8 = vpop.f32.mrb[47].mxu1  ;;  %v1842_v21 = vadd.f32 %v1613_v54, %v1598_v35 }
 0x137   :  { %v567_v7 = vadd.f32 %v566_v17, %v565_v34 }
 0x138   :  { %v720_v47 = vsel %vm522_vm4, %v650_v18, 0.0  ;;  %v651_v48 = vmul.f32 %v1831_v27, %v1831_v27  ;;  %v568_v61 = vsel %vm522_vm4, %v1831_v27, 0.0 }
 0x139   :  { %v721_v28 = vadd.f32 %v720_v47, %v719_v55  ;;  %v569_v46 = vadd.f32 %v568_v61, %v567_v7 }
 0x13a   :  { %v722_v60 = vsel %vm522_vm4, %v651_v48, 0.0  ;;  %v1863_v48 = vadd.f32 %v1613_v54, %v1602_v43  ;;  %v1876_v43 = vadd.f32 %v1613_v54, %v1604_v45 }
 0x13b   :  { %v420_v19 = vpop.f32.mrb[48].mxu0  ;;  %v723_v47 = vadd.f32 %v722_v60, %v721_v28  ;;  %v655_v28 = vmul.f32 %v1850_v16, %v1850_v16 }
 0x13c   :  { %v1846_v62 = vadd.f32 %v1613_v54, %v420_v19  ;;  %v1327_v18 = vpop.f32.mrb[49].mxu0  ;;  %v654_v19 = vmul.f32 %v1842_v21, %v1842_v21 }
 0x13d   :  { %v423_v50 = vpop.f32.mrb[50].mxu0  ;;  %v730_v45 = vsel %vm522_vm4, %v655_v28, 0.0 }
 0x13e   :  { %v570_v13 = vsel %vm522_vm4, %v1846_v62, 0.0  ;;  %v652_v35 = vmul.f32 %v1846_v62, %v1846_v62  ;;  %v1857_v17 = vadd.f32 %v1613_v54, %v423_v50  ;;  %v1328_v34 = vpop.f32.mrb[51].mxu0  ;;  %v574_v50 = vsel %vm522_vm4, %v1842_v21, 0.0 }
 0x13f   :  { %v571_v61 = vadd.f32 %v570_v13, %v569_v46  ;;  %v576_v34 = vsel %vm522_vm4, %v1850_v16, 0.0 }
 0x140   :  { %v724_v37 = vsel %vm522_vm4, %v652_v35, 0.0  ;;  %v572_v55 = vsel %vm522_vm4, %v1857_v17, 0.0  ;;  %v653_v7 = vmul.f32 %v1857_v17, %v1857_v17  ;;  %v728_v35 = vsel %vm522_vm4, %v654_v19, 0.0 }
 0x141   :  { %v725_v8 = vadd.f32 %v724_v37, %v723_v47  ;;  %v573_v18 = vadd.f32 %v572_v55, %v571_v61  ;;  %v656_v47 = vmul.f32 %v1863_v48, %v1863_v48  ;;  %v1886_v61 = vadd.f32 %v1613_v54, %v1606_v51 }
 0x142   :  { %v726_v60 = vsel %vm522_vm4, %v653_v7, 0.0  ;;  %v578_v7 = vsel %vm522_vm4, %v1863_v48, 0.0  ;;  %v657_v19 = vmul.f32 %v1876_v43, %v1876_v43  ;;  %v580_v51 = vsel %vm522_vm4, %v1876_v43, 0.0 }
 0x143   :  { %v575_v46 = vadd.f32 %v574_v50, %v573_v18  ;;  %v727_v13 = vadd.f32 %v726_v60, %v725_v8  ;;  %v1895_v8 = vadd.f32 %v1613_v54, %v1608_v53  ;;  %v732_v60 = vsel %vm522_vm4, %v656_v47, 0.0 }
 0x144   :  { %v658_v28 = vmul.f32 %v1886_v61, %v1886_v61  ;;  %v582_v53 = vsel %vm522_vm4, %v1886_v61, 0.0 }
 0x145   :  { %v577_v37 = vadd.f32 %v576_v34, %v575_v46  ;;  %v729_v55 = vadd.f32 %v728_v35, %v727_v13  ;;  %v1904_v46 = vadd.f32 %v1613_v54, %v1626_v0  ;;  %v734_v34 = vsel %vm522_vm4, %v657_v19, 0.0 }
 0x146   :  { %v659_v47 = vmul.f32 %v1895_v8, %v1895_v8  ;;  %v584_v0 = vsel %vm522_vm4, %v1895_v8, 0.0 }
 0x147   :  { %v579_v18 = vadd.f32 %v578_v7, %v577_v37  ;;  %v731_v50 = vadd.f32 %v730_v45, %v729_v55  ;;  %v1913_v37 = vadd.f32 %v1613_v54, %v1637_v6  ;;  %v736_v7 = vsel %vm522_vm4, %v658_v28, 0.0 }
 0x148   :  { %v660_v19 = vmul.f32 %v1904_v46, %v1904_v46  ;;  %v586_v6 = vsel %vm522_vm4, %v1904_v46, 0.0 }
 0x149   :  { %v581_v13 = vadd.f32 %v580_v51, %v579_v18  ;;  %v733_v35 = vadd.f32 %v732_v60, %v731_v50  ;;  %v1922_v18 = vadd.f32 %v1613_v54, %v1658_v25  ;;  %v738_v51 = vsel %vm522_vm4, %v659_v47, 0.0 }
 0x14a   :  { %v661_v28 = vmul.f32 %v1913_v37, %v1913_v37  ;;  %v588_v25 = vsel %vm522_vm4, %v1913_v37, 0.0 }
 0x14b   :  { %v583_v55 = vadd.f32 %v582_v53, %v581_v13  ;;  %v735_v45 = vadd.f32 %v734_v34, %v733_v35  ;;  %v1931_v13 = vadd.f32 %v1613_v54, %v1666_v31  ;;  %v740_v53 = vsel %vm522_vm4, %v660_v19, 0.0 }
 0x14c   :  { %v662_v47 = vmul.f32 %v1922_v18, %v1922_v18  ;;  %v590_v31 = vsel %vm522_vm4, %v1922_v18, 0.0 }
 0x14d   :  { %v585_v50 = vadd.f32 %v584_v0, %v583_v55  ;;  %v737_v60 = vadd.f32 %v736_v7, %v735_v45  ;;  %2948 = vst [vmem:[#allocation4_spill] sm:$0xff] %v1931_v13  ;;  %v1940_v55 = vadd.f32 %v1613_v54, %v1684_v57  ;;  %v742_v0 = vsel %vm522_vm4, %v661_v28, 0.0 }
 0x14e   :  { %v663_v19 = vmul.f32 %v1931_v13, %v1931_v13  ;;  %v592_v57 = vsel %vm522_vm4, %v1931_v13, 0.0 }
 0x14f   :  { %v739_v35 = vadd.f32 %v738_v51, %v737_v60  ;;  %v587_v34 = vadd.f32 %v586_v6, %v585_v50  ;;  %2949 = vst [vmem:[#allocation5_spill] sm:$0xff] %v1940_v55  ;;  %v1949_v50 = vadd.f32 %v1613_v54, %v1689_v1  ;;  %v744_v6 = vsel %vm522_vm4, %v662_v47, 0.0 }
 0x150   :  { %v664_v28 = vmul.f32 %v1940_v55, %v1940_v55  ;;  %v594_v1 = vsel %vm522_vm4, %v1940_v55, 0.0 }
 0x151   :  { %v589_v45 = vadd.f32 %v588_v25, %v587_v34  ;;  %v741_v7 = vadd.f32 %v740_v53, %v739_v35  ;;  %2950 = vst [vmem:[#allocation6_spill] sm:$0xff] %v1949_v50  ;;  %v1958_v35 = vadd.f32 %v1613_v54, %v1707_v22  ;;  %v746_v25 = vsel %vm522_vm4, %v663_v19, 0.0 }
 0x152   :  { %v665_v47 = vmul.f32 %v1949_v50, %v1949_v50  ;;  %v596_v22 = vsel %vm522_vm4, %v1949_v50, 0.0 }
 0x153   :  { %v591_v60 = vadd.f32 %v590_v31, %v589_v45  ;;  %v743_v51 = vadd.f32 %v742_v0, %v741_v7  ;;  %2951 = vst [vmem:[#allocation7_spill] sm:$0xff] %v1958_v35  ;;  %v1967_v45 = vadd.f32 %v1613_v54, %v1716_v33  ;;  %v748_v31 = vsel %vm522_vm4, %v664_v28, 0.0 }
 0x154   :  { %v666_v19 = vmul.f32 %v1958_v35, %v1958_v35  ;;  %v598_v33 = vsel %vm522_vm4, %v1958_v35, 0.0 }
 0x155   :  { %v593_v34 = vadd.f32 %v592_v57, %v591_v60  ;;  %v745_v53 = vadd.f32 %v744_v6, %v743_v51  ;;  %2952 = vst [vmem:[#allocation8_spill] sm:$0xff] %v1967_v45  ;;  %v1976_v60 = vadd.f32 %v1613_v54, %v1734_v2  ;;  %v750_v57 = vsel %vm522_vm4, %v665_v47, 0.0 }
 0x156   :  { %v667_v28 = vmul.f32 %v1967_v45, %v1967_v45  ;;  %v600_v2 = vsel %vm522_vm4, %v1967_v45, 0.0 }
 0x157   :  { %v595_v7 = vadd.f32 %v594_v1, %v593_v34  ;;  %v747_v0 = vadd.f32 %v746_v25, %v745_v53  ;;  %2953 = vst [vmem:[#allocation9_spill] sm:$0xff] %v1976_v60  ;;  %v1985_v34 = vadd.f32 %v1613_v54, %v1742_v12  ;;  %v752_v1 = vsel %vm522_vm4, %v666_v19, 0.0 }
 0x158   :  { %v668_v47 = vmul.f32 %v1976_v60, %v1976_v60  ;;  %v1998_v12 = vadd.f32 %v1613_v54, %v1765_v49  ;;  %v602_v19 = vsel %vm522_vm4, %v1976_v60, 0.0  ;;  %v2012_v49 = vadd.f32 %v1613_v54, %v1783_v24 }
 0x159   :  { %v597_v51 = vadd.f32 %v596_v22, %v595_v7  ;;  %v749_v6 = vadd.f32 %v748_v31, %v747_v0  ;;  %2954 = vst [vmem:[#allocation10_spill] sm:$0xff] %v1985_v34  ;;  %v1994_v7 = vadd.f32 %v1613_v54, %v1760_v41  ;;  %v754_v22 = vsel %vm522_vm4, %v667_v28, 0.0 }
 0x15a   :  { %2956 = vst [vmem:[#allocation12_spill] sm:$0xff] %v1998_v12  ;;  %v604_v41 = vsel %vm522_vm4, %v1985_v34, 0.0  ;;  %2957 = vst [vmem:[#allocation13_spill] sm:$0xff] %v2012_v49  ;;  %v608_v24 = vsel %vm522_vm4, %v1998_v12, 0.0 }
 0x15b   :  { %v599_v53 = vadd.f32 %v598_v33, %v597_v51  ;;  %v751_v25 = vadd.f32 %v750_v57, %v749_v6  ;;  %2955 = vst [vmem:[#allocation11_spill] sm:$0xff] %v1994_v7  ;;  %v669_v51 = vmul.f32 %v1985_v34, %v1985_v34  ;;  %v756_v33 = vsel %vm522_vm4, %v668_v47, 0.0 }
 0x15c   :  { %v606_v47 = vsel %vm522_vm4, %v1994_v7, 0.0 }
 0x15d   :  { %v753_v0 = vadd.f32 %v752_v1, %v751_v25  ;;  %v601_v31 = vadd.f32 %v600_v2, %v599_v53  ;;  %v670_v53 = vmul.f32 %v1994_v7, %v1994_v7  ;;  %v671_v1 = vmul.f32 %v1998_v12, %v1998_v12 }
 0x15e   :  { %v758_v2 = vsel %vm522_vm4, %v669_v51, 0.0  ;;  %v2030_v51 = vadd.f32 %v1613_v54, %v1810_v20 }
 0x15f   :  { %v755_v6 = vadd.f32 %v754_v22, %v753_v0  ;;  %v603_v57 = vadd.f32 %v602_v19, %v601_v31  ;;  %v2021_v0 = vadd.f32 %v1613_v54, %v1792_v42  ;;  %v760_v19 = vsel %vm522_vm4, %v670_v53, 0.0 }
 0x160   :  { %2959 = vst [vmem:[#allocation15_spill] sm:$0xff] %v2030_v51  ;;  %v610_v42 = vsel %vm522_vm4, %v2012_v49, 0.0 }
 0x161   :  { %v757_v28 = vadd.f32 %v756_v33, %v755_v6  ;;  %v605_v25 = vadd.f32 %v604_v41, %v603_v57  ;;  %2958 = vst [vmem:[#allocation14_spill] sm:$0xff] %v2021_v0  ;;  %v672_v6 = vmul.f32 %v2012_v49, %v2012_v49  ;;  %v762_v41 = vsel %vm522_vm4, %v671_v1, 0.0 }
 0x162   :  { %v673_v53 = vmul.f32 %v2021_v0, %v2021_v0  ;;  %v612_v1 = vsel %vm522_vm4, %v2021_v0, 0.0 }
 0x163   :  { %v759_v31 = vadd.f32 %v758_v2, %v757_v28  ;;  %v607_v22 = vadd.f32 %v606_v47, %v605_v25  ;;  %v2039_v28 = vadd.f32 %v1613_v54, %v1815_v36  ;;  %v2043_v25 = vadd.f32 %v1613_v54, %v1833_v29 }
 0x164   :  { %v764_v47 = vsel %vm522_vm4, %v672_v6, 0.0  ;;  %v614_v36 = vsel %vm522_vm4, %v2030_v51, 0.0 }
 0x165   :  { %v761_v57 = vadd.f32 %v760_v19, %v759_v31  ;;  %v609_v33 = vadd.f32 %v608_v24, %v607_v22  ;;  %2960 = vst [vmem:[#allocation16_spill] sm:$0xff] %v2039_v28  ;;  %2961 = vst [vmem:[#allocation17_spill] sm:$0xff] %v2043_v25  ;;  %v674_v31 = vmul.f32 %v2030_v51, %v2030_v51  ;;  %v766_v24 = vsel %vm522_vm4, %v673_v53, 0.0 }
 0x166   :  { %v675_v54 = vmul.f32 %v2039_v28, %v2039_v28  ;;  %v676_v29 = vmul.f32 %v2043_v25, %v2043_v25 }
 0x167   :  { %v763_v20 = vadd.f32 %v762_v41, %v761_v57  ;;  %v611_v2 = vadd.f32 %v610_v42, %v609_v33  ;;  %v768_v33 = vsel %vm522_vm4, %v674_v31, 0.0  ;;  %v616_v41 = vsel %vm522_vm4, %v2039_v28, 0.0 }
 0x168   :  { %v618_v42 = vsel %vm522_vm4, %v2043_v25, 0.0 }
 0x169   :  { %v765_v22 = vadd.f32 %v764_v47, %v763_v20  ;;  %v613_v19 = vadd.f32 %v612_v1, %v611_v2  ;;  %v770_v2 = vsel %vm522_vm4, %v675_v54, 0.0  ;;  %v772_v47 = vsel %vm522_vm4, %v676_v29, 0.0 }
 0x16b   :  { %v767_v6 = vadd.f32 %v766_v24, %v765_v22  ;;  %v615_v57 = vadd.f32 %v614_v36, %v613_v19 }
 0x16d   :  { %v769_v53 = vadd.f32 %v768_v33, %v767_v6  ;;  %v617_v20 = vadd.f32 %v616_v41, %v615_v57 }
 0x16f   :  { %v771_v1 = vadd.f32 %v770_v2, %v769_v53  ;;  %v619_v7 = vadd.f32 %v618_v42, %v617_v20 }
 0x171   :  { %v620_v34 = vrot.slane %v619_v7, 4  ;;  %v773_v60 = vadd.f32 %v772_v47, %v771_v1 }
 0x173   :  { %v621_v22 = vadd.f32 %v620_v34, %v619_v7  ;;  %v774_v19 = vrot.slane %v773_v60, 4 }
 0x175   :  { %v622_v24 = vrot.slane %v621_v22, 2  ;;  %v775_v31 = vadd.f32 %v774_v19, %v773_v60 }
 0x177   :  { %v623_v36 = vadd.f32 %v622_v24, %v621_v22  ;;  %v776_v45 = vrot.slane %v775_v31, 2 }
 0x179   :  { %v624_v35 = vrot.slane %v623_v36, 1  ;;  %v777_v50 = vadd.f32 %v776_v45, %v775_v31 }
 0x17b   :  { %v625_v55 = vadd.f32 %v624_v35, %v623_v36  ;;  %v778_v13 = vrot.slane %v777_v50, 1 }
 0x17d   :  { %v2064_v6 = vmul.f32 0.0025510204, %v625_v55  ;;  %v779_v57 = vadd.f32 %v778_v13, %v777_v50 }
 0x17f   :  { %2962 = vst [vmem:[#allocation18_spill] sm:$0xff] %v2064_v6  ;;  %v780_v54 = vmul.f32 0.0025510204, %v779_v57  ;;  %v781_v29 = vmul.f32 %v2064_v6, %v2064_v6  ;;  %v783_v45 = vsub.f32 %v1619_v58, %v2064_v6  ;;  %v784_v41 = vsub.f32 %v1616_v56, %v2064_v6 }
 0x180   :  { %v785_v42 = vsub.f32 %v1622_v59, %v2064_v6  ;;  %v786_v53 = vsub.f32 %v1635_v5, %v2064_v6  ;;  %v787_v20 = vsub.f32 %v1645_v11, %v2064_v6  ;;  %v788_v2 = vsub.f32 %v1656_v23, %v2064_v6 }
 0x181   :  { %v782_v33 = vsub.f32 %v780_v54, %v781_v29  ;;  %v789_v47 = vsub.f32 %v1664_v30, %v2064_v6  ;;  %v790_v58 = vsub.f32 %v1676_v44, %v2064_v6  ;;  %v791_v56 = vsub.f32 %v1682_v52, %v2064_v6 }
 0x182   :  { %v792_v59 = vsub.f32 %v1696_v9, %v2064_v6  ;;  %v793_v5 = vsub.f32 %v1702_v15, %v2064_v6  ;;  %v794_v11 = vsub.f32 %v1714_v32, %v2064_v6  ;;  %v795_v23 = vsub.f32 %v1722_v40, %v2064_v6 }
 0x183   :  { %v832_v50 = vadd.f32 1e-05, %v782_v33  ;;  %v796_v30 = vsub.f32 %v1732_v63, %v2064_v6  ;;  %v797_v44 = vsub.f32 %v1740_v10, %v2064_v6  ;;  %v798_v52 = vsub.f32 %v1752_v26, %v2064_v6  ;;  %v2963_v10 = vld [vmem:[#allocation2_spill] sm:$0xff]  ;;  %v2964_v26 = vld [vmem:[#allocation3_spill] sm:$0xff] }
 0x184   :  { %v799_v9 = vsub.f32 %v1758_v38, %v2064_v6  ;;  %v800_v15 = vsub.f32 %v1772_v3, %v2064_v6  ;;  %v801_v32 = vsub.f32 %v1778_v14, %v2064_v6  ;;  %v802_v40 = vsub.f32 %v1790_v39, %v2064_v6 }
 0x185   :  { %1408 = vrsqrt.f32 %v832_v50  ;;  %v803_v63 = vsub.f32 %v1801_v4, %v2064_v6  ;;  %v804_v1 = vsub.f32 %v2963_v10, %v2064_v6  ;;  %v805_v22 = vsub.f32 %v2964_v26, %v2064_v6  ;;  %v2972_v26 = vld [vmem:[#allocation11_spill] sm:$0xff] }
 0x186   :  { %v806_v38 = vsub.f32 %v1831_v27, %v2064_v6  ;;  %v807_v3 = vsub.f32 %v1846_v62, %v2064_v6  ;;  %v808_v14 = vsub.f32 %v1857_v17, %v2064_v6  ;;  %v809_v39 = vsub.f32 %v1842_v21, %v2064_v6 }
 0x187   :  { %v810_v4 = vsub.f32 %v1850_v16, %v2064_v6  ;;  %v811_v19 = vsub.f32 %v1863_v48, %v2064_v6  ;;  %v812_v24 = vsub.f32 %v1876_v43, %v2064_v6  ;;  %v813_v27 = vsub.f32 %v1886_v61, %v2064_v6  ;;  %v2965_v48 = vld [vmem:[#allocation4_spill] sm:$0xff]  ;;  %v2966_v43 = vld [vmem:[#allocation5_spill] sm:$0xff]  ;;  %v2967_v61 = vld [vmem:[#allocation6_spill] sm:$0xff] }
 0x188   :  { %v814_v62 = vsub.f32 %v1895_v8, %v2064_v6  ;;  %v815_v17 = vsub.f32 %v1904_v46, %v2064_v6  ;;  %v816_v21 = vsub.f32 %v1913_v37, %v2064_v6  ;;  %v817_v16 = vsub.f32 %v1922_v18, %v2064_v6  ;;  %v2968_v8 = vld [vmem:[#allocation7_spill] sm:$0xff]  ;;  %v2969_v46 = vld [vmem:[#allocation8_spill] sm:$0xff]  ;;  %v2970_v37 = vld [vmem:[#allocation9_spill] sm:$0xff] }
 0x189   :  { %v818_v31 = vsub.f32 %v2965_v48, %v2064_v6  ;;  %v819_v36 = vsub.f32 %v2966_v43, %v2064_v6  ;;  %v820_v57 = vsub.f32 %v2967_v61, %v2064_v6  ;;  %v821_v54 = vsub.f32 %v2968_v8, %v2064_v6  ;;  %v2971_v18 = vld [vmem:[#allocation10_spill] sm:$0xff] }
 0x18a   :  { %v822_v33 = vsub.f32 %v2969_v46, %v2064_v6  ;;  %v823_v50 = vsub.f32 %v2970_v37, %v2064_v6  ;;  %v824_v10 = vsub.f32 %v2971_v18, %v2064_v6  ;;  %v825_v48 = vsub.f32 %v2972_v26, %v2064_v6 }
 0x18f   :  { %v1409_v29 = vpop.eup %1408 }
 0x190   :  { %v834_v43 = vmul.f32 %v1409_v29, %v783_v45  ;;  %v835_v55 = vmul.f32 %v1409_v29, %v784_v41  ;;  %v836_v13 = vmul.f32 %v1409_v29, %v785_v42  ;;  %v837_v61 = vmul.f32 %v1409_v29, %v786_v53 }
 0x191   :  { %v838_v35 = vmul.f32 %v1409_v29, %v787_v20  ;;  %v839_v7 = vmul.f32 %v1409_v29, %v788_v2  ;;  %v840_v8 = vmul.f32 %v1409_v29, %v789_v47  ;;  %v841_v60 = vmul.f32 %v1409_v29, %v790_v58 }
 0x192   :  { %v842_v34 = vmul.f32 %v1409_v29, %v791_v56  ;;  %v843_v25 = vmul.f32 %v1409_v29, %v792_v59  ;;  %v844_v46 = vmul.f32 %v1409_v29, %v793_v5  ;;  %v845_v28 = vmul.f32 %v1409_v29, %v794_v11 }
 0x193   :  { %v846_v51 = vmul.f32 %v1409_v29, %v795_v23  ;;  %v847_v37 = vmul.f32 %v1409_v29, %v796_v30  ;;  %v848_v0 = vmul.f32 %v1409_v29, %v797_v44  ;;  %v849_v49 = vmul.f32 %v1409_v29, %v798_v52 }
 0x194   :  { %v850_v18 = vmul.f32 %v1409_v29, %v799_v9  ;;  %v851_v12 = vmul.f32 %v1409_v29, %v800_v15  ;;  %v852_v6 = vmul.f32 %v1409_v29, %v801_v32  ;;  %v853_v26 = vmul.f32 %v1409_v29, %v802_v40 }
 0x195   :  { %v854_v45 = vmul.f32 %v1409_v29, %v803_v63  ;;  %v855_v41 = vmul.f32 %v1409_v29, %v804_v1  ;;  %v856_v42 = vmul.f32 %v1409_v29, %v805_v22  ;;  %v857_v53 = vmul.f32 %v1409_v29, %v806_v38  ;;  %v2973_v38 = vld [vmem:[#allocation12_spill] sm:$0xff] }
 0x196   :  { %v858_v20 = vmul.f32 %v1409_v29, %v807_v3  ;;  %v859_v2 = vmul.f32 %v1409_v29, %v808_v14  ;;  %v860_v47 = vmul.f32 %v1409_v29, %v809_v39  ;;  %v861_v58 = vmul.f32 %v1409_v29, %v810_v4  ;;  %v2974_v3 = vld [vmem:[#allocation18_spill] sm:$0xff]  ;;  %v2976_v4 = vld [vmem:[#allocation13_spill] sm:$0xff] }
 0x197   :  { %v862_v56 = vmul.f32 %v1409_v29, %v811_v19  ;;  %v863_v59 = vmul.f32 %v1409_v29, %v812_v24  ;;  %v864_v5 = vmul.f32 %v1409_v29, %v813_v27  ;;  %v865_v11 = vmul.f32 %v1409_v29, %v814_v62  ;;  %v2978_v27 = vld [vmem:[#allocation14_spill] sm:$0xff] }
 0x198   :  { %v866_v23 = vmul.f32 %v1409_v29, %v815_v17  ;;  %v867_v30 = vmul.f32 %v1409_v29, %v816_v21  ;;  %v868_v44 = vmul.f32 %v1409_v29, %v817_v16  ;;  %v869_v52 = vmul.f32 %v1409_v29, %v818_v31  ;;  %v2980_v21 = vld [vmem:[#allocation15_spill] sm:$0xff] }
 0x199   :  { %v870_v9 = vmul.f32 %v1409_v29, %v819_v36  ;;  %v871_v15 = vmul.f32 %v1409_v29, %v820_v57  ;;  %v872_v32 = vmul.f32 %v1409_v29, %v821_v54  ;;  %v873_v40 = vmul.f32 %v1409_v29, %v822_v33  ;;  %v2982_v36 = vld [vmem:[#allocation16_spill] sm:$0xff]  ;;  %v2984_v33 = vld [vmem:[#allocation17_spill] sm:$0xff] }
 0x19a   :  { %v874_v63 = vmul.f32 %v1409_v29, %v823_v50  ;;  %v875_v1 = vmul.f32 %v1409_v29, %v824_v10  ;;  %v876_v22 = vmul.f32 %v1409_v29, %v825_v48  ;;  %v2975_v14 = vsub.f32 %v2973_v38, %v2974_v3  ;;  %v1247_v48 = vld [vmem:[%s2903_s3] ss:$0 sm:$0xff] }
 0x19b   :  { %v2977_v19 = vsub.f32 %v2976_v4, %v2974_v3  ;;  %v2979_v62 = vsub.f32 %v2978_v27, %v2974_v3  ;;  %v2981_v16 = vsub.f32 %v2980_v21, %v2974_v3  ;;  %v2983_v57 = vsub.f32 %v2982_v36, %v2974_v3 }
 0x19c   :  { %v877_v39 = vmul.f32 %v1409_v29, %v2975_v14  ;;  %v2985_v50 = vsub.f32 %v2984_v33, %v2974_v3  ;;  %v890_v38 = vmul.f32 %v1247_v48, %v834_v43  ;;  %v891_v14 = vmul.f32 %v1247_v48, %v835_v55 }
 0x19d   :  { %v878_v24 = vmul.f32 %v1409_v29, %v2977_v19  ;;  %v879_v17 = vmul.f32 %v1409_v29, %v2979_v62  ;;  %v880_v31 = vmul.f32 %v1409_v29, %v2981_v16  ;;  %v881_v54 = vmul.f32 %v1409_v29, %v2983_v57 }
 0x19e   :  { %v882_v10 = vmul.f32 %v1409_v29, %v2985_v50  ;;  %v892_v4 = vmul.f32 %v1247_v48, %v836_v13  ;;  %v893_v19 = vmul.f32 %v1247_v48, %v837_v61  ;;  %v894_v27 = vmul.f32 %v1247_v48, %v838_v35 }
 0x19f   :  { %v895_v62 = vmul.f32 %v1247_v48, %v839_v7  ;;  %v896_v21 = vmul.f32 %v1247_v48, %v840_v8  ;;  %v897_v16 = vmul.f32 %v1247_v48, %v841_v60  ;;  %v898_v36 = vmul.f32 %v1247_v48, %v842_v34 }
 0x1a0   :  { %v899_v57 = vmul.f32 %v1247_v48, %v843_v25  ;;  %v900_v3 = vmul.f32 %v1247_v48, %v844_v46  ;;  %v901_v33 = vmul.f32 %v1247_v48, %v845_v28  ;;  %v902_v29 = vmul.f32 %v1247_v48, %v846_v51 }
 0x1a1   :  { %v903_v50 = vmul.f32 %v1247_v48, %v847_v37  ;;  %v904_v43 = vmul.f32 %v1247_v48, %v848_v0  ;;  %v905_v55 = vmul.f32 %v1247_v48, %v849_v49  ;;  %v906_v13 = vmul.f32 %v1247_v48, %v850_v18 }
 0x1a2   :  { %v907_v61 = vmul.f32 %v1247_v48, %v851_v12  ;;  %v908_v35 = vmul.f32 %v1247_v48, %v852_v6  ;;  %v909_v7 = vmul.f32 %v1247_v48, %v853_v26  ;;  %v910_v8 = vmul.f32 %v1247_v48, %v854_v45 }
 0x1a3   :  { %v911_v60 = vmul.f32 %v1247_v48, %v855_v41  ;;  %v912_v34 = vmul.f32 %v1247_v48, %v856_v42  ;;  %v913_v25 = vmul.f32 %v1247_v48, %v857_v53  ;;  %v914_v46 = vmul.f32 %v1247_v48, %v858_v20 }
 0x1a4   :  { %v915_v28 = vmul.f32 %v1247_v48, %v859_v2  ;;  %v916_v51 = vmul.f32 %v1247_v48, %v860_v47  ;;  %v917_v37 = vmul.f32 %v1247_v48, %v861_v58  ;;  %v918_v0 = vmul.f32 %v1247_v48, %v862_v56  ;;  %v2190_v58 = vld [vmem:[%s2904_s4] ss:$0 sm:$0xff] }
 0x1a5   :  { %v919_v49 = vmul.f32 %v1247_v48, %v863_v59  ;;  %v920_v18 = vmul.f32 %v1247_v48, %v864_v5  ;;  %v921_v12 = vmul.f32 %v1247_v48, %v865_v11  ;;  %v922_v6 = vmul.f32 %v1247_v48, %v866_v23 }
 0x1a6   :  { %v923_v26 = vmul.f32 %v1247_v48, %v867_v30  ;;  %v924_v45 = vmul.f32 %v1247_v48, %v868_v44  ;;  %v925_v41 = vmul.f32 %v1247_v48, %v869_v52  ;;  %v926_v42 = vmul.f32 %v1247_v48, %v870_v9 }
 0x1a7   :  { %v927_v53 = vmul.f32 %v1247_v48, %v871_v15  ;;  %v928_v20 = vmul.f32 %v1247_v48, %v872_v32  ;;  %v929_v2 = vmul.f32 %v1247_v48, %v873_v40  ;;  %v930_v47 = vmul.f32 %v1247_v48, %v874_v63 }
 0x1a8   :  { %v931_v56 = vmul.f32 %v1247_v48, %v875_v1  ;;  %v932_v59 = vmul.f32 %v1247_v48, %v876_v22  ;;  %v933_v5 = vmul.f32 %v1247_v48, %v877_v39  ;;  %v934_v11 = vmul.f32 %v1247_v48, %v878_v24 }
 0x1a9   :  { %v935_v23 = vmul.f32 %v1247_v48, %v879_v17  ;;  %v936_v30 = vmul.f32 %v1247_v48, %v880_v31  ;;  %v937_v44 = vmul.f32 %v1247_v48, %v881_v54  ;;  %v2192_v52 = vmul.f32 %v1247_v48, %v882_v10 }
 0x1aa   :  { %v2195_v9 = vadd.f32 %v2190_v58, %v890_v38  ;;  %v2198_v15 = vadd.f32 %v2190_v58, %v891_v14  ;;  %v2201_v32 = vadd.f32 %v2190_v58, %v892_v4  ;;  %v2204_v40 = vadd.f32 %v2190_v58, %v893_v19 }
 0x1ab   :  { %v2207_v63 = vadd.f32 %v2190_v58, %v894_v27  ;;  %v2210_v1 = vadd.f32 %v2190_v58, %v895_v62  ;;  %v2213_v22 = vadd.f32 %v2190_v58, %v896_v21  ;;  %v2216_v39 = vadd.f32 %v2190_v58, %v897_v16 }
 0x1ac   :  { %v2219_v24 = vadd.f32 %v2190_v58, %v898_v36  ;;  %v2222_v17 = vadd.f32 %v2190_v58, %v899_v57  ;;  %v2225_v31 = vadd.f32 %v2190_v58, %v900_v3  ;;  %v2228_v54 = vadd.f32 %v2190_v58, %v901_v33 }
 0x1ad   :  { %v2231_v10 = vadd.f32 %v2190_v58, %v902_v29  ;;  %v2234_v48 = vadd.f32 %v2190_v58, %v903_v50  ;;  %v2237_v38 = vadd.f32 %v2190_v58, %v904_v43  ;;  %v2240_v14 = vadd.f32 %v2190_v58, %v905_v55 }
 0x1ae   :  { %v2243_v4 = vadd.f32 %v2190_v58, %v906_v13  ;;  %v2246_v19 = vadd.f32 %v2190_v58, %v907_v61  ;;  %v2249_v27 = vadd.f32 %v2190_v58, %v908_v35  ;;  %v2252_v62 = vadd.f32 %v2190_v58, %v909_v7 }
 0x1af   :  { %v2255_v21 = vadd.f32 %v2190_v58, %v910_v8  ;;  %v2258_v16 = vadd.f32 %v2190_v58, %v911_v60  ;;  %v2261_v36 = vadd.f32 %v2190_v58, %v912_v34  ;;  %v2264_v57 = vadd.f32 %v2190_v58, %v913_v25 }
 0x1b0   :  { %v2267_v3 = vadd.f32 %v2190_v58, %v914_v46  ;;  %v2270_v33 = vadd.f32 %v2190_v58, %v915_v28  ;;  %v2273_v29 = vadd.f32 %v2190_v58, %v916_v51  ;;  %v2276_v50 = vadd.f32 %v2190_v58, %v917_v37 }
 0x1b1   :  { %2986 = vst [vmem:[#allocation2_spill] sm:$0xff] %v2255_v21  ;;  %2987 = vst [vmem:[#allocation3_spill] sm:$0xff] %v2264_v57  ;;  %v2279_v43 = vadd.f32 %v2190_v58, %v918_v0  ;;  %v2282_v55 = vadd.f32 %v2190_v58, %v919_v49  ;;  %v2285_v13 = vadd.f32 %v2190_v58, %v920_v18  ;;  %vm995_vm5 = vcmp.gt.f32.partialorder %v2195_v9, 0.0 }
 0x1b2   :  { %2988 = vst [vmem:[#allocation4_spill] sm:$0xff] %v2273_v29  ;;  %v2288_v61 = vadd.f32 %v2190_v58, %v921_v12  ;;  %v2291_v35 = vadd.f32 %v2190_v58, %v922_v6  ;;  %v2294_v7 = vadd.f32 %v2190_v58, %v923_v26  ;;  %v2297_v8 = vadd.f32 %v2190_v58, %v924_v45 }
 0x1b3   :  { %2989 = vst [vmem:[#allocation5_spill] sm:$0xff] %v2282_v55  ;;  %v2300_v60 = vadd.f32 %v2190_v58, %v925_v41  ;;  %v2303_v34 = vadd.f32 %v2190_v58, %v926_v42  ;;  %v2306_v25 = vadd.f32 %v2190_v58, %v927_v53  ;;  %v2309_v46 = vadd.f32 %v2190_v58, %v928_v20 }
 0x1b4   :  { %2990 = vst [vmem:[#allocation6_spill] sm:$0xff] %v2291_v35  ;;  %v2312_v28 = vadd.f32 %v2190_v58, %v929_v2  ;;  %v2315_v51 = vadd.f32 %v2190_v58, %v930_v47  ;;  %v2318_v37 = vadd.f32 %v2190_v58, %v931_v56  ;;  %v2321_v0 = vadd.f32 %v2190_v58, %v932_v59 }
 0x1b5   :  { %2991 = vst [vmem:[#allocation7_spill] sm:$0xff] %v2300_v60  ;;  %2992 = vst [vmem:[#allocation8_spill] sm:$0xff] %v2309_v46  ;;  %v2324_v49 = vadd.f32 %v2190_v58, %v933_v5  ;;  %v2327_v18 = vadd.f32 %v2190_v58, %v934_v11  ;;  %v2330_v12 = vadd.f32 %v2190_v58, %v935_v23  ;;  %vm996_vm6 = vcmp.gt.f32.partialorder %v2198_v15, 0.0 }
 0x1b6   :  { %2993 = vst [vmem:[#allocation9_spill] sm:$0xff] %v2315_v51  ;;  %2994 = vst [vmem:[#allocation10_spill] sm:$0xff] %v2318_v37  ;;  %v2333_v6 = vadd.f32 %v2190_v58, %v936_v30  ;;  %vm997_vm7 = vcmp.gt.f32.partialorder %v2201_v32, 0.0  ;;  %vm998_vm8 = vcmp.gt.f32.partialorder %v2204_v40, 0.0  ;;  %vm999_vm9 = vcmp.gt.f32.partialorder %v2207_v63, 0.0 }
 0x1b7   :  { %2995 = vst [vmem:[#allocation11_spill] sm:$0xff] %v2327_v18  ;;  %vm1000_vm10 = vcmp.gt.f32.partialorder %v2210_v1, 0.0  ;;  %vm1001_vm11 = vcmp.gt.f32.partialorder %v2213_v22, 0.0  ;;  %vm1002_vm12 = vcmp.gt.f32.partialorder %v2216_v39, 0.0  ;;  %vm1003_vm13 = vcmp.gt.f32.partialorder %v2219_v24, 0.0 }
 0x1b8   :  { %v2345_v26 = vadd.f32 %v2190_v58, %v937_v44  ;;  %vm1004_vm14 = vcmp.gt.f32.partialorder %v2222_v17, 0.0  ;;  %v1044_v45 = vmul.f32 0.2, %v2195_v9  ;;  %v1045_v41 = vmul.f32 0.2, %v2198_v15 }
 0x1b9   :  { %v1046_v42 = vmul.f32 0.2, %v2201_v32  ;;  %v2353_v53 = vadd.f32 %v2190_v58, %v2192_v52  ;;  %vm1005_vm15 = vcmp.gt.f32.partialorder %v2225_v31, 0.0  ;;  %v1047_v20 = vmul.f32 0.2, %v2204_v40 }
 0x1ba   :  { %2996 = vst [vmem:[#allocation12_spill] sm:$0xff] %v2345_v26  ;;  %v1048_v2 = vmul.f32 0.2, %v2207_v63  ;;  %v1049_v47 = vmul.f32 0.2, %v2210_v1  ;;  %vm1006_vm0 = vcmp.gt.f32.partialorder %v2228_v54, 0.0  ;;  %v1093_v58 = vsel %vm995_vm5, %v2195_v9, %v1044_v45 }
 0x1bb   :  { %v1050_v56 = vmul.f32 0.2, %v2213_v22  ;;  %v1051_v59 = vmul.f32 0.2, %v2216_v39  ;;  %v2363_v5 = vmul.f32 0.2, %v2219_v24  ;;  %v1094_v44 = vsel %vm996_vm6, %v2198_v15, %v1045_v41 }
 0x1bc   :  { %vm1007_vm1 = vcmp.gt.f32.partialorder %v2231_v10, 0.0  ;;  %v2370_v11 = vmul.f32 0.2, %v2222_v17  ;;  %v2373_v23 = vmul.f32 0.2, %v2225_v31  ;;  %1142 = vst.msk [vmem:[%s2905_s5] sm:$0xff] %vm522_vm4, %v1093_v58  ;;  %v1095_v15 = vsel %vm997_vm7, %v2201_v32, %v1046_v42 }
 0x1bd   :  { %v2376_v30 = vmul.f32 0.2, %v2228_v54  ;;  %vm1008_vm2 = vcmp.gt.f32.partialorder %v2234_v48, 0.0  ;;  %v2387_v52 = vmul.f32 0.2, %v2231_v10  ;;  %1143 = vst.msk [vmem:[%s2905_s5 + $0x8] sm:$0xff] %vm522_vm4, %v1094_v44  ;;  %v1096_v32 = vsel %vm998_vm8, %v2204_v40, %v1047_v20 }
 0x1be   :  { %v2390_v9 = vmul.f32 0.2, %v2234_v48  ;;  %v2393_v45 = vmul.f32 0.2, %v2237_v38  ;;  %v2406_v41 = vmul.f32 0.2, %v2240_v14  ;;  %v1097_v20 = vsel %vm999_vm9, %v2207_v63, %v1048_v2 }
 0x1bf   :  { %v2409_v58 = vmul.f32 0.2, %v2243_v4  ;;  %1144 = vst.msk [vmem:[%s2905_s5 + $0x10] sm:$0xff] %vm522_vm4, %v1095_v15  ;;  %vm1012_vm7 = vcmp.gt.f32.partialorder %v2246_v19, 0.0  ;;  %v2426_v42 = vmul.f32 0.2, %v2249_v27  ;;  %v1098_v2 = vsel %vm1000_vm10, %v2210_v1, %v1049_v47 }
 0x1c0   :  { %2997 = vst [vmem:[#allocation18_spill] sm:$0xff] %v2393_v45  ;;  %v2412_v45 = vmul.f32 0.2, %v2246_v19  ;;  %v2429_v44 = vmul.f32 0.2, %v2252_v62  ;;  %1145 = vst.msk [vmem:[%s2905_s5 + $0x18] sm:$0xff] %vm522_vm4, %v1096_v32  ;;  %v1099_v47 = vsel %vm1001_vm11, %v2213_v22, %v1050_v56  ;;  %v1100_v56 = vsel %vm1002_vm12, %v2216_v39, %v1051_v59 }
 0x1c1   :  { %v2432_v40 = vmul.f32 0.2, %v2255_v21  ;;  %vm1016_vm8 = vcmp.gt.f32.partialorder %v2258_v16, 0.0  ;;  %v2446_v15 = vmul.f32 0.2, %v2258_v16  ;;  %1146 = vst.msk [vmem:[%s2905_s5 + $0x20] sm:$0xff] %vm522_vm4, %v1097_v20  ;;  %v1101_v59 = vsel %vm1003_vm13, %v2219_v24, %v2363_v5 }
 0x1c2   :  { %v2449_v21 = vmul.f32 0.2, %v2261_v36  ;;  %v2452_v63 = vmul.f32 0.2, %v2264_v57  ;;  %vm1020_vm9 = vcmp.gt.f32.partialorder %v2270_v33, 0.0  ;;  %1147 = vst.msk [vmem:[%s2905_s5 + $0x28] sm:$0xff] %vm522_vm4, %v1098_v2  ;;  %v1102_v5 = vsel %vm1004_vm14, %v2222_v17, %v2370_v11 }
 0x1c3   :  { %v2466_v32 = vmul.f32 0.2, %v2267_v3  ;;  %v2469_v57 = vmul.f32 0.2, %v2270_v33  ;;  %v2472_v1 = vmul.f32 0.2, %v2273_v29  ;;  %v1103_v11 = vsel %vm1005_vm15, %v2225_v31, %v2373_v23 }
 0x1c4   :  { %vm1024_vm10 = vcmp.gt.f32.partialorder %v2282_v55, 0.0  ;;  %v2486_v20 = vmul.f32 0.2, %v2276_v50  ;;  %v2489_v29 = vmul.f32 0.2, %v2279_v43  ;;  %1148 = vst.msk [vmem:[%s2905_s5 + $0x30] sm:$0xff] %vm522_vm4, %v1099_v47  ;;  %v1104_v31 = vsel %vm1006_vm0, %v2228_v54, %v2376_v30 }
 0x1c5   :  { %v2492_v22 = vmul.f32 0.2, %v2282_v55  ;;  %vm1028_vm11 = vcmp.gt.f32.partialorder %v2294_v7, 0.0  ;;  %v2506_v2 = vmul.f32 0.2, %v2285_v13  ;;  %1149 = vst.msk [vmem:[%s2905_s5 + $0x38] sm:$0xff] %vm522_vm4, %v1100_v56 }
 0x1c6   :  { %v2509_v55 = vmul.f32 0.2, %v2288_v61  ;;  %v2512_v39 = vmul.f32 0.2, %v2291_v35  ;;  %vm1032_vm12 = vcmp.gt.f32.partialorder %v2306_v25, 0.0  ;;  %1150 = vst.msk [vmem:[%s2905_s5 + $0x40] sm:$0xff] %vm522_vm4, %v1101_v59 }
 0x1c7   :  { %v2527_v47 = vmul.f32 0.2, %v2294_v7  ;;  %v2530_v35 = vmul.f32 0.2, %v2297_v8  ;;  %v2533_v24 = vmul.f32 0.2, %v2300_v60 }
 0x1c8   :  { %vm1036_vm13 = vcmp.gt.f32.partialorder %v2318_v37, 0.0  ;;  %v2548_v56 = vmul.f32 0.2, %v2303_v34  ;;  %v2551_v60 = vmul.f32 0.2, %v2306_v25  ;;  %1151 = vst.msk [vmem:[%s2905_s5 + $0x48] sm:$0xff] %vm522_vm4, %v1102_v5 }
 0x1c9   :  { %v2554_v17 = vmul.f32 0.2, %v2309_v46  ;;  %vm1040_vm14 = vcmp.gt.f32.partialorder %v2330_v12, 0.0  ;;  %vm1041_vm3 = vcmp.gt.f32.partialorder %v2333_v6, 0.0  ;;  %vm1042_vm5 = vcmp.gt.f32.partialorder %v2345_v26, 0.0  ;;  %1152 = vst.msk [vmem:[%s2905_s5 + $0x50] sm:$0xff] %vm522_vm4, %v1103_v11 }
 0x1ca   :  { %vm1043_vm6 = vcmp.gt.f32.partialorder %v2353_v53, 0.0  ;;  %v1083_v59 = vmul.f32 0.2, %v2312_v28  ;;  %v1084_v46 = vmul.f32 0.2, %v2315_v51  ;;  %1153 = vst.msk [vmem:[%s2905_s5 + $0x58] sm:$0xff] %vm522_vm4, %v1104_v31 }
 0x1cb   :  { %2998 = vst [vmem:[#allocation13_spill] sm:$0xff] %v2554_v17  ;;  %v2571_v17 = vmul.f32 0.2, %v2318_v37  ;;  %v2582_v23 = vmul.f32 0.2, %v2321_v0  ;;  %v1105_v37 = vsel %vm1007_vm1, %v2231_v10, %v2387_v52  ;;  %v2999_v52 = vld [vmem:[#allocation18_spill] sm:$0xff] }
 0x1cc   :  { %v2585_v5 = vmul.f32 0.2, %v2324_v49  ;;  %v2588_v51 = vmul.f32 0.2, %v2327_v18  ;;  %v2599_v54 = vmul.f32 0.2, %v2330_v12  ;;  %v1106_v18 = vsel %vm1008_vm2, %v2234_v48, %v2390_v9 }
 0x1cd   :  { %v2602_v30 = vmul.f32 0.2, %v2333_v6  ;;  %v2605_v11 = vmul.f32 0.2, %v2345_v26  ;;  %1154 = vst.msk [vmem:[%s2905_s5 + $0x60] sm:$0xff] %vm522_vm4, %v1105_v37  ;;  %vm3000_vm15 = vcmp.gt.f32.partialorder %v2237_v38, 0.0 }
 0x1ce   :  { %v2616_v10 = vmul.f32 0.2, %v2353_v53  ;;  %v1107_v31 = vsel %vm3000_vm15, %v2237_v38, %v2999_v52  ;;  %vm3001_vm0 = vcmp.gt.f32.partialorder %v2240_v14, 0.0  ;;  %vm3002_vm1 = vcmp.gt.f32.partialorder %v2243_v4, 0.0  ;;  %1155 = vst.msk [vmem:[%s2905_s5 + $0x68] sm:$0xff] %vm522_vm4, %v1106_v18  ;;  %v3005_v37 = vld [vmem:[#allocation2_spill] sm:$0xff] }
 0x1cf   :  { %v1108_v26 = vsel %vm3001_vm0, %v2240_v14, %v2406_v41  ;;  %v1109_v48 = vsel %vm3002_vm1, %v2243_v4, %v2409_v58  ;;  %v1110_v38 = vsel %vm1012_vm7, %v2246_v19, %v2412_v45  ;;  %vm3003_vm2 = vcmp.gt.f32.partialorder %v2249_v27, 0.0  ;;  %1156 = vst.msk [vmem:[%s2905_s5 + $0x70] sm:$0xff] %vm522_vm4, %v1107_v31 }
 0x1d0   :  { %v1111_v14 = vsel %vm3003_vm2, %v2249_v27, %v2426_v42  ;;  %vm3004_vm15 = vcmp.gt.f32.partialorder %v2252_v62, 0.0  ;;  %vm3006_vm0 = vcmp.gt.f32.partialorder %v3005_v37, 0.0  ;;  %1157 = vst.msk [vmem:[%s2905_s5 + $0x78] sm:$0xff] %vm522_vm4, %v1108_v26  ;;  %1158 = vst.msk [vmem:[%s2905_s5 + $0x80] sm:$0xff] %vm522_vm4, %v1109_v48  ;;  %v1114_v19 = vsel %vm1016_vm8, %v2258_v16, %v2446_v15  ;;  %v3011_v16 = vld [vmem:[#allocation4_spill] sm:$0xff] }
 0x1d1   :  { %v1112_v4 = vsel %vm3004_vm15, %v2252_v62, %v2429_v44  ;;  %v1113_v18 = vsel %vm3006_vm0, %v3005_v37, %v2432_v40  ;;  %vm3007_vm7 = vcmp.gt.f32.partialorder %v2261_v36, 0.0  ;;  %v3008_v62 = vld [vmem:[#allocation3_spill] sm:$0xff]  ;;  %vm3010_vm2 = vcmp.gt.f32.partialorder %v2267_v3, 0.0  ;;  %1159 = vst.msk [vmem:[%s2905_s5 + $0x88] sm:$0xff] %vm522_vm4, %v1110_v38  ;;  %1160 = vst.msk [vmem:[%s2905_s5 + $0x90] sm:$0xff] %vm522_vm4, %v1111_v14  ;;  %v3028_v40 = vld [vmem:[#allocation9_spill] sm:$0xff] }
 0x1d2   :  { %v1115_v27 = vsel %vm3007_vm7, %v2261_v36, %v2449_v21  ;;  %vm3009_vm1 = vcmp.gt.f32.partialorder %v3008_v62, 0.0  ;;  %v1117_v9 = vsel %vm3010_vm2, %v2267_v3, %v2466_v32  ;;  %1161 = vst.msk [vmem:[%s2905_s5 + $0x98] sm:$0xff] %vm522_vm4, %v1112_v4  ;;  %1162 = vst.msk [vmem:[%s2905_s5 + $0xa0] sm:$0xff] %vm522_vm4, %v1113_v18  ;;  %v1118_v21 = vsel %vm1020_vm9, %v2270_v33, %v2469_v57  ;;  %v3015_v57 = vld [vmem:[#allocation5_spill] sm:$0xff] }
 0x1d3   :  { %v1116_v26 = vsel %vm3009_vm1, %v3008_v62, %v2452_v63  ;;  %vm3012_vm8 = vcmp.gt.f32.partialorder %v3011_v16, 0.0  ;;  %vm3013_vm15 = vcmp.gt.f32.partialorder %v2276_v50, 0.0  ;;  %vm3014_vm0 = vcmp.gt.f32.partialorder %v2279_v43, 0.0  ;;  %1163 = vst.msk [vmem:[%s2905_s5 + $0xa8] sm:$0xff] %vm522_vm4, %v1114_v19  ;;  %1164 = vst.msk [vmem:[%s2905_s5 + $0xb0] sm:$0xff] %vm522_vm4, %v1115_v27  ;;  %v3033_v63 = vld [vmem:[#allocation11_spill] sm:$0xff] }
 0x1d4   :  { %v1119_v36 = vsel %vm3012_vm8, %v3011_v16, %v2472_v1  ;;  %v1120_v3 = vsel %vm3013_vm15, %v2276_v50, %v2486_v20  ;;  %v1121_v45 = vsel %vm3014_vm0, %v2279_v43, %v2489_v29  ;;  %1165 = vst.msk [vmem:[%s2905_s5 + $0xb8] sm:$0xff] %vm522_vm4, %v1116_v26  ;;  %1166 = vst.msk [vmem:[%s2905_s5 + $0xc0] sm:$0xff] %vm522_vm4, %v1117_v9  ;;  %vm3016_vm9 = vcmp.gt.f32.partialorder %v2285_v13, 0.0  ;;  %v3018_v43 = vld [vmem:[#allocation6_spill] sm:$0xff] }
 0x1d5   :  { %v1122_v33 = vsel %vm1024_vm10, %v3015_v57, %v2492_v22  ;;  %v1123_v29 = vsel %vm3016_vm9, %v2285_v13, %v2506_v2  ;;  %vm3017_vm7 = vcmp.gt.f32.partialorder %v2288_v61, 0.0  ;;  %vm3019_vm1 = vcmp.gt.f32.partialorder %v3018_v43, 0.0  ;;  %1167 = vst.msk [vmem:[%s2905_s5 + $0xc8] sm:$0xff] %vm522_vm4, %v1118_v21  ;;  %1168 = vst.msk [vmem:[%s2905_s5 + $0xd0] sm:$0xff] %vm522_vm4, %v1119_v36 }
 0x1d6   :  { %v1124_v50 = vsel %vm3017_vm7, %v2288_v61, %v2509_v55  ;;  %v1125_v41 = vsel %vm3019_vm1, %v3018_v43, %v2512_v39  ;;  %1169 = vst.msk [vmem:[%s2905_s5 + $0xd8] sm:$0xff] %vm522_vm4, %v1120_v3  ;;  %1170 = vst.msk [vmem:[%s2905_s5 + $0xe0] sm:$0xff] %vm522_vm4, %v1121_v45  ;;  %v1126_v55 = vsel %vm1028_vm11, %v2294_v7, %v2527_v47  ;;  %vm3020_vm10 = vcmp.gt.f32.partialorder %v2297_v8, 0.0  ;;  %v3021_v61 = vld [vmem:[#allocation7_spill] sm:$0xff]  ;;  %v3024_v7 = vld [vmem:[#allocation13_spill] sm:$0xff] }
 0x1d7   :  { %v1127_v13 = vsel %vm3020_vm10, %v2297_v8, %v2530_v35  ;;  %vm3022_vm2 = vcmp.gt.f32.partialorder %v3021_v61, 0.0  ;;  %vm3023_vm8 = vcmp.gt.f32.partialorder %v2303_v34, 0.0  ;;  %1171 = vst.msk [vmem:[%s2905_s5 + $0xe8] sm:$0xff] %vm522_vm4, %v1122_v33  ;;  %1172 = vst.msk [vmem:[%s2905_s5 + $0xf0] sm:$0xff] %vm522_vm4, %v1123_v29  ;;  %v1130_v35 = vsel %vm1032_vm12, %v2306_v25, %v2551_v60  ;;  %v3025_v8 = vld [vmem:[#allocation8_spill] sm:$0xff]  ;;  %v3030_v60 = vld [vmem:[#allocation10_spill] sm:$0xff] }
 0x1d8   :  { %v1128_v58 = vsel %vm3022_vm2, %v3021_v61, %v2533_v24  ;;  %v1129_v42 = vsel %vm3023_vm8, %v2303_v34, %v2548_v56  ;;  %1173 = vst.msk [vmem:[%s2905_s5 + $0xf8] sm:$0xff] %vm522_vm4, %v1124_v50  ;;  %1174 = vst.msk [vmem:[%s2905_s5 + $0x100] sm:$0xff] %vm522_vm4, %v1125_v41  ;;  %vm3026_vm11 = vcmp.gt.f32.partialorder %v3025_v8, 0.0  ;;  %vm3027_vm15 = vcmp.gt.f32.partialorder %v2312_v28, 0.0 }
 0x1d9   :  { %v1131_v34 = vsel %vm3026_vm11, %v3025_v8, %v3024_v7  ;;  %v1132_v44 = vsel %vm3027_vm15, %v2312_v28, %v1083_v59  ;;  %vm3029_vm0 = vcmp.gt.f32.partialorder %v3028_v40, 0.0  ;;  %1175 = vst.msk [vmem:[%s2905_s5 + $0x108] sm:$0xff] %vm522_vm4, %v1126_v55  ;;  %1176 = vst.msk [vmem:[%s2905_s5 + $0x110] sm:$0xff] %vm522_vm4, %v1127_v13  ;;  %v1134_v25 = vsel %vm1036_vm13, %v3030_v60, %v2571_v17 }
 0x1da   :  { %v1133_v15 = vsel %vm3029_vm0, %v3028_v40, %v1084_v46  ;;  %1177 = vst.msk [vmem:[%s2905_s5 + $0x118] sm:$0xff] %vm522_vm4, %v1128_v58  ;;  %1178 = vst.msk [vmem:[%s2905_s5 + $0x120] sm:$0xff] %vm522_vm4, %v1129_v42  ;;  %vm3031_vm12 = vcmp.gt.f32.partialorder %v2321_v0, 0.0  ;;  %vm3032_vm9 = vcmp.gt.f32.partialorder %v2324_v49, 0.0  ;;  %vm3034_vm7 = vcmp.gt.f32.partialorder %v3033_v63, 0.0 }
 0x1db   :  { %v1135_v46 = vsel %vm3031_vm12, %v2321_v0, %v2582_v23  ;;  %v1136_v28 = vsel %vm3032_vm9, %v2324_v49, %v2585_v5  ;;  %v1137_v32 = vsel %vm3034_vm7, %v3033_v63, %v2588_v51  ;;  %1179 = vst.msk [vmem:[%s2905_s5 + $0x128] sm:$0xff] %vm522_vm4, %v1130_v35  ;;  %1180 = vst.msk [vmem:[%s2905_s5 + $0x130] sm:$0xff] %vm522_vm4, %v1131_v34  ;;  %v3035_v49 = vld [vmem:[#allocation12_spill] sm:$0xff] }
 0x1dc   :  { %1181 = vst.msk [vmem:[%s2905_s5 + $0x138] sm:$0xff] %vm522_vm4, %v1132_v44  ;;  %1182 = vst.msk [vmem:[%s2905_s5 + $0x140] sm:$0xff] %vm522_vm4, %v1133_v15  ;;  %v1138_v51 = vsel %vm1040_vm14, %v2330_v12, %v2599_v54  ;;  %v1139_v0 = vsel %vm1041_vm3, %v2333_v6, %v2602_v30  ;;  %v1140_v1 = vsel %vm1042_vm5, %v3035_v49, %v2605_v11 }
 0x1dd   :  { %v1141_v20 = vsel %vm1043_vm6, %v2353_v53, %v2616_v10  ;;  %1183 = vst.msk [vmem:[%s2905_s5 + $0x148] sm:$0xff] %vm522_vm4, %v1134_v25  ;;  %1184 = vst.msk [vmem:[%s2905_s5 + $0x150] sm:$0xff] %vm522_vm4, %v1135_v46 }
 0x1de   :  { %1185 = vst.msk [vmem:[%s2905_s5 + $0x158] sm:$0xff] %vm522_vm4, %v1136_v28  ;;  %1186 = vst.msk [vmem:[%s2905_s5 + $0x160] sm:$0xff] %vm522_vm4, %v1137_v32 }
 0x1df   :  { %1187 = vst.msk [vmem:[%s2905_s5 + $0x168] sm:$0xff] %vm522_vm4, %v1138_v51  ;;  %1188 = vst.msk [vmem:[%s2905_s5 + $0x170] sm:$0xff] %vm522_vm4, %v1139_v0 }
 0x1e0   :  { %1189 = vst.msk [vmem:[%s2905_s5 + $0x178] sm:$0xff] %vm522_vm4, %v1140_v1  ;;  %1190 = vst.msk [vmem:[%s2905_s5 + $0x180] sm:$0xff] %vm522_vm4, %v1141_v20 }

// kernel: vae_forward.8
= control target key start
LH: loop header
LB: loop body
LE: loop exit
PB: predicated region body
PF: predicated region fallthrough
CT: control target
= control target key end

     0   :  { %v899_v1 = vmov 0.0   ;;  %vm900_vm0 = vmmov 0   ;;  %vm298_vm1 = vcmask 261120   ;;  %vm496_vm2 = vcmask 523264   ;;  %s1255_s1 = inlined_call_operand.vmem [shape: bf16[288,64], index: 1, kind: input, shape index: {}]   ;;  %s1256_s0 = inlined_call_operand.vmem [shape: bf16[98,288], index: 0, kind: input, shape index: {}]   ;;  %s1257_s2 = inlined_call_operand.vmem [shape: f32[1,64], index: 2, kind: input, shape index: {}]   ;;  %s1258_s3 = inlined_call_operand.vmem [shape: f32[1,64], index: 3, kind: input, shape index: {}]   ;;  %s1259_s4 = inlined_call_operand.vmem [shape: f32[1,64], index: 4, kind: input, shape index: {}]   ;;  %s1260_s5 = inlined_call_operand.vmem [shape: f32[98,64], index: 5, kind: output, shape index: {}]  }
   0x1   :  { %v852_v0 = vld [vmem:[%s1255_s1 + $0x40] sm:$0xff]   ;;  %818 = vmatprep.subr.bf16.mxu1 %v899_v1  ;;  %822 = vmatprep.mubr.msk.bf16.mxu1 %vm900_vm0, %v899_v1  ;;  %v854_v3 = vld [vmem:[%s1255_s1 + $0x48] sm:$0xff]   ;;  %v856_v5 = vld [vmem:[%s1255_s1 + $0x50] sm:$0xff]   ;;  %vm520_vm3 = vcmask 517120  }
   0x2   :  { %v853_v2 = vld [vmem:[%s1255_s1] sm:$0xff]   ;;  %751 = vmatprep.subr.bf16.mxu0 %v852_v0  ;;  %v855_v4 = vld [vmem:[%s1255_s1 + $0x8] sm:$0xff]   ;;  %v857_v6 = vld [vmem:[%s1255_s1 + $0x10] sm:$0xff]  }
   0x3   :  { %752 = vmatpush3.bf16.msra.mxu0 %v853_v2  ;;  %v858_v7 = vld [vmem:[%s1255_s1 + $0x58] sm:$0xff]   ;;  %v860_v9 = vld [vmem:[%s1255_s1 + $0x60] sm:$0xff]   ;;  %v862_v12 = vld [vmem:[%s1255_s1 + $0x68] sm:$0xff]  }
   0x4   :  { %753 = vmatprep.subr.bf16.mxu0 %v854_v3  ;;  %v859_v8 = vld [vmem:[%s1255_s1 + $0x18] sm:$0xff]   ;;  %v866_v10 = vld [vmem:[%s1255_s1 + $0x80] sm:$0xff]   ;;  %v863_v13 = vld [vmem:[%s1255_s1 + $0x28] sm:$0xff]  }
   0x5   :  { %v861_v11 = vld [vmem:[%s1255_s1 + $0x20] sm:$0xff]   ;;  %819 = vmatpush3.bf16.msra.mxu1 %v866_v10  ;;  %v864_v14 = vld [vmem:[%s1255_s1 + $0x70] sm:$0xff]   ;;  %v872_v16 = vld [vmem:[%s1255_s1 + $0x88] sm:$0xff]  }
   0x6   :  { %820 = vmatprep.subr.bf16.mxu1 %v899_v1  ;;  %v871_v15 = vld [vmem:[%s1256_s0 + $0x4] ss:$12 sps:$4 sm:$0xff]   ;;  %v873_v17 = vld [vmem:[%s1256_s0 + $0x8] ss:$12 sps:$4 sm:$0xff]   ;;  %v867_v19 = vld [vmem:[%s1255_s1 + $0x78] sm:$0xff]  }
   0x7   :  { %754 = vmatpush3.bf16.msra.mxu0 %v855_v4  ;;  %352 = vmatprep.mubr.bf16.mxu0 %v871_v15  ;;  %v865_v18 = vld [vmem:[%s1255_s1 + $0x30] sm:$0xff]   ;;  %v868_v20 = vld [vmem:[%s1255_s1 + $0x38] sm:$0xff]   ;;  %v877_v21 = vld [vmem:[%s1256_s0 + $0x20] ss:$12 sps:$4 sm:$0xff]  }
   0x8   :  { %755 = vmatprep.subr.bf16.mxu0 %v856_v5  ;;  %v869_v22 = vld [vmem:[%s1256_s0] ss:$12 sps:$4 sm:$0xff]   ;;  %v874_v23 = vld [vmem:[%s1256_s0 + $0x1c] ss:$12 sps:$4 sm:$0xff]   ;;  %v881_v24 = vld [vmem:[%s1256_s0 + $0x38] ss:$12 sps:$4 sm:$0xff]  }
   0x9   :  { %821 = vmatpush3.bf16.msra.mxu1 %v872_v16  ;;  %v876_v25 = vld [vmem:[%s1256_s0 + $0x18] ss:$12 sps:$4 sm:$0xff]   ;;  %v878_v26 = vld [vmem:[%s1256_s0 + $0x34] ss:$12 sps:$4 sm:$0xff]   ;;  %v885_v27 = vld [vmem:[%s1256_s0 + $0x50] ss:$12 sps:$4 sm:$0xff]  }
   0xa   :  { %v880_v28 = vld [vmem:[%s1256_s0 + $0x30] ss:$12 sps:$4 sm:$0xff]   ;;  %v882_v29 = vld [vmem:[%s1256_s0 + $0x4c] ss:$12 sps:$4 sm:$0xff]   ;;  %v889_v30 = vld [vmem:[%s1256_s0 + $0x68] ss:$12 sps:$4 sm:$0xff]  }
   0xb   :  { %756 = vmatpush3.bf16.msra.mxu0 %v857_v6  ;;  %v884_v31 = vld [vmem:[%s1256_s0 + $0x48] ss:$12 sps:$4 sm:$0xff]   ;;  %v886_v32 = vld [vmem:[%s1256_s0 + $0x64] ss:$12 sps:$4 sm:$0xff]   ;;  %v893_v33 = vld [vmem:[%s1256_s0 + $0x80] ss:$12 sps:$4 sm:$0xff]  }
   0xc   :  { %757 = vmatprep.subr.bf16.mxu0 %v858_v7  ;;  %823 = vmatmul.mubr.msk.bf16.vlgmr.msra.gmra.mrb[0].mxu1 %vm298_vm1, %v873_v17  ;;  %v888_v34 = vld [vmem:[%s1256_s0 + $0x60] ss:$12 sps:$4 sm:$0xff]   ;;  %v890_v35 = vld [vmem:[%s1256_s0 + $0x7c] ss:$12 sps:$4 sm:$0xff]   ;;  %v45_v36 = vld [vmem:[%s1256_s0 + $0x90] sm:$0x11] }
   0xd   :  { %826 = vmatprep.mubr.msk.bf16.mxu1 %vm900_vm0, %v899_v1  ;;  %v896_v37 = vld [vmem:[%s1256_s0 + $0x98] ss:$0 sps:$4 sm:$0x11]   ;;  %v722_v39 = vcombine.high %v45_v36, %v45_v36  ;;  %v721_v40 = vcombine.low %v45_v36, %v45_v36  ;;  %v1071_v50 = vld [vmem:[%s1257_s2] ss:$0 sm:$0xff] }
   0xe   :  { %v892_v38 = vld [vmem:[%s1256_s0 + $0x78] ss:$12 sps:$4 sm:$0xff]  }
   0xf   :  { %758 = vmatpush3.bf16.msra.mxu0 %v859_v8 }
  0x10   :  { %759 = vmatprep.subr.bf16.mxu0 %v860_v9 }
  0x13   :  { %760 = vmatpush3.bf16.msra.mxu0 %v861_v11 }
  0x14   :  { %761 = vmatprep.subr.bf16.mxu0 %v862_v12  ;;  %827 = vmatmul.mubr.msk.bf16.gmra.mrb[4].mxu1 %vm298_vm1, %v877_v21 }
  0x15   :  { %830 = vmatprep.mubr.msk.bf16.mxu1 %vm900_vm0, %v899_v1 }
  0x17   :  { %762 = vmatpush3.bf16.msra.mxu0 %v863_v13 }
  0x18   :  { %763 = vmatprep.subr.bf16.mxu0 %v864_v14 }
  0x1b   :  { %764 = vmatpush3.bf16.msra.mxu0 %v865_v18 }
  0x1c   :  { %765 = vmatprep.subr.bf16.mxu0 %v867_v19  ;;  %831 = vmatmul.mubr.msk.bf16.gmra.mrb[8].mxu1 %vm298_vm1, %v881_v24 }
  0x1d   :  { %834 = vmatprep.mubr.msk.bf16.mxu1 %vm900_vm0, %v899_v1 }
  0x1f   :  { %766 = vmatpush3.bf16.msra.mxu0 %v868_v20 }
  0x22   :  { %353 = vmatmul.mubr.bf16.vlgmr.msra.gmra.mrb[0].mxu0 %v869_v22 }
  0x23   :  { %360 = vmatprep.mubr.bf16.mxu0 %v874_v23 }
  0x24   :  { %835 = vmatmul.mubr.msk.bf16.gmra.mrb[12].mxu1 %vm298_vm1, %v885_v27 }
  0x25   :  { %838 = vmatprep.mubr.msk.bf16.mxu1 %vm900_vm0, %v899_v1 }
  0x2a   :  { %361 = vmatmul.mubr.bf16.gmra.mrb[4].mxu0 %v876_v25 }
  0x2b   :  { %368 = vmatprep.mubr.bf16.mxu0 %v878_v26 }
  0x2c   :  { %839 = vmatmul.mubr.msk.bf16.gmra.mrb[16].mxu1 %vm298_vm1, %v889_v30 }
  0x2d   :  { %842 = vmatprep.mubr.msk.bf16.mxu1 %vm900_vm0, %v899_v1 }
  0x32   :  { %369 = vmatmul.mubr.bf16.gmra.mrb[8].mxu0 %v880_v28 }
  0x33   :  { %376 = vmatprep.mubr.bf16.mxu0 %v882_v29 }
  0x34   :  { %843 = vmatmul.mubr.msk.bf16.gmra.mrb[20].mxu1 %vm298_vm1, %v893_v33 }
  0x35   :  { %846 = vmatprep.mubr.msk.bf16.mxu1 %vm900_vm0, %v899_v1 }
  0x3a   :  { %377 = vmatmul.mubr.bf16.gmra.mrb[12].mxu0 %v884_v31 }
  0x3b   :  { %384 = vmatprep.mubr.bf16.mxu0 %v886_v32 }
  0x3c   :  { %847 = vmatmul.mubr.msk.bf16.gmra.mrb[24].mxu1 %vm298_vm1, %v896_v37 }
  0x42   :  { %385 = vmatmul.mubr.bf16.gmra.mrb[16].mxu0 %v888_v34 }
  0x43   :  { %392 = vmatprep.mubr.bf16.mxu0 %v890_v35 }
  0x4a   :  { %393 = vmatmul.mubr.bf16.gmra.mrb[20].mxu0 %v892_v38 }
  0x4b   :  { %400 = vmatprep.mubr.bf16.mxu0 %v722_v39 }
  0x52   :  { %401 = vmatmul.mubr.bf16.gmra.mrb[24].mxu0 %v721_v40 }
  0xdf   :  { %v442_v41 = vpop.f32.mrb[0].mxu1 }
  0xe0   :  { %v824_v42 = vpop.f32.mrb[1].mxu1 }
  0xe1   :  { %v445_v43 = vpop.f32.mrb[2].mxu1 }
  0xe2   :  { %v825_v44 = vpop.f32.mrb[3].mxu1 }
  0xe7   :  { %v450_v45 = vpop.f32.mrb[4].mxu1 }
  0xe8   :  { %v828_v46 = vpop.f32.mrb[5].mxu1 }
  0xe9   :  { %v453_v48 = vpop.f32.mrb[6].mxu1 }
  0xea   :  { %v829_v51 = vpop.f32.mrb[7].mxu1 }
  0xef   :  { %v458_v59 = vpop.f32.mrb[8].mxu1 }
  0xf0   :  { %v832_v60 = vpop.f32.mrb[9].mxu1 }
  0xf1   :  { %v461_v0 = vpop.f32.mrb[10].mxu1 }
  0xf2   :  { %v833_v2 = vpop.f32.mrb[11].mxu1 }
  0xf5   :  { %v767_v47 = vpop.f32.mrb[0].mxu0 }
  0xf6   :  { %v768_v49 = vpop.f32.mrb[1].mxu0 }
  0xf7   :  { %v769_v52 = vadd.f32 %v768_v49, %v767_v47  ;;  %v770_v53 = vpop.f32.mrb[2].mxu0  ;;  %v466_v17 = vpop.f32.mrb[12].mxu1 }
  0xf8   :  { %v771_v54 = vpop.f32.mrb[3].mxu0  ;;  %v836_v18 = vpop.f32.mrb[13].mxu1 }
  0xf9   :  { %v355_v55 = vadd.f32 %v769_v52, %v1071_v50  ;;  %v772_v56 = vadd.f32 %v771_v54, %v770_v53  ;;  %v469_v23 = vpop.f32.mrb[14].mxu1 }
  0xfa   :  { %v837_v26 = vpop.f32.mrb[15].mxu1 }
  0xfb   :  { %v1074_v57 = vadd.f32 %v442_v41, %v355_v55  ;;  %v358_v58 = vadd.f32 %v772_v56, %v1071_v50 }
  0xfd   :  { %v531_v61 = vmul.f32 %v1074_v57, %v1074_v57  ;;  %v1079_v62 = vadd.f32 %v445_v43, %v358_v58  ;;  %v773_v63 = vpop.f32.mrb[4].mxu0  ;;  %v497_v3 = vsel %vm496_vm2, %v1074_v57, 0.0 }
  0xfe   :  { %v774_v1 = vpop.f32.mrb[5].mxu0 }
  0xff   :  { %v498_v4 = vsel %vm496_vm2, %v1079_v62, 0.0  ;;  %v532_v5 = vmul.f32 %v1079_v62, %v1079_v62  ;;  %v775_v6 = vadd.f32 %v774_v1, %v773_v63  ;;  %v776_v7 = vpop.f32.mrb[6].mxu0  ;;  %v544_v10 = vsel %vm496_vm2, %v531_v61, 0.0  ;;  %v474_v41 = vpop.f32.mrb[16].mxu1 }
 0x100   :  { %v499_v8 = vadd.f32 %v498_v4, %v497_v3  ;;  %v777_v9 = vpop.f32.mrb[7].mxu0  ;;  %v840_v42 = vpop.f32.mrb[17].mxu1 }
 0x101   :  { %v545_v11 = vsel %vm496_vm2, %v532_v5, 0.0  ;;  %v363_v12 = vadd.f32 %v775_v6, %v1071_v50  ;;  %v778_v13 = vadd.f32 %v777_v9, %v776_v7  ;;  %v477_v47 = vpop.f32.mrb[18].mxu1 }
 0x102   :  { %v546_v14 = vadd.f32 %v545_v11, %v544_v10  ;;  %v841_v51 = vpop.f32.mrb[19].mxu1 }
 0x103   :  { %v1090_v15 = vadd.f32 %v450_v45, %v363_v12  ;;  %v366_v16 = vadd.f32 %v778_v13, %v1071_v50 }
 0x105   :  { %v500_v19 = vsel %vm496_vm2, %v1090_v15, 0.0  ;;  %v533_v20 = vmul.f32 %v1090_v15, %v1090_v15  ;;  %v1097_v21 = vadd.f32 %v453_v48, %v366_v16  ;;  %v779_v22 = vpop.f32.mrb[8].mxu0 }
 0x106   :  { %v501_v24 = vadd.f32 %v500_v19, %v499_v8  ;;  %v780_v25 = vpop.f32.mrb[9].mxu0 }
 0x107   :  { %v547_v27 = vsel %vm496_vm2, %v533_v20, 0.0  ;;  %v502_v28 = vsel %vm496_vm2, %v1097_v21, 0.0  ;;  %v534_v29 = vmul.f32 %v1097_v21, %v1097_v21  ;;  %v781_v30 = vadd.f32 %v780_v25, %v779_v22  ;;  %v782_v31 = vpop.f32.mrb[10].mxu0  ;;  %v482_v4 = vpop.f32.mrb[20].mxu1 }
 0x108   :  { %v548_v32 = vadd.f32 %v547_v27, %v546_v14  ;;  %v503_v33 = vadd.f32 %v502_v28, %v501_v24  ;;  %v783_v34 = vpop.f32.mrb[11].mxu0  ;;  %v844_v5 = vpop.f32.mrb[21].mxu1 }
 0x109   :  { %v549_v35 = vsel %vm496_vm2, %v534_v29, 0.0  ;;  %v371_v36 = vadd.f32 %v781_v30, %v1071_v50  ;;  %v784_v37 = vadd.f32 %v783_v34, %v782_v31  ;;  %v485_v10 = vpop.f32.mrb[22].mxu1 }
 0x10a   :  { %v550_v38 = vadd.f32 %v549_v35, %v548_v32  ;;  %v845_v13 = vpop.f32.mrb[23].mxu1 }
 0x10b   :  { %v1106_v39 = vadd.f32 %v458_v59, %v371_v36  ;;  %v374_v40 = vadd.f32 %v784_v37, %v1071_v50 }
 0x10d   :  { %v504_v43 = vsel %vm496_vm2, %v1106_v39, 0.0  ;;  %v535_v44 = vmul.f32 %v1106_v39, %v1106_v39  ;;  %v1113_v45 = vadd.f32 %v461_v0, %v374_v40  ;;  %v785_v46 = vpop.f32.mrb[12].mxu0 }
 0x10e   :  { %v505_v48 = vadd.f32 %v504_v43, %v503_v33  ;;  %v786_v49 = vpop.f32.mrb[13].mxu0 }
 0x10f   :  { %v551_v52 = vsel %vm496_vm2, %v535_v44, 0.0  ;;  %v506_v53 = vsel %vm496_vm2, %v1113_v45, 0.0  ;;  %v536_v54 = vmul.f32 %v1113_v45, %v1113_v45  ;;  %v787_v55 = vadd.f32 %v786_v49, %v785_v46  ;;  %v788_v56 = vpop.f32.mrb[14].mxu0  ;;  %v490_v30 = vpop.f32.mrb[24].mxu1 }
 0x110   :  { %v552_v58 = vadd.f32 %v551_v52, %v550_v38  ;;  %v507_v59 = vadd.f32 %v506_v53, %v505_v48  ;;  %v789_v60 = vpop.f32.mrb[15].mxu0  ;;  %v848_v31 = vpop.f32.mrb[25].mxu1 }
 0x111   :  { %v553_v61 = vsel %vm496_vm2, %v536_v54, 0.0  ;;  %v379_v63 = vadd.f32 %v787_v55, %v1071_v50  ;;  %v790_v0 = vadd.f32 %v789_v60, %v788_v56  ;;  %v493_v36 = vpop.f32.mrb[26].mxu1 }
 0x112   :  { %v554_v1 = vadd.f32 %v553_v61, %v552_v58  ;;  %v849_v40 = vpop.f32.mrb[27].mxu1 }
 0x113   :  { %v1122_v2 = vadd.f32 %v466_v17, %v379_v63  ;;  %v382_v3 = vadd.f32 %v790_v0, %v1071_v50 }
 0x115   :  { %v508_v6 = vsel %vm496_vm2, %v1122_v2, 0.0  ;;  %v537_v7 = vmul.f32 %v1122_v2, %v1122_v2  ;;  %v1129_v8 = vadd.f32 %v469_v23, %v382_v3  ;;  %v791_v9 = vpop.f32.mrb[16].mxu0 }
 0x116   :  { %v509_v11 = vadd.f32 %v508_v6, %v507_v59  ;;  %v792_v12 = vpop.f32.mrb[17].mxu0 }
 0x117   :  { %v555_v14 = vsel %vm496_vm2, %v537_v7, 0.0  ;;  %v510_v16 = vsel %vm496_vm2, %v1129_v8, 0.0  ;;  %v538_v17 = vmul.f32 %v1129_v8, %v1129_v8  ;;  %v793_v18 = vadd.f32 %v792_v12, %v791_v9  ;;  %v794_v19 = vpop.f32.mrb[18].mxu0 }
 0x118   :  { %v556_v20 = vadd.f32 %v555_v14, %v554_v1  ;;  %v511_v22 = vadd.f32 %v510_v16, %v509_v11  ;;  %v795_v24 = vpop.f32.mrb[19].mxu0 }
 0x119   :  { %v557_v23 = vsel %vm496_vm2, %v538_v17, 0.0  ;;  %v387_v25 = vadd.f32 %v793_v18, %v1071_v50  ;;  %v796_v26 = vadd.f32 %v795_v24, %v794_v19 }
 0x11a   :  { %v558_v27 = vadd.f32 %v557_v23, %v556_v20 }
 0x11b   :  { %v1138_v28 = vadd.f32 %v474_v41, %v387_v25  ;;  %v390_v29 = vadd.f32 %v796_v26, %v1071_v50 }
 0x11d   :  { %v512_v32 = vsel %vm496_vm2, %v1138_v28, 0.0  ;;  %v539_v33 = vmul.f32 %v1138_v28, %v1138_v28  ;;  %v1145_v34 = vadd.f32 %v477_v47, %v390_v29  ;;  %v797_v35 = vpop.f32.mrb[20].mxu0 }
 0x11e   :  { %v513_v37 = vadd.f32 %v512_v32, %v511_v22  ;;  %v798_v38 = vpop.f32.mrb[21].mxu0 }
 0x11f   :  { %v559_v41 = vsel %vm496_vm2, %v539_v33, 0.0  ;;  %v514_v42 = vsel %vm496_vm2, %v1145_v34, 0.0  ;;  %v540_v43 = vmul.f32 %v1145_v34, %v1145_v34  ;;  %v799_v44 = vadd.f32 %v798_v38, %v797_v35  ;;  %v800_v46 = vpop.f32.mrb[22].mxu0 }
 0x120   :  { %v560_v48 = vadd.f32 %v559_v41, %v558_v27  ;;  %v515_v49 = vadd.f32 %v514_v42, %v513_v37  ;;  %v801_v51 = vpop.f32.mrb[23].mxu0 }
 0x121   :  { %v561_v47 = vsel %vm496_vm2, %v540_v43, 0.0  ;;  %v395_v52 = vadd.f32 %v799_v44, %v1071_v50  ;;  %v802_v53 = vadd.f32 %v801_v51, %v800_v46 }
 0x122   :  { %v562_v54 = vadd.f32 %v561_v47, %v560_v48 }
 0x123   :  { %v1154_v55 = vadd.f32 %v482_v4, %v395_v52  ;;  %v398_v56 = vadd.f32 %v802_v53, %v1071_v50 }
 0x125   :  { %v516_v58 = vsel %vm496_vm2, %v1154_v55, 0.0  ;;  %v541_v59 = vmul.f32 %v1154_v55, %v1154_v55  ;;  %v1161_v60 = vadd.f32 %v485_v10, %v398_v56  ;;  %v803_v61 = vpop.f32.mrb[24].mxu0 }
 0x126   :  { %v517_v63 = vadd.f32 %v516_v58, %v515_v49  ;;  %v804_v0 = vpop.f32.mrb[25].mxu0 }
 0x127   :  { %v563_v1 = vsel %vm496_vm2, %v541_v59, 0.0  ;;  %v518_v3 = vsel %vm496_vm2, %v1161_v60, 0.0  ;;  %v542_v4 = vmul.f32 %v1161_v60, %v1161_v60  ;;  %v805_v5 = vadd.f32 %v804_v0, %v803_v61  ;;  %v806_v6 = vpop.f32.mrb[26].mxu0 }
 0x128   :  { %v564_v7 = vadd.f32 %v563_v1, %v562_v54  ;;  %v519_v9 = vadd.f32 %v518_v3, %v517_v63  ;;  %v807_v11 = vpop.f32.mrb[27].mxu0  ;;  %v750_v3 = vld [vmem:[%s1259_s4] ss:$0 sm:$0xff] }
 0x129   :  { %v565_v12 = vsel %vm496_vm2, %v542_v4, 0.0  ;;  %v403_v10 = vadd.f32 %v805_v5, %v1071_v50 }
 0x12a   :  { %v566_v13 = vadd.f32 %v565_v12, %v564_v7 }
 0x12b   :  { %v491_v14 = vadd.f32 %v490_v30, %v403_v10 }
 0x12d   :  { %v521_v16 = vsel %vm520_vm3, %v491_v14, 0.0  ;;  %v543_v17 = vmul.f32 %v491_v14, %v491_v14 }
 0x12e   :  { %v522_v18 = vadd.f32 %v521_v16, %v519_v9 }
 0x12f   :  { %v567_v19 = vsel %vm520_vm3, %v543_v17, 0.0 }
 0x130   :  { %v523_v20 = vrot.slane %v522_v18, 4  ;;  %v568_v22 = vadd.f32 %v567_v19, %v566_v13 }
 0x132   :  { %v524_v24 = vadd.f32 %v523_v20, %v522_v18  ;;  %v569_v23 = vrot.slane %v568_v22, 4 }
 0x134   :  { %v525_v25 = vrot.slane %v524_v24, 2  ;;  %v570_v26 = vadd.f32 %v569_v23, %v568_v22 }
 0x136   :  { %v526_v27 = vadd.f32 %v525_v25, %v524_v24  ;;  %v571_v29 = vrot.slane %v570_v26, 2 }
 0x138   :  { %v527_v31 = vrot.slane %v526_v27, 1  ;;  %v572_v32 = vadd.f32 %v571_v29, %v570_v26 }
 0x13a   :  { %v528_v50 = vadd.f32 %v527_v31, %v526_v27  ;;  %v573_v33 = vrot.slane %v572_v32, 1 }
 0x13c   :  { %v530_v35 = vmul.f32 0.010204081, %v528_v50  ;;  %v574_v30 = vadd.f32 %v573_v33, %v572_v32 }
 0x13e   :  { %v575_v36 = vmul.f32 0.010204081, %v574_v30  ;;  %v576_v37 = vmul.f32 %v530_v35, %v530_v35  ;;  %v578_v38 = vsub.f32 %v1074_v57, %v530_v35  ;;  %v579_v40 = vsub.f32 %v1079_v62, %v530_v35 }
 0x13f   :  { %v580_v41 = vsub.f32 %v1090_v15, %v530_v35  ;;  %v581_v42 = vsub.f32 %v1097_v21, %v530_v35  ;;  %v582_v43 = vsub.f32 %v1106_v39, %v530_v35  ;;  %v583_v44 = vsub.f32 %v1113_v45, %v530_v35 }
 0x140   :  { %v577_v46 = vsub.f32 %v575_v36, %v576_v37  ;;  %v584_v48 = vsub.f32 %v1122_v2, %v530_v35  ;;  %v585_v49 = vsub.f32 %v1129_v8, %v530_v35  ;;  %v586_v51 = vsub.f32 %v1138_v28, %v530_v35  ;;  %v749_v2 = vld [vmem:[%s1258_s3] ss:$0 sm:$0xff] }
 0x141   :  { %v587_v47 = vsub.f32 %v1145_v34, %v530_v35  ;;  %v588_v57 = vsub.f32 %v1154_v55, %v530_v35  ;;  %v589_v62 = vsub.f32 %v1161_v60, %v530_v35  ;;  %v590_v15 = vsub.f32 %v491_v14, %v530_v35 }
 0x142   :  { %v591_v52 = vadd.f32 1e-05, %v577_v46 }
 0x144   :  { %897 = vrsqrt.f32 %v591_v52 }
 0x14e   :  { %v898_v21 = vpop.eup %897 }
 0x14f   :  { %v593_v39 = vmul.f32 %v898_v21, %v578_v38  ;;  %v594_v53 = vmul.f32 %v898_v21, %v579_v40  ;;  %v595_v45 = vmul.f32 %v898_v21, %v580_v41  ;;  %v596_v54 = vmul.f32 %v898_v21, %v581_v42 }
 0x150   :  { %v597_v8 = vmul.f32 %v898_v21, %v582_v43  ;;  %v598_v28 = vmul.f32 %v898_v21, %v583_v44  ;;  %v599_v56 = vmul.f32 %v898_v21, %v584_v48  ;;  %v600_v34 = vmul.f32 %v898_v21, %v585_v49 }
 0x151   :  { %v601_v58 = vmul.f32 %v898_v21, %v586_v51  ;;  %v602_v55 = vmul.f32 %v898_v21, %v587_v47  ;;  %v603_v59 = vmul.f32 %v898_v21, %v588_v57  ;;  %v604_v60 = vmul.f32 %v898_v21, %v589_v62 }
 0x152   :  { %v605_v61 = vmul.f32 %v898_v21, %v590_v15  ;;  %v613_v63 = vmul.f32 %v749_v2, %v593_v39  ;;  %v614_v0 = vmul.f32 %v749_v2, %v594_v53  ;;  %v615_v1 = vmul.f32 %v749_v2, %v595_v45 }
 0x153   :  { %v616_v4 = vmul.f32 %v749_v2, %v596_v54  ;;  %v617_v5 = vmul.f32 %v749_v2, %v597_v8  ;;  %v618_v6 = vmul.f32 %v749_v2, %v598_v28  ;;  %v619_v7 = vmul.f32 %v749_v2, %v599_v56 }
 0x154   :  { %v620_v9 = vmul.f32 %v749_v2, %v600_v34  ;;  %v621_v11 = vmul.f32 %v749_v2, %v601_v58  ;;  %v622_v12 = vmul.f32 %v749_v2, %v602_v55  ;;  %v623_v10 = vmul.f32 %v749_v2, %v603_v59 }
 0x155   :  { %v624_v13 = vmul.f32 %v749_v2, %v604_v60  ;;  %v625_v14 = vmul.f32 %v749_v2, %v605_v61  ;;  %v633_v16 = vadd.f32 %v750_v3, %v613_v63  ;;  %v634_v17 = vadd.f32 %v750_v3, %v614_v0 }
 0x156   :  { %v635_v18 = vadd.f32 %v750_v3, %v615_v1  ;;  %v636_v19 = vadd.f32 %v750_v3, %v616_v4  ;;  %v637_v20 = vadd.f32 %v750_v3, %v617_v5  ;;  %v638_v22 = vadd.f32 %v750_v3, %v618_v6 }
 0x157   :  { %v639_v24 = vadd.f32 %v750_v3, %v619_v7  ;;  %v640_v23 = vadd.f32 %v750_v3, %v620_v9  ;;  %v641_v25 = vadd.f32 %v750_v3, %v621_v11  ;;  %v642_v26 = vadd.f32 %v750_v3, %v622_v12 }
 0x158   :  { %v643_v27 = vadd.f32 %v750_v3, %v623_v10  ;;  %v644_v29 = vadd.f32 %v750_v3, %v624_v13  ;;  %v645_v31 = vadd.f32 %v750_v3, %v625_v14  ;;  %vm646_vm4 = vcmp.gt.f32.partialorder %v633_v16, 0.0 }
 0x159   :  { %vm647_vm5 = vcmp.gt.f32.partialorder %v634_v17, 0.0  ;;  %vm648_vm6 = vcmp.gt.f32.partialorder %v635_v18, 0.0  ;;  %vm649_vm7 = vcmp.gt.f32.partialorder %v636_v19, 0.0  ;;  %vm650_vm8 = vcmp.gt.f32.partialorder %v637_v20, 0.0 }
 0x15a   :  { %vm651_vm9 = vcmp.gt.f32.partialorder %v638_v22, 0.0  ;;  %vm652_vm10 = vcmp.gt.f32.partialorder %v639_v24, 0.0  ;;  %vm653_vm11 = vcmp.gt.f32.partialorder %v640_v23, 0.0  ;;  %vm654_vm12 = vcmp.gt.f32.partialorder %v641_v25, 0.0 }
 0x15b   :  { %vm655_vm13 = vcmp.gt.f32.partialorder %v642_v26, 0.0  ;;  %vm656_vm14 = vcmp.gt.f32.partialorder %v643_v27, 0.0  ;;  %vm657_vm15 = vcmp.gt.f32.partialorder %v644_v29, 0.0  ;;  %vm658_vm0 = vcmp.gt.f32.partialorder %v645_v31, 0.0 }
 0x15c   :  { %v659_v32 = vmul.f32 0.2, %v633_v16  ;;  %v660_v50 = vmul.f32 0.2, %v634_v17  ;;  %v661_v33 = vmul.f32 0.2, %v635_v18 }
 0x15d   :  { %v662_v35 = vmul.f32 0.2, %v636_v19  ;;  %v663_v30 = vmul.f32 0.2, %v637_v20  ;;  %v664_v36 = vmul.f32 0.2, %v638_v22 }
 0x15e   :  { %v665_v37 = vmul.f32 0.2, %v639_v24  ;;  %v666_v38 = vmul.f32 0.2, %v640_v23  ;;  %v667_v40 = vmul.f32 0.2, %v641_v25  ;;  %v672_v41 = vsel %vm646_vm4, %v633_v16, %v659_v32 }
 0x15f   :  { %v668_v42 = vmul.f32 0.2, %v642_v26  ;;  %v669_v43 = vmul.f32 0.2, %v643_v27  ;;  %v670_v44 = vmul.f32 0.2, %v644_v29  ;;  %v673_v46 = vsel %vm647_vm5, %v634_v17, %v660_v50 }
 0x160   :  { %685 = vst.msk [vmem:[%s1260_s5] sm:$0xff] %vm496_vm2, %v672_v41  ;;  %v671_v48 = vmul.f32 0.2, %v645_v31  ;;  %v674_v49 = vsel %vm648_vm6, %v635_v18, %v661_v33  ;;  %v675_v51 = vsel %vm649_vm7, %v636_v19, %v662_v35  ;;  %v676_v47 = vsel %vm650_vm8, %v637_v20, %v663_v30  ;;  %686 = vst.msk [vmem:[%s1260_s5 + $0x8] sm:$0xff] %vm496_vm2, %v673_v46 }
 0x161   :  { %v677_v57 = vsel %vm651_vm9, %v638_v22, %v664_v36  ;;  %v678_v62 = vsel %vm652_vm10, %v639_v24, %v665_v37  ;;  %v679_v15 = vsel %vm653_vm11, %v640_v23, %v666_v38  ;;  %v680_v52 = vsel %vm654_vm12, %v641_v25, %v667_v40  ;;  %687 = vst.msk [vmem:[%s1260_s5 + $0x10] sm:$0xff] %vm496_vm2, %v674_v49 }
 0x162   :  { %688 = vst.msk [vmem:[%s1260_s5 + $0x18] sm:$0xff] %vm496_vm2, %v675_v51  ;;  %689 = vst.msk [vmem:[%s1260_s5 + $0x20] sm:$0xff] %vm496_vm2, %v676_v47  ;;  %v681_v21 = vsel %vm655_vm13, %v642_v26, %v668_v42  ;;  %v682_v39 = vsel %vm656_vm14, %v643_v27, %v669_v43  ;;  %v683_v53 = vsel %vm657_vm15, %v644_v29, %v670_v44 }
 0x163   :  { %v684_v45 = vsel %vm658_vm0, %v645_v31, %v671_v48  ;;  %690 = vst.msk [vmem:[%s1260_s5 + $0x28] sm:$0xff] %vm496_vm2, %v677_v57  ;;  %691 = vst.msk [vmem:[%s1260_s5 + $0x30] sm:$0xff] %vm496_vm2, %v678_v62 }
 0x164   :  { %692 = vst.msk [vmem:[%s1260_s5 + $0x38] sm:$0xff] %vm496_vm2, %v679_v15  ;;  %693 = vst.msk [vmem:[%s1260_s5 + $0x40] sm:$0xff] %vm496_vm2, %v680_v52 }
 0x165   :  { %694 = vst.msk [vmem:[%s1260_s5 + $0x48] sm:$0xff] %vm496_vm2, %v681_v21  ;;  %695 = vst.msk [vmem:[%s1260_s5 + $0x50] sm:$0xff] %vm496_vm2, %v682_v39 }
 0x166   :  { %696 = vst.msk [vmem:[%s1260_s5 + $0x58] sm:$0xff] %vm496_vm2, %v683_v53 }
 0x167   :  { %697 = vst.msk [vmem:[%s1260_s5 + $0x60] sm:$0x3] %vm520_vm3, %v684_v45 }

// kernel: vae_forward.9
= control target key start
LH: loop header
LB: loop body
LE: loop exit
PB: predicated region body
PF: predicated region fallthrough
CT: control target
= control target key end

     0   :  { %vm378_vm0 = vcmask 523264   ;;  %s977_s1 = inlined_call_operand.vmem [shape: bf16[576,128], index: 1, kind: input, shape index: {}]   ;;  %s978_s0 = inlined_call_operand.vmem [shape: bf16[32,576], index: 0, kind: input, shape index: {}]   ;;  %s979_s2 = inlined_call_operand.vmem [shape: f32[1,128], index: 2, kind: input, shape index: {}]   ;;  %s980_s3 = inlined_call_operand.vmem [shape: f32[1,128], index: 3, kind: input, shape index: {}]   ;;  %s981_s4 = inlined_call_operand.vmem [shape: f32[1,128], index: 4, kind: input, shape index: {}]   ;;  %s982_s5 = inlined_call_operand.vmem [shape: f32[32,128], index: 5, kind: output, shape index: {}]  }
   0x1   :  { %v736_v0 = vld [vmem:[%s977_s1 + $0x40] sm:$0xff]   ;;  %v740_v4 = vld [vmem:[%s977_s1 + $0x48] sm:$0xff]   ;;  %v744_v8 = vld [vmem:[%s977_s1 + $0x50] sm:$0xff]  }
   0x2   :  { %v737_v1 = vld [vmem:[%s977_s1] sm:$0xff]   ;;  %662 = vmatprep.subr.bf16.mxu0 %v736_v0  ;;  %v741_v5 = vld [vmem:[%s977_s1 + $0x8] sm:$0xff]   ;;  %v745_v9 = vld [vmem:[%s977_s1 + $0x10] sm:$0xff]  }
   0x3   :  { %v738_v2 = vld [vmem:[%s977_s1 + $0xc0] sm:$0xff]   ;;  %663 = vmatpush3.bf16.msra.mxu0 %v737_v1  ;;  %v742_v6 = vld [vmem:[%s977_s1 + $0xc8] sm:$0xff]   ;;  %v746_v10 = vld [vmem:[%s977_s1 + $0xd0] sm:$0xff]  }
   0x4   :  { %v739_v3 = vld [vmem:[%s977_s1 + $0x80] sm:$0xff]   ;;  %690 = vmatprep.subr.bf16.mxu1 %v738_v2  ;;  %664 = vmatprep.subr.bf16.mxu0 %v740_v4  ;;  %v743_v7 = vld [vmem:[%s977_s1 + $0x88] sm:$0xff]   ;;  %v747_v11 = vld [vmem:[%s977_s1 + $0x90] sm:$0xff]  }
   0x5   :  { %691 = vmatpush3.bf16.msra.mxu1 %v739_v3  ;;  %v748_v12 = vld [vmem:[%s977_s1 + $0x58] sm:$0xff]   ;;  %v752_v16 = vld [vmem:[%s977_s1 + $0x60] sm:$0xff]   ;;  %v756_v20 = vld [vmem:[%s977_s1 + $0x68] sm:$0xff]  }
   0x6   :  { %692 = vmatprep.subr.bf16.mxu1 %v742_v6  ;;  %v749_v13 = vld [vmem:[%s977_s1 + $0x18] sm:$0xff]   ;;  %v753_v17 = vld [vmem:[%s977_s1 + $0x20] sm:$0xff]   ;;  %v757_v21 = vld [vmem:[%s977_s1 + $0x28] sm:$0xff]  }
   0x7   :  { %665 = vmatpush3.bf16.msra.mxu0 %v741_v5  ;;  %v750_v14 = vld [vmem:[%s977_s1 + $0xd8] sm:$0xff]   ;;  %v754_v18 = vld [vmem:[%s977_s1 + $0xe0] sm:$0xff]   ;;  %v758_v22 = vld [vmem:[%s977_s1 + $0xe8] sm:$0xff]  }
   0x8   :  { %666 = vmatprep.subr.bf16.mxu0 %v744_v8  ;;  %v751_v15 = vld [vmem:[%s977_s1 + $0x98] sm:$0xff]   ;;  %v755_v19 = vld [vmem:[%s977_s1 + $0xa0] sm:$0xff]   ;;  %v759_v23 = vld [vmem:[%s977_s1 + $0xa8] sm:$0xff]  }
   0x9   :  { %693 = vmatpush3.bf16.msra.mxu1 %v743_v7  ;;  %v760_v24 = vld [vmem:[%s977_s1 + $0x70] sm:$0xff]   ;;  %v764_v28 = vld [vmem:[%s977_s1 + $0x78] sm:$0xff]   ;;  %v771_v34 = vld [vmem:[%s977_s1 + $0x100] sm:$0xff]  }
   0xa   :  { %694 = vmatprep.subr.bf16.mxu1 %v746_v10  ;;  %v761_v25 = vld [vmem:[%s977_s1 + $0x30] sm:$0xff]   ;;  %v765_v29 = vld [vmem:[%s977_s1 + $0x38] sm:$0xff]   ;;  %v774_v36 = vld [vmem:[%s978_s0 + $0xc] ss:$20 sps:$4 sm:$0xff]  }
   0xb   :  { %667 = vmatpush3.bf16.msra.mxu0 %v745_v9  ;;  %v762_v26 = vld [vmem:[%s977_s1 + $0xf0] sm:$0xff]   ;;  %v766_v30 = vld [vmem:[%s977_s1 + $0xf8] sm:$0xff]   ;;  %v775_v37 = vld [vmem:[%s977_s1 + $0x108] sm:$0xff]   ;;  %466 = vmatprep.mubr.bf16.mxu1 %v774_v36 }
   0xc   :  { %668 = vmatprep.subr.bf16.mxu0 %v748_v12  ;;  %v763_v27 = vld [vmem:[%s977_s1 + $0xb0] sm:$0xff]   ;;  %v769_v32 = vld [vmem:[%s978_s0 + $0x4] ss:$20 sps:$4 sm:$0xff]   ;;  %v772_v35 = vld [vmem:[%s978_s0 + $0x8] ss:$20 sps:$4 sm:$0xff]  }
   0xd   :  { %695 = vmatpush3.bf16.msra.mxu1 %v747_v11  ;;  %v767_v31 = vld [vmem:[%s978_s0] ss:$20 sps:$4 sm:$0xff]   ;;  %v770_v33 = vld [vmem:[%s977_s1 + $0xb8] sm:$0xff]   ;;  %417 = vmatprep.mubr.bf16.mxu0 %v769_v32  ;;  %v782_v42 = vld [vmem:[%s978_s0 + $0x30] ss:$20 sps:$4 sm:$0xff]  }
   0xe   :  { %696 = vmatprep.subr.bf16.mxu1 %v750_v14  ;;  %v776_v38 = vld [vmem:[%s978_s0 + $0x2c] ss:$20 sps:$4 sm:$0xff]   ;;  %v778_v39 = vld [vmem:[%s978_s0 + $0x28] ss:$20 sps:$4 sm:$0xff]   ;;  %v779_v40 = vld [vmem:[%s977_s1 + $0x110] sm:$0xff]  }
   0xf   :  { %669 = vmatpush3.bf16.msra.mxu0 %v749_v13  ;;  %v780_v41 = vld [vmem:[%s978_s0 + $0x34] ss:$20 sps:$4 sm:$0xff]   ;;  %v783_v43 = vld [vmem:[%s977_s1 + $0x118] sm:$0xff]   ;;  %v784_v44 = vld [vmem:[%s978_s0 + $0x10] ss:$20 sps:$4 sm:$0xff]  }
  0x10   :  { %670 = vmatprep.subr.bf16.mxu0 %v752_v16  ;;  %v785_v45 = vld [vmem:[%s978_s0 + $0x38] ss:$20 sps:$4 sm:$0xff]   ;;  %v611_v47 = vld [vmem:[%s979_s2] ss:$0 sm:$0xff] }
  0x11   :  { %697 = vmatpush3.bf16.msra.mxu1 %v751_v15 }
  0x12   :  { %698 = vmatprep.subr.bf16.mxu1 %v754_v18 }
  0x13   :  { %671 = vmatpush3.bf16.msra.mxu0 %v753_v17 }
  0x14   :  { %672 = vmatprep.subr.bf16.mxu0 %v756_v20 }
  0x15   :  { %699 = vmatpush3.bf16.msra.mxu1 %v755_v19 }
  0x16   :  { %700 = vmatprep.subr.bf16.mxu1 %v758_v22 }
  0x17   :  { %673 = vmatpush3.bf16.msra.mxu0 %v757_v21 }
  0x18   :  { %674 = vmatprep.subr.bf16.mxu0 %v760_v24 }
  0x19   :  { %701 = vmatpush3.bf16.msra.mxu1 %v759_v23 }
  0x1a   :  { %702 = vmatprep.subr.bf16.mxu1 %v762_v26 }
  0x1b   :  { %675 = vmatpush3.bf16.msra.mxu0 %v761_v25 }
  0x1c   :  { %676 = vmatprep.subr.bf16.mxu0 %v764_v28 }
  0x1d   :  { %703 = vmatpush3.bf16.msra.mxu1 %v763_v27 }
  0x1e   :  { %704 = vmatprep.subr.bf16.mxu1 %v766_v30 }
  0x1f   :  { %677 = vmatpush3.bf16.msra.mxu0 %v765_v29 }
  0x20   :  { %724 = vmatprep.subr.bf16.mxu0 %v771_v34 }
  0x21   :  { %705 = vmatpush3.bf16.msra.mxu1 %v770_v33 }
  0x22   :  { %418 = vmatmul.mubr.bf16.vlgmr.msra.gmra.mrb[0].mxu0 %v767_v31 }
  0x23   :  { %725 = vmatpush3.bf16.msra.mxu0 %v771_v34  ;;  %425 = vmatprep.mubr.bf16.mxu0 %v776_v38 }
  0x24   :  { %467 = vmatmul.mubr.bf16.vlgmr.msra.gmra.mrb[0].mxu1 %v772_v35  ;;  %726 = vmatprep.subr.bf16.mxu0 %v775_v37 }
  0x25   :  { %474 = vmatprep.mubr.bf16.mxu1 %v780_v41 }
  0x27   :  { %727 = vmatpush3.bf16.msra.mxu0 %v775_v37 }
  0x28   :  { %728 = vmatprep.subr.bf16.mxu0 %v779_v40 }
  0x2a   :  { %426 = vmatmul.mubr.bf16.gmra.mrb[4].mxu0 %v778_v39 }
  0x2b   :  { %732 = vmatprep.mubr.msk.bf16.mxu0 %vm378_vm0, %v784_v44  ;;  %729 = vmatpush3.bf16.msra.mxu0 %v779_v40 }
  0x2c   :  { %475 = vmatmul.mubr.bf16.gmra.mrb[4].mxu1 %v782_v42  ;;  %730 = vmatprep.subr.bf16.mxu0 %v783_v43 }
  0x2f   :  { %731 = vmatpush3.bf16.msra.mxu0 %v783_v43 }
  0x32   :  { %733 = vmatmul.mubr.msk.bf16.vlgmr.msra.gmra.mrb[8].mxu0 %vm378_vm0, %v785_v45 }
  0xf5   :  { %v678_v46 = vpop.f32.mrb[0].mxu0 }
  0xf6   :  { %v679_v48 = vpop.f32.mrb[1].mxu0 }
  0xf7   :  { %v680_v49 = vadd.f32 %v679_v48, %v678_v46  ;;  %v681_v50 = vpop.f32.mrb[2].mxu0  ;;  %v706_v51 = vpop.f32.mrb[0].mxu1 }
  0xf8   :  { %v682_v52 = vpop.f32.mrb[3].mxu0  ;;  %v707_v55 = vpop.f32.mrb[1].mxu1 }
  0xf9   :  { %v420_v53 = vadd.f32 %v680_v49, %v611_v47  ;;  %v683_v54 = vadd.f32 %v682_v52, %v681_v50  ;;  %v708_v56 = vadd.f32 %v707_v55, %v706_v51  ;;  %v709_v57 = vpop.f32.mrb[2].mxu1  ;;  %v660_v55 = vld [vmem:[%s980_s3] ss:$0 sm:$0xff] }
  0xfa   :  { %v710_v59 = vpop.f32.mrb[3].mxu1 }
  0xfb   :  { %v423_v58 = vadd.f32 %v683_v54, %v611_v47  ;;  %v711_v60 = vadd.f32 %v710_v59, %v709_v57  ;;  %v469_v61 = vadd.f32 %v708_v56, %v420_v53 }
  0xfd   :  { %v684_v62 = vpop.f32.mrb[4].mxu0  ;;  %v472_v0 = vadd.f32 %v711_v60, %v423_v58  ;;  %v661_v60 = vld [vmem:[%s981_s4] ss:$0 sm:$0xff] }
  0xfe   :  { %v685_v63 = vpop.f32.mrb[5].mxu0 }
  0xff   :  { %v686_v1 = vadd.f32 %v685_v63, %v684_v62  ;;  %v687_v2 = vpop.f32.mrb[6].mxu0  ;;  %v712_v3 = vpop.f32.mrb[4].mxu1 }
 0x100   :  { %v688_v4 = vpop.f32.mrb[7].mxu0  ;;  %v713_v7 = vpop.f32.mrb[5].mxu1 }
 0x101   :  { %v428_v5 = vadd.f32 %v686_v1, %v611_v47  ;;  %v689_v6 = vadd.f32 %v688_v4, %v687_v2  ;;  %v714_v8 = vadd.f32 %v713_v7, %v712_v3  ;;  %v715_v9 = vpop.f32.mrb[6].mxu1 }
 0x102   :  { %v716_v11 = vpop.f32.mrb[7].mxu1 }
 0x103   :  { %v431_v10 = vadd.f32 %v689_v6, %v611_v47  ;;  %v717_v12 = vadd.f32 %v716_v11, %v715_v9  ;;  %v477_v13 = vadd.f32 %v714_v8, %v428_v5 }
 0x105   :  { %v734_v14 = vpop.f32.mrb[8].mxu0  ;;  %v480_v15 = vadd.f32 %v717_v12, %v431_v10 }
 0x106   :  { %v526_v16 = vadd.f32 %v734_v14, %v477_v13  ;;  %v517_v17 = vpop.f32.mrb[9].mxu0 }
 0x107   :  { %v518_v18 = vadd.f32 %v517_v17, %v469_v61  ;;  %v735_v19 = vpop.f32.mrb[10].mxu0 }
 0x108   :  { %v529_v20 = vadd.f32 %v735_v19, %v480_v15  ;;  %v520_v21 = vpop.f32.mrb[11].mxu0  ;;  %v545_v26 = vmul.f32 %v526_v16, %v526_v16 }
 0x109   :  { %v521_v22 = vadd.f32 %v520_v21, %v472_v0  ;;  %v543_v23 = vmul.f32 %v518_v18, %v518_v18 }
 0x10a   :  { %v546_v29 = vmul.f32 %v529_v20, %v529_v20 }
 0x10b   :  { %v532_v24 = vadd.f32 %v521_v22, %v518_v18  ;;  %v544_v25 = vmul.f32 %v521_v22, %v521_v22 }
 0x10d   :  { %v533_v27 = vadd.f32 %v532_v24, %v526_v16  ;;  %v547_v28 = vadd.f32 %v544_v25, %v543_v23 }
 0x10f   :  { %v534_v30 = vadd.f32 %v533_v27, %v529_v20  ;;  %v548_v31 = vadd.f32 %v547_v28, %v545_v26 }
 0x111   :  { %v535_v32 = vrot.slane %v534_v30, 4  ;;  %v549_v33 = vadd.f32 %v548_v31, %v546_v29 }
 0x113   :  { %v536_v34 = vadd.f32 %v535_v32, %v534_v30  ;;  %v550_v35 = vrot.slane %v549_v33, 4 }
 0x115   :  { %v537_v36 = vrot.slane %v536_v34, 2  ;;  %v551_v37 = vadd.f32 %v550_v35, %v549_v33 }
 0x117   :  { %v538_v38 = vadd.f32 %v537_v36, %v536_v34  ;;  %v552_v39 = vrot.slane %v551_v37, 2 }
 0x119   :  { %v539_v40 = vrot.slane %v538_v38, 1  ;;  %v553_v41 = vadd.f32 %v552_v39, %v551_v37 }
 0x11b   :  { %v540_v42 = vadd.f32 %v539_v40, %v538_v38  ;;  %v554_v43 = vrot.slane %v553_v41, 1 }
 0x11d   :  { %v542_v44 = vmul.f32 0.03125, %v540_v42  ;;  %v555_v45 = vadd.f32 %v554_v43, %v553_v41 }
 0x11f   :  { %v556_v46 = vmul.f32 0.03125, %v555_v45  ;;  %v557_v47 = vmul.f32 %v542_v44, %v542_v44  ;;  %v559_v48 = vsub.f32 %v518_v18, %v542_v44  ;;  %v560_v49 = vsub.f32 %v521_v22, %v542_v44 }
 0x120   :  { %v561_v50 = vsub.f32 %v526_v16, %v542_v44  ;;  %v562_v51 = vsub.f32 %v529_v20, %v542_v44 }
 0x121   :  { %v558_v52 = vsub.f32 %v556_v46, %v557_v47 }
 0x123   :  { %v563_v53 = vadd.f32 1e-05, %v558_v52 }
 0x125   :  { %786 = vrsqrt.f32 %v563_v53 }
 0x12f   :  { %v787_v54 = vpop.eup %786 }
 0x130   :  { %v565_v56 = vmul.f32 %v787_v54, %v559_v48  ;;  %v566_v57 = vmul.f32 %v787_v54, %v560_v49  ;;  %v567_v58 = vmul.f32 %v787_v54, %v561_v50  ;;  %v568_v59 = vmul.f32 %v787_v54, %v562_v51 }
 0x132   :  { %v576_v61 = vmul.f32 %v660_v55, %v565_v56  ;;  %v577_v62 = vmul.f32 %v660_v55, %v566_v57  ;;  %v578_v63 = vmul.f32 %v660_v55, %v567_v58  ;;  %v579_v0 = vmul.f32 %v660_v55, %v568_v59 }
 0x134   :  { %v587_v1 = vadd.f32 %v661_v60, %v576_v61  ;;  %v588_v2 = vadd.f32 %v661_v60, %v577_v62  ;;  %v589_v3 = vadd.f32 %v661_v60, %v578_v63  ;;  %v590_v4 = vadd.f32 %v661_v60, %v579_v0 }
 0x136   :  { %vm591_vm1 = vcmp.gt.f32.partialorder %v587_v1, 0.0  ;;  %vm592_vm2 = vcmp.gt.f32.partialorder %v588_v2, 0.0  ;;  %vm593_vm3 = vcmp.gt.f32.partialorder %v589_v3, 0.0  ;;  %vm594_vm4 = vcmp.gt.f32.partialorder %v590_v4, 0.0 }
 0x137   :  { %v595_v5 = vmul.f32 0.2, %v587_v1  ;;  %v596_v6 = vmul.f32 0.2, %v588_v2  ;;  %v597_v7 = vmul.f32 0.2, %v589_v3 }
 0x138   :  { %v598_v8 = vmul.f32 0.2, %v590_v4 }
 0x139   :  { %v599_v9 = vsel %vm591_vm1, %v587_v1, %v595_v5  ;;  %v600_v10 = vsel %vm592_vm2, %v588_v2, %v596_v6  ;;  %v601_v11 = vsel %vm593_vm3, %v589_v3, %v597_v7 }
 0x13a   :  { %v602_v12 = vsel %vm594_vm4, %v590_v4, %v598_v8  ;;  %603 = vst [vmem:[%s982_s5] sm:$0xff] %v599_v9  ;;  %604 = vst [vmem:[%s982_s5 + $0x8] sm:$0xff] %v600_v10 }
 0x13b   :  { %605 = vst [vmem:[%s982_s5 + $0x10] sm:$0xff] %v601_v11  ;;  %606 = vst [vmem:[%s982_s5 + $0x18] sm:$0xff] %v602_v12 }

// kernel: vae_forward.10
= control target key start
LH: loop header
LB: loop body
LE: loop exit
PB: predicated region body
PF: predicated region fallthrough
CT: control target
= control target key end

     0   :  { %14 = vsyncpa [#allocation3], 0  ;;  %v300_v28 = vlaneseq  ;;  %v2667_v36 = vmov 1966171168   ;;  %s3260_s0 = inlined_call_operand.vmem [shape: bf16[2,2048], index: 0, kind: input, shape index: {}]   ;;  %s3261_s1 = inlined_call_operand.vmem [shape: bf16[2048,32], index: 1, kind: input, shape index: {}]   ;;  %s3262_s2 = inlined_call_operand.vmem [shape: f32[1,32], index: 2, kind: input, shape index: {}]   ;;  %s3263_s3 = inlined_call_operand.vmem [shape: f32[2,16], index: 3, kind: input, shape index: {}]   ;;  %s3264_s4 = inlined_call_operand.vmem [shape: bf16[16,2048], index: 4, kind: input, shape index: {}]   ;;  %s3265_s5 = inlined_call_operand.vmem [shape: f32[1,2048], index: 5, kind: input, shape index: {}]   ;;  %s3266_s6 = inlined_call_operand.hbm [shape: f32[2,16], index: 6, kind: output, shape index: {0}]   ;;  %s3267_s7 = inlined_call_operand.hbm [shape: f32[2,16], index: 7, kind: output, shape index: {1}]   ;;  %s3268_s8 = inlined_call_operand.vmem [shape: f32[2,2048], index: 8, kind: output, shape index: {2}]  }
   0x1   :  { %v2487_v0 = vld [vmem:[%s3261_s1 + $0x40] sm:$0xff]   ;;  %v2491_v4 = vld [vmem:[%s3261_s1 + $0x48] sm:$0xff]   ;;  %v2495_v8 = vld [vmem:[%s3261_s1 + $0x50] sm:$0xff]   ;;  %v298_v37 = vunpack.c.l.s4 %v2667_v36 }
   0x2   :  { %v2488_v1 = vld [vmem:[%s3261_s1 + $0xc0] sm:$0xff]   ;;  %2305 = vmatprep.subr.bf16.mxu0 %v2487_v0  ;;  %v2492_v5 = vld [vmem:[%s3261_s1 + $0xc8] sm:$0xff]   ;;  %v2496_v9 = vld [vmem:[%s3261_s1 + $0xd0] sm:$0xff]   ;;  %v2814_v33 = vshrl.u32 %v300_v28, 7 }
   0x3   :  { %v2489_v2 = vld [vmem:[%s3261_s1] sm:$0xff]   ;;  %2327 = vmatprep.subr.bf16.mxu1 %v2488_v1  ;;  %v2493_v6 = vld [vmem:[%s3261_s1 + $0x8] sm:$0xff]   ;;  %v2497_v10 = vld [vmem:[%s3261_s1 + $0x10] sm:$0xff]   ;;  %v299_v40 = vunpack.c.0.s8 %v298_v37 }
   0x4   :  { %v2490_v3 = vld [vmem:[%s3261_s1 + $0x80] sm:$0xff]   ;;  %2306 = vmatpush3.bf16.msra.mxu0 %v2489_v2  ;;  %v2494_v7 = vld [vmem:[%s3261_s1 + $0x88] sm:$0xff]   ;;  %v2498_v11 = vld [vmem:[%s3261_s1 + $0x90] sm:$0xff]  }
   0x5   :  { %2328 = vmatpush3.bf16.msra.mxu1 %v2490_v3  ;;  %2307 = vmatprep.subr.bf16.mxu0 %v2491_v4  ;;  %v2499_v12 = vld [vmem:[%s3261_s1 + $0x58] sm:$0xff]   ;;  %v2503_v16 = vld [vmem:[%s3261_s1 + $0x60] sm:$0xff]   ;;  %v2507_v20 = vld [vmem:[%s3261_s1 + $0x68] sm:$0xff]   ;;  %v2826_v41 = vsub.s32 %v299_v40, %v2814_v33 }
   0x6   :  { %2329 = vmatprep.subr.bf16.mxu1 %v2492_v5  ;;  %v2500_v13 = vld [vmem:[%s3261_s1 + $0xd8] sm:$0xff]   ;;  %v2504_v17 = vld [vmem:[%s3261_s1 + $0xe0] sm:$0xff]   ;;  %v2508_v21 = vld [vmem:[%s3261_s1 + $0xe8] sm:$0xff]  }
   0x7   :  { %v2501_v14 = vld [vmem:[%s3261_s1 + $0x18] sm:$0xff]   ;;  %v2505_v18 = vld [vmem:[%s3261_s1 + $0x20] sm:$0xff]   ;;  %v2509_v22 = vld [vmem:[%s3261_s1 + $0x28] sm:$0xff]  }
   0x8   :  { %2308 = vmatpush3.bf16.msra.mxu0 %v2493_v6  ;;  %v2502_v15 = vld [vmem:[%s3261_s1 + $0x98] sm:$0xff]   ;;  %v2506_v19 = vld [vmem:[%s3261_s1 + $0xa0] sm:$0xff]   ;;  %v2510_v23 = vld [vmem:[%s3261_s1 + $0xa8] sm:$0xff]  }
   0x9   :  { %2330 = vmatpush3.bf16.msra.mxu1 %v2494_v7  ;;  %2309 = vmatprep.subr.bf16.mxu0 %v2495_v8  ;;  %v2511_v24 = vld [vmem:[%s3261_s1 + $0x70] sm:$0xff]   ;;  %v2515_v29 = vld [vmem:[%s3261_s1 + $0x78] sm:$0xff]   ;;  %v29_v34 = vld [vmem:[%s3260_s0] sm:$0xff] }
   0xa   :  { %2331 = vmatprep.subr.bf16.mxu1 %v2496_v9  ;;  %v2512_v25 = vld [vmem:[%s3261_s1 + $0xf0] sm:$0xff]   ;;  %v2516_v30 = vld [vmem:[%s3261_s1 + $0xf8] sm:$0xff]   ;;  %v2520_v35 = vld [vmem:[%s3261_s1 + $0x140] sm:$0xff]   ;;  %v296_v39 = vcombine.high %v29_v34, %v29_v34  ;;  %v303_v42 = vrot.slane %v29_v34, %v2826_v41 }
   0xb   :  { %v2513_v26 = vld [vmem:[%s3261_s1 + $0x30] sm:$0xff]   ;;  %v2517_v31 = vld [vmem:[%s3261_s1 + $0x38] sm:$0xff]   ;;  %v2521_v38 = vld [vmem:[%s3261_s1 + $0x1c0] sm:$0xff]  }
   0xc   :  { %2310 = vmatpush3.bf16.msra.mxu0 %v2497_v10  ;;  %v2514_v27 = vld [vmem:[%s3261_s1 + $0xb0] sm:$0xff]   ;;  %v2518_v32 = vld [vmem:[%s3261_s1 + $0xb8] sm:$0xff]   ;;  %v2830_v43 = vrot.slane %v296_v39, %v2826_v41  ;;  %v311_v44 = vcombine.high %v303_v42, %v303_v42  ;;  %v319_v45 = vrot.slane %v303_v42, %v2826_v41  ;;  %v2522_v48 = vld [vmem:[%s3261_s1 + $0x100] sm:$0xff]  }
   0xd   :  { %2332 = vmatpush3.bf16.msra.mxu1 %v2498_v11  ;;  %2311 = vmatprep.subr.bf16.mxu0 %v2499_v12  ;;  %v2524_v51 = vld [vmem:[%s3261_s1 + $0x148] sm:$0xff]   ;;  %v2523_v53 = vld [vmem:[%s3261_s1 + $0x180] sm:$0xff]   ;;  %v2528_v57 = vld [vmem:[%s3261_s1 + $0x150] sm:$0xff]  }
   0xe   :  { %2333 = vmatprep.subr.bf16.mxu1 %v2500_v13  ;;  %v312_v46 = vcombine.high %v2830_v43, %v2830_v43  ;;  %v333_v47 = vrot.slane %v311_v44, %v2826_v41  ;;  %v341_v50 = vcombine.high %v319_v45, %v319_v45  ;;  %v2525_v54 = vld [vmem:[%s3261_s1 + $0x1c8] sm:$0xff]   ;;  %v2529_v59 = vld [vmem:[%s3261_s1 + $0x1d0] sm:$0xff]   ;;  %v2532_v61 = vld [vmem:[%s3261_s1 + $0x158] sm:$0xff]  }
   0xf   :  { %v2526_v56 = vld [vmem:[%s3261_s1 + $0x108] sm:$0xff]   ;;  %v2530_v60 = vld [vmem:[%s3261_s1 + $0x110] sm:$0xff]   ;;  %v2533_v63 = vld [vmem:[%s3261_s1 + $0x1d8] sm:$0xff]  }
  0x10   :  { %2312 = vmatpush3.bf16.msra.mxu0 %v2501_v14  ;;  %v340_v49 = vrot.slane %v312_v46, %v2826_v41  ;;  %1210 = vmatprep.mubr.bf16.mxu0 %v333_v47  ;;  %v343_v52 = vcombine.high %v333_v47, %v333_v47  ;;  %v2527_v58 = vld [vmem:[%s3261_s1 + $0x188] sm:$0xff]   ;;  %v2531_v62 = vld [vmem:[%s3261_s1 + $0x190] sm:$0xff]   ;;  %v2534_v0 = vld [vmem:[%s3261_s1 + $0x118] sm:$0xff]  }
  0x11   :  { %2334 = vmatpush3.bf16.msra.mxu1 %v2502_v15  ;;  %2313 = vmatprep.subr.bf16.mxu0 %v2503_v16  ;;  %v2536_v1 = vld [vmem:[%s3261_s1 + $0x160] sm:$0xff]   ;;  %v2535_v2 = vld [vmem:[%s3261_s1 + $0x198] sm:$0xff]   ;;  %v2540_v5 = vld [vmem:[%s3261_s1 + $0x168] sm:$0xff]  }
  0x12   :  { %2335 = vmatprep.subr.bf16.mxu1 %v2504_v17  ;;  %v344_v55 = vcombine.high %v340_v49, %v340_v49  ;;  %1250 = vmatprep.mubr.bf16.mxu1 %v343_v52  ;;  %v2537_v3 = vld [vmem:[%s3261_s1 + $0x1e0] sm:$0xff]   ;;  %v2541_v7 = vld [vmem:[%s3261_s1 + $0x1e8] sm:$0xff]   ;;  %v2544_v9 = vld [vmem:[%s3261_s1 + $0x170] sm:$0xff]   ;;  %v326_v17 = vrot.slane %v2830_v43, %v2826_v41 }
  0x13   :  { %v2538_v4 = vld [vmem:[%s3261_s1 + $0x120] sm:$0xff]   ;;  %v2542_v8 = vld [vmem:[%s3261_s1 + $0x128] sm:$0xff]   ;;  %v2545_v11 = vld [vmem:[%s3261_s1 + $0x1f0] sm:$0xff]  }
  0x14   :  { %2314 = vmatpush3.bf16.msra.mxu0 %v2505_v18  ;;  %v2539_v6 = vld [vmem:[%s3261_s1 + $0x1a0] sm:$0xff]   ;;  %v2543_v10 = vld [vmem:[%s3261_s1 + $0x1a8] sm:$0xff]   ;;  %v2546_v12 = vld [vmem:[%s3261_s1 + $0x130] sm:$0xff]  }
  0x15   :  { %2336 = vmatpush3.bf16.msra.mxu1 %v2506_v19  ;;  %2315 = vmatprep.subr.bf16.mxu0 %v2507_v20  ;;  %v2548_v13 = vld [vmem:[%s3261_s1 + $0x178] sm:$0xff]   ;;  %v2547_v14 = vld [vmem:[%s3261_s1 + $0x1b0] sm:$0xff]   ;;  %v2552_v18 = vld [vmem:[%s3261_s1 + $0x240] sm:$0xff]  }
  0x16   :  { %2337 = vmatprep.subr.bf16.mxu1 %v2508_v21  ;;  %v2549_v15 = vld [vmem:[%s3261_s1 + $0x1f8] sm:$0xff]   ;;  %v2553_v20 = vld [vmem:[%s3261_s1 + $0x2c0] sm:$0xff]   ;;  %v2559_v28 = vld [vmem:[%s3261_s1 + $0x288] sm:$0xff]  }
  0x17   :  { %v2550_v16 = vld [vmem:[%s3261_s1 + $0x138] sm:$0xff]   ;;  %v2554_v21 = vld [vmem:[%s3261_s1 + $0x200] sm:$0xff]   ;;  %v2572_v40 = vld [vmem:[%s3261_s1 + $0x268] sm:$0xff]  }
  0x18   :  { %2316 = vmatpush3.bf16.msra.mxu0 %v2509_v22  ;;  %v2551_v19 = vld [vmem:[%s3261_s1 + $0x1b8] sm:$0xff]   ;;  %v342_v22 = vcombine.high %v326_v17, %v326_v17  ;;  %v2568_v36 = vld [vmem:[%s3261_s1 + $0x260] sm:$0xff]   ;;  %v2573_v43 = vld [vmem:[%s3261_s1 + $0x2e8] sm:$0xff]  }
  0x19   :  { %2338 = vmatpush3.bf16.msra.mxu1 %v2510_v23  ;;  %2317 = vmatprep.subr.bf16.mxu0 %v2511_v24  ;;  %v2556_v23 = vld [vmem:[%s3261_s1 + $0x248] sm:$0xff]   ;;  %v2555_v24 = vld [vmem:[%s3261_s1 + $0x280] sm:$0xff]   ;;  %v2565_v34 = vld [vmem:[%s3261_s1 + $0x2d8] sm:$0xff]  }
  0x1a   :  { %2339 = vmatprep.subr.bf16.mxu1 %v2512_v25  ;;  %v2557_v25 = vld [vmem:[%s3261_s1 + $0x2c8] sm:$0xff]   ;;  %v2567_v37 = vld [vmem:[%s3261_s1 + $0x298] sm:$0xff]   ;;  %v2570_v39 = vld [vmem:[%s3261_s1 + $0x220] sm:$0xff]  }
  0x1b   :  { %v2571_v42 = vld [vmem:[%s3261_s1 + $0x2a0] sm:$0xff]   ;;  %v2574_v44 = vld [vmem:[%s3261_s1 + $0x228] sm:$0xff]  }
  0x1c   :  { %2318 = vmatpush3.bf16.msra.mxu0 %v2513_v26  ;;  %v2558_v26 = vld [vmem:[%s3261_s1 + $0x208] sm:$0xff]  }
  0x1d   :  { %2340 = vmatpush3.bf16.msra.mxu1 %v2514_v27  ;;  %2319 = vmatprep.subr.bf16.mxu0 %v2515_v29  ;;  %v2560_v27 = vld [vmem:[%s3261_s1 + $0x250] sm:$0xff]   ;;  %v30_v46 = vld [vmem:[%s3260_s0 + $0x8] sm:$0xff] }
  0x1e   :  { %2341 = vmatprep.subr.bf16.mxu1 %v2516_v30  ;;  %v2561_v29 = vld [vmem:[%s3261_s1 + $0x2d0] sm:$0xff]   ;;  %v2575_v47 = vld [vmem:[%s3261_s1 + $0x2a8] sm:$0xff]  }
  0x1f   :  { %v2562_v30 = vld [vmem:[%s3261_s1 + $0x210] sm:$0xff]  }
  0x20   :  { %2320 = vmatpush3.bf16.msra.mxu0 %v2517_v31  ;;  %v2564_v31 = vld [vmem:[%s3261_s1 + $0x258] sm:$0xff]  }
  0x21   :  { %2342 = vmatpush3.bf16.msra.mxu1 %v2518_v32  ;;  %2349 = vmatprep.subr.bf16.mxu0 %v2520_v35  ;;  %v2563_v32 = vld [vmem:[%s3261_s1 + $0x290] sm:$0xff]   ;;  %v2566_v35 = vld [vmem:[%s3261_s1 + $0x218] sm:$0xff]  }
  0x22   :  { %2371 = vmatprep.subr.bf16.mxu1 %v2521_v38  ;;  %v2569_v38 = vld [vmem:[%s3261_s1 + $0x2e0] sm:$0xff]  }
  0x23   :  { %1211 = vmatmul.mubr.bf16.vlgmr.msra.gmra.mrb[0].mxu0 %v319_v45  ;;  %v2576_v45 = vld [vmem:[%s3261_s1 + $0x270] sm:$0xff]  }
  0x24   :  { %2350 = vmatpush3.bf16.msra.mxu0 %v2522_v48  ;;  %1251 = vmatmul.mubr.bf16.vlgmr.msra.gmra.mrb[0].mxu1 %v341_v50  ;;  %v352_v48 = vrot.slane %v30_v46, %v2826_v41  ;;  %v2577_v50 = vld [vmem:[%s3261_s1 + $0x2f0] sm:$0xff]  }
  0x25   :  { %2351 = vmatprep.subr.bf16.mxu0 %v2524_v51  ;;  %2372 = vmatpush3.bf16.msra.mxu1 %v2523_v53  ;;  %v2578_v51 = vld [vmem:[%s3261_s1 + $0x230] sm:$0xff]  }
  0x26   :  { %1290 = vmatprep.mubr.bf16.mxu0 %v340_v49  ;;  %2373 = vmatprep.subr.bf16.mxu1 %v2525_v54  ;;  %v345_v49 = vcombine.high %v30_v46, %v30_v46  ;;  %v360_v52 = vcombine.high %v352_v48, %v352_v48  ;;  %v2580_v54 = vld [vmem:[%s3261_s1 + $0x278] sm:$0xff]  }
  0x27   :  { %1330 = vmatprep.mubr.bf16.mxu1 %v344_v55  ;;  %v2579_v55 = vld [vmem:[%s3261_s1 + $0x2b0] sm:$0xff]  }
  0x28   :  { %2352 = vmatpush3.bf16.msra.mxu0 %v2526_v56  ;;  %v3015_v53 = vrot.slane %v345_v49, %v2826_v41  ;;  %v382_v56 = vrot.slane %v360_v52, %v2826_v41 }
  0x29   :  { %2353 = vmatprep.subr.bf16.mxu0 %v2528_v57  ;;  %2374 = vmatpush3.bf16.msra.mxu1 %v2527_v58  ;;  %v2581_v58 = vld [vmem:[%s3261_s1 + $0x2f8] sm:$0xff]  }
  0x2a   :  { %2375 = vmatprep.subr.bf16.mxu1 %v2529_v59  ;;  %v361_v57 = vcombine.high %v3015_v53, %v3015_v53  ;;  %v2582_v59 = vld [vmem:[%s3261_s1 + $0x238] sm:$0xff]  }
  0x2c   :  { %2354 = vmatpush3.bf16.msra.mxu0 %v2530_v60  ;;  %v392_v60 = vcombine.high %v382_v56, %v382_v56 }
  0x2d   :  { %2355 = vmatprep.subr.bf16.mxu0 %v2532_v61  ;;  %2376 = vmatpush3.bf16.msra.mxu1 %v2531_v62  ;;  %v368_v61 = vrot.slane %v352_v48, %v2826_v41  ;;  %v2584_v62 = vld [vmem:[%s3261_s1 + $0x340] sm:$0xff]  }
  0x2e   :  { %2377 = vmatprep.subr.bf16.mxu1 %v2533_v63  ;;  %v2583_v63 = vld [vmem:[%s3261_s1 + $0x2b8] sm:$0xff]  }
  0x30   :  { %2356 = vmatpush3.bf16.msra.mxu0 %v2534_v0  ;;  %v389_v0 = vrot.slane %v361_v57, %v2826_v41 }
  0x31   :  { %2357 = vmatprep.subr.bf16.mxu0 %v2536_v1  ;;  %2378 = vmatpush3.bf16.msra.mxu1 %v2535_v2  ;;  %v2585_v1 = vld [vmem:[%s3261_s1 + $0x3c0] sm:$0xff]  }
  0x32   :  { %2379 = vmatprep.subr.bf16.mxu1 %v2537_v3  ;;  %v2586_v2 = vld [vmem:[%s3261_s1 + $0x300] sm:$0xff]   ;;  %v390_v3 = vcombine.high %v368_v61, %v368_v61 }
  0x34   :  { %2358 = vmatpush3.bf16.msra.mxu0 %v2538_v4  ;;  %v2588_v4 = vld [vmem:[%s3261_s1 + $0x348] sm:$0xff]  }
  0x35   :  { %2359 = vmatprep.subr.bf16.mxu0 %v2540_v5  ;;  %2380 = vmatpush3.bf16.msra.mxu1 %v2539_v6  ;;  %v2587_v5 = vld [vmem:[%s3261_s1 + $0x380] sm:$0xff]   ;;  %v393_v6 = vcombine.high %v389_v0, %v389_v0 }
  0x36   :  { %2381 = vmatprep.subr.bf16.mxu1 %v2541_v7  ;;  %v2589_v7 = vld [vmem:[%s3261_s1 + $0x3c8] sm:$0xff]  }
  0x38   :  { %2360 = vmatpush3.bf16.msra.mxu0 %v2542_v8  ;;  %v2590_v8 = vld [vmem:[%s3261_s1 + $0x308] sm:$0xff]  }
  0x39   :  { %2361 = vmatprep.subr.bf16.mxu0 %v2544_v9  ;;  %2382 = vmatpush3.bf16.msra.mxu1 %v2543_v10  ;;  %v2592_v9 = vld [vmem:[%s3261_s1 + $0x350] sm:$0xff]   ;;  %v2591_v10 = vld [vmem:[%s3261_s1 + $0x388] sm:$0xff]  }
  0x3a   :  { %2383 = vmatprep.subr.bf16.mxu1 %v2545_v11  ;;  %v2593_v11 = vld [vmem:[%s3261_s1 + $0x3d0] sm:$0xff]  }
  0x3c   :  { %2362 = vmatpush3.bf16.msra.mxu0 %v2546_v12  ;;  %v2594_v12 = vld [vmem:[%s3261_s1 + $0x310] sm:$0xff]  }
  0x3d   :  { %2363 = vmatprep.subr.bf16.mxu0 %v2548_v13  ;;  %2384 = vmatpush3.bf16.msra.mxu1 %v2547_v14  ;;  %v2596_v13 = vld [vmem:[%s3261_s1 + $0x358] sm:$0xff]   ;;  %v2595_v14 = vld [vmem:[%s3261_s1 + $0x390] sm:$0xff]  }
  0x3e   :  { %2385 = vmatprep.subr.bf16.mxu1 %v2549_v15  ;;  %v2597_v15 = vld [vmem:[%s3261_s1 + $0x3d8] sm:$0xff]  }
  0x40   :  { %2364 = vmatpush3.bf16.msra.mxu0 %v2550_v16  ;;  %v2598_v16 = vld [vmem:[%s3261_s1 + $0x318] sm:$0xff]  }
  0x41   :  { %2393 = vmatprep.subr.bf16.mxu0 %v2552_v18  ;;  %2386 = vmatpush3.bf16.msra.mxu1 %v2551_v19  ;;  %v2599_v18 = vld [vmem:[%s3261_s1 + $0x398] sm:$0xff]   ;;  %v2601_v19 = vld [vmem:[%s3261_s1 + $0x3e0] sm:$0xff]  }
  0x42   :  { %2415 = vmatprep.subr.bf16.mxu1 %v2553_v20  ;;  %v2602_v20 = vld [vmem:[%s3261_s1 + $0x320] sm:$0xff]  }
  0x43   :  { %1291 = vmatmul.mubr.bf16.vlgmr.msra.gmra.mrb[4].mxu0 %v326_v17  ;;  %v2600_v17 = vld [vmem:[%s3261_s1 + $0x360] sm:$0xff]  }
  0x44   :  { %2394 = vmatpush3.bf16.msra.mxu0 %v2554_v21  ;;  %1331 = vmatmul.mubr.bf16.vlgmr.msra.gmra.mrb[4].mxu1 %v342_v22  ;;  %v2604_v21 = vld [vmem:[%s3261_s1 + $0x368] sm:$0xff]   ;;  %v2603_v22 = vld [vmem:[%s3261_s1 + $0x3a0] sm:$0xff]  }
  0x45   :  { %2395 = vmatprep.subr.bf16.mxu0 %v2556_v23  ;;  %2416 = vmatpush3.bf16.msra.mxu1 %v2555_v24  ;;  %v2605_v23 = vld [vmem:[%s3261_s1 + $0x3e8] sm:$0xff]  }
  0x46   :  { %2417 = vmatprep.subr.bf16.mxu1 %v2557_v25  ;;  %1370 = vmatprep.mubr.bf16.mxu0 %v382_v56  ;;  %v2606_v24 = vld [vmem:[%s3261_s1 + $0x328] sm:$0xff]   ;;  %v2608_v25 = vld [vmem:[%s3261_s1 + $0x370] sm:$0xff]  }
  0x47   :  { %1410 = vmatprep.mubr.bf16.mxu1 %v392_v60 }
  0x48   :  { %2396 = vmatpush3.bf16.msra.mxu0 %v2558_v26 }
  0x49   :  { %2397 = vmatprep.subr.bf16.mxu0 %v2560_v27  ;;  %2418 = vmatpush3.bf16.msra.mxu1 %v2559_v28 }
  0x4a   :  { %2419 = vmatprep.subr.bf16.mxu1 %v2561_v29 }
  0x4c   :  { %2398 = vmatpush3.bf16.msra.mxu0 %v2562_v30 }
  0x4d   :  { %2399 = vmatprep.subr.bf16.mxu0 %v2564_v31  ;;  %2420 = vmatpush3.bf16.msra.mxu1 %v2563_v32 }
  0x4e   :  { %2421 = vmatprep.subr.bf16.mxu1 %v2565_v34 }
  0x50   :  { %2400 = vmatpush3.bf16.msra.mxu0 %v2566_v35 }
  0x51   :  { %2401 = vmatprep.subr.bf16.mxu0 %v2568_v36  ;;  %2422 = vmatpush3.bf16.msra.mxu1 %v2567_v37 }
  0x52   :  { %2423 = vmatprep.subr.bf16.mxu1 %v2569_v38 }
  0x54   :  { %2402 = vmatpush3.bf16.msra.mxu0 %v2570_v39 }
  0x55   :  { %2403 = vmatprep.subr.bf16.mxu0 %v2572_v40  ;;  %2424 = vmatpush3.bf16.msra.mxu1 %v2571_v42 }
  0x56   :  { %2425 = vmatprep.subr.bf16.mxu1 %v2573_v43 }
  0x58   :  { %2404 = vmatpush3.bf16.msra.mxu0 %v2574_v44 }
  0x59   :  { %2405 = vmatprep.subr.bf16.mxu0 %v2576_v45  ;;  %2426 = vmatpush3.bf16.msra.mxu1 %v2575_v47 }
  0x5a   :  { %2427 = vmatprep.subr.bf16.mxu1 %v2577_v50 }
  0x5c   :  { %2406 = vmatpush3.bf16.msra.mxu0 %v2578_v51 }
  0x5d   :  { %2407 = vmatprep.subr.bf16.mxu0 %v2580_v54  ;;  %2428 = vmatpush3.bf16.msra.mxu1 %v2579_v55 }
  0x5e   :  { %2429 = vmatprep.subr.bf16.mxu1 %v2581_v58 }
  0x60   :  { %2408 = vmatpush3.bf16.msra.mxu0 %v2582_v59 }
  0x61   :  { %2437 = vmatprep.subr.bf16.mxu0 %v2584_v62  ;;  %2430 = vmatpush3.bf16.msra.mxu1 %v2583_v63 }
  0x62   :  { %2459 = vmatprep.subr.bf16.mxu1 %v2585_v1 }
  0x63   :  { %1371 = vmatmul.mubr.bf16.vlgmr.msra.gmra.mrb[8].mxu0 %v368_v61 }
  0x64   :  { %2438 = vmatpush3.bf16.msra.mxu0 %v2586_v2  ;;  %1450 = vmatprep.mubr.bf16.mxu0 %v389_v0 }
  0x65   :  { %1411 = vmatmul.mubr.bf16.vlgmr.msra.gmra.mrb[8].mxu1 %v390_v3  ;;  %2439 = vmatprep.subr.bf16.mxu0 %v2588_v4 }
  0x66   :  { %2460 = vmatpush3.bf16.msra.mxu1 %v2587_v5  ;;  %1490 = vmatprep.mubr.bf16.mxu1 %v393_v6 }
  0x67   :  { %2461 = vmatprep.subr.bf16.mxu1 %v2589_v7 }
  0x68   :  { %2440 = vmatpush3.bf16.msra.mxu0 %v2590_v8 }
  0x69   :  { %2441 = vmatprep.subr.bf16.mxu0 %v2592_v9 }
  0x6a   :  { %2462 = vmatpush3.bf16.msra.mxu1 %v2591_v10 }
  0x6b   :  { %2463 = vmatprep.subr.bf16.mxu1 %v2593_v11 }
  0x6c   :  { %2442 = vmatpush3.bf16.msra.mxu0 %v2594_v12 }
  0x6d   :  { %2443 = vmatprep.subr.bf16.mxu0 %v2596_v13 }
  0x6e   :  { %2464 = vmatpush3.bf16.msra.mxu1 %v2595_v14 }
  0x6f   :  { %2465 = vmatprep.subr.bf16.mxu1 %v2597_v15 }
  0x70   :  { %2444 = vmatpush3.bf16.msra.mxu0 %v2598_v16 }
  0x71   :  { %2445 = vmatprep.subr.bf16.mxu0 %v2600_v17 }
  0x72   :  { %2466 = vmatpush3.bf16.msra.mxu1 %v2599_v18 }
  0x73   :  { %2467 = vmatprep.subr.bf16.mxu1 %v2601_v19 }
  0x74   :  { %2446 = vmatpush3.bf16.msra.mxu0 %v2602_v20 }
  0x75   :  { %2447 = vmatprep.subr.bf16.mxu0 %v2604_v21 }
  0x76   :  { %15 = vsyncpa [#allocation5], 0  ;;  %2468 = vmatpush3.bf16.msra.mxu1 %v2603_v22  ;;  %v2607_v26 = vld [vmem:[%s3261_s1 + $0x3a8] sm:$0xff]   ;;  %v2609_v27 = vld [vmem:[%s3261_s1 + $0x3f0] sm:$0xff]   ;;  %v375_v34 = vrot.slane %v3015_v53, %v2826_v41  ;;  %vm1525_vm0 = vcmask 123904   ;;  %s2669_s13 = smov 112  }
  0x77   :  { %2469 = vmatprep.subr.bf16.mxu1 %v2605_v23  ;;  %v2610_v28 = vld [vmem:[%s3261_s1 + $0x330] sm:$0xff]   ;;  %v2612_v29 = vld [vmem:[%s3261_s1 + $0x378] sm:$0xff]   ;;  %v1509_v37 = vld [vmem:[%s3264_s4] sm:$0xff]  ;;  %vm1696_vm1 = vcmask 130048   ;;  %s2671_s29 = smov [#allocation4]  }
  0x78   :  { %2448 = vmatpush3.bf16.msra.mxu0 %v2606_v24  ;;  %v2611_v30 = vld [vmem:[%s3261_s1 + $0x3b0] sm:$0xff]   ;;  %v2613_v31 = vld [vmem:[%s3261_s1 + $0x3f8] sm:$0xff]   ;;  %v391_v36 = vcombine.high %v375_v34, %v375_v34  ;;  %v1517_v38 = vld [vmem:[%s3264_s4 + $0x40] sm:$0xff]  ;;  %s2136_s30 = sshll.u32 %s2671_s29, 4  ;;  %s2137_s30 = int_to_ptr.vmem [resolvable:$true] %s2136_s30 }
  0x79   :  { %2449 = vmatprep.subr.bf16.mxu0 %v2608_v25  ;;  %v2614_v32 = vld [vmem:[%s3261_s1 + $0x338] sm:$0xff]   ;;  %v1510_v41 = vld [vmem:[%s3264_s4 + $0x8] sm:$0xff]  ;;  %v2281_v39 = vcombine.low %v1509_v37, %v1517_v38  ;;  %v2282_v40 = vcombine.high %v1509_v37, %v1517_v38  ;;  %v2152_v46 = vld [vmem:[%s3262_s2] ss:$0 sm:$0xff] }
  0x7a   :  { %2470 = vmatpush3.bf16.msra.mxu1 %v2607_v26  ;;  %v2615_v35 = vld [vmem:[%s3261_s1 + $0x3b8] sm:$0xff]   ;;  %v1518_v42 = vld [vmem:[%s3264_s4 + $0x48] sm:$0xff] }
  0x7b   :  { %2471 = vmatprep.subr.bf16.mxu1 %v2609_v27  ;;  %v2283_v43 = vcombine.low %v1510_v41, %v1518_v42  ;;  %v2284_v44 = vcombine.high %v1510_v41, %v1518_v42  ;;  %v1520_v41 = vld [vmem:[%s3264_s4 + $0x58] sm:$0xff] }
  0x7c   :  { %2450 = vmatpush3.bf16.msra.mxu0 %v2610_v28 }
  0x7d   :  { %2451 = vmatprep.subr.bf16.mxu0 %v2612_v29 }
  0x7e   :  { %2472 = vmatpush3.bf16.msra.mxu1 %v2611_v30 }
  0x7f   :  { %2473 = vmatprep.subr.bf16.mxu1 %v2613_v31 }
  0x80   :  { %2452 = vmatpush3.bf16.msra.mxu0 %v2614_v32  ;;  %v1511_v32 = vld [vmem:[%s3264_s4 + $0x10] sm:$0xff] }
  0x81   :  { %1700 = vmatprep.subr.bf16.mxu0 %v2282_v40 }
  0x82   :  { %2474 = vmatpush3.bf16.msra.mxu1 %v2615_v35  ;;  %v1512_v35 = vld [vmem:[%s3264_s4 + $0x18] sm:$0xff] }
  0x83   :  { %1451 = vmatmul.mubr.bf16.vlgmr.msra.gmra.mrb[12].mxu0 %v375_v34  ;;  %1741 = vmatprep.subr.bf16.mxu1 %v2284_v44  ;;  %v1519_v34 = vld [vmem:[%s3264_s4 + $0x50] sm:$0xff]  ;;  %v2288_v40 = vcombine.high %v1512_v35, %v1520_v41 }
  0x84   :  { %1701 = vmatpush1.bf16.msra.mxu0 %v2281_v39  ;;  %v2285_v37 = vcombine.low %v1511_v32, %v1519_v34  ;;  %v2286_v38 = vcombine.high %v1511_v32, %v1519_v34  ;;  %v2287_v39 = vcombine.low %v1512_v35, %v1520_v41 }
  0x85   :  { %1491 = vmatmul.mubr.bf16.vlgmr.msra.gmra.mrb[12].mxu1 %v391_v36  ;;  %v2668_v36 = vmov 0  }
  0x86   :  { %1742 = vmatpush1.bf16.msra.mxu1 %v2283_v43  ;;  %1732 = vmatprep.mubr.bf16.mxu0 %v2668_v36  ;;  %v1498_v43 = vld [vmem:[%s3263_s3] sm:$0x3] }
  0x87   :  { %1773 = vmatprep.mubr.bf16.mxu1 %v2668_v36  ;;  %1782 = vmatprep.subr.bf16.mxu0 %v2286_v38 }
  0x88   :  { %1823 = vmatprep.subr.bf16.mxu1 %v2288_v40 }
  0xf6   :  { %v2321_v45 = vpop.f32.mrb[0].mxu0 }
  0xf7   :  { %v2322_v47 = vpop.f32.mrb[1].mxu0  ;;  %v2343_v48 = vpop.f32.mrb[0].mxu1 }
  0xf8   :  { %v2323_v49 = vadd.f32 %v2322_v47, %v2321_v45  ;;  %v2324_v50 = vpop.f32.mrb[2].mxu0  ;;  %v2344_v51 = vpop.f32.mrb[1].mxu1 }
  0xf9   :  { %v2325_v52 = vpop.f32.mrb[3].mxu0  ;;  %v2345_v54 = vadd.f32 %v2344_v51, %v2343_v48  ;;  %v2346_v55 = vpop.f32.mrb[2].mxu1  ;;  %v1521_v48 = vld [vmem:[%s3264_s4 + $0x60] sm:$0xff]  ;;  %v1522_v50 = vld [vmem:[%s3264_s4 + $0x68] sm:$0xff] }
  0xfa   :  { %v1213_v53 = vadd.f32 %v2323_v49, %v2152_v46  ;;  %v2347_v56 = vpop.f32.mrb[3].mxu1  ;;  %v1513_v46 = vld [vmem:[%s3264_s4 + $0x20] sm:$0xff]  ;;  %v1514_v49 = vld [vmem:[%s3264_s4 + $0x28] sm:$0xff]  ;;  %v1515_v55 = vld [vmem:[%s3264_s4 + $0x30] sm:$0xff] }
  0xfb   :  { %v1523_v56 = vld [vmem:[%s3264_s4 + $0x70] sm:$0xff] }
  0xfc   :  { %v1253_v57 = vadd.f32 %v2345_v54, %v1213_v53  ;;  %v2290_v53 = vcombine.high %v1513_v46, %v1521_v48  ;;  %v2292_v54 = vcombine.high %v1514_v49, %v1522_v50 }
 0x116   :  { %v2365_v58 = vpop.f32.mrb[4].mxu0 }
 0x117   :  { %v2366_v59 = vpop.f32.mrb[5].mxu0  ;;  %v2387_v60 = vpop.f32.mrb[4].mxu1 }
 0x118   :  { %v2367_v61 = vadd.f32 %v2366_v59, %v2365_v58  ;;  %v2368_v62 = vpop.f32.mrb[6].mxu0  ;;  %v2388_v63 = vpop.f32.mrb[5].mxu1  ;;  %v1524_v58 = vld [vmem:[%s3264_s4 + $0x78] sm:$0xff]  ;;  %v2289_v59 = vcombine.low %v1513_v46, %v1521_v48 }
 0x119   :  { %v2369_v0 = vpop.f32.mrb[7].mxu0  ;;  %v2389_v2 = vadd.f32 %v2388_v63, %v2387_v60  ;;  %v2390_v3 = vpop.f32.mrb[6].mxu1  ;;  %v2291_v60 = vcombine.low %v1514_v49, %v1522_v50  ;;  %v2293_v63 = vcombine.low %v1515_v55, %v1523_v56 }
 0x11a   :  { %v1293_v1 = vadd.f32 %v2367_v61, %v1253_v57  ;;  %v2391_v4 = vpop.f32.mrb[7].mxu1  ;;  %v1516_v57 = vld [vmem:[%s3264_s4 + $0x38] sm:$0xff]  ;;  %v2294_v61 = vcombine.high %v1515_v55, %v1523_v56  ;;  %s2670_s4 = smov [#allocation2]  }
 0x11b   :  { %v2296_v62 = vcombine.high %v1516_v57, %v1524_v58  ;;  %v2295_v0 = vcombine.low %v1516_v57, %v1524_v58  ;;  %s2126_s28 = sshll.u32 %s2670_s4, 4  ;;  %s2127_s28 = int_to_ptr.vmem [resolvable:$true] %s2126_s28 }
 0x11c   :  { %v1333_v5 = vadd.f32 %v2389_v2, %v1293_v1  ;;  %s2619_s9 = scalar_lea.vmem %s2127_s28, 32  ;;  %p2624_p1 = scmp.lt.s32.totalorder %s2127_s28, %s2127_s28 }
 0x11d   :  { %p2620_p0 = scmp.ne.s32.totalorder %s2127_s28, %s2619_s9  ;;  %p2625_p2 = scmp.lt.s32.totalorder %s2619_s9, %s2619_s9 }
 0x11f   :  { %p2626_p3 = por %p2625_p2, %p2624_p1 }
 0x121   :  { %p2627_p4 = pnand %p2626_p3, %p2620_p0 }
 0x136   :  { %v2409_v6 = vpop.f32.mrb[8].mxu0 }
 0x137   :  { %v2410_v7 = vpop.f32.mrb[9].mxu0 }
 0x138   :  { %v2431_v8 = vpop.f32.mrb[8].mxu1  ;;  %v2411_v9 = vadd.f32 %v2410_v7, %v2409_v6  ;;  %v2412_v10 = vpop.f32.mrb[10].mxu0 }
 0x139   :  { %v2432_v11 = vpop.f32.mrb[9].mxu1  ;;  %v2413_v12 = vpop.f32.mrb[11].mxu0 }
 0x13a   :  { %v1373_v13 = vadd.f32 %v2411_v9, %v1333_v5  ;;  %v2433_v14 = vadd.f32 %v2432_v11, %v2431_v8  ;;  %v2434_v15 = vpop.f32.mrb[10].mxu1 }
 0x13b   :  { %v2435_v16 = vpop.f32.mrb[11].mxu1 }
 0x13c   :  { %v1413_v17 = vadd.f32 %v2433_v14, %v1373_v13 }
 0x156   :  { %v2453_v18 = vpop.f32.mrb[12].mxu0 }
 0x157   :  { %v2454_v19 = vpop.f32.mrb[13].mxu0 }
 0x158   :  { %v2475_v20 = vpop.f32.mrb[12].mxu1  ;;  %v2455_v21 = vadd.f32 %v2454_v19, %v2453_v18  ;;  %v2456_v22 = vpop.f32.mrb[14].mxu0 }
 0x159   :  { %v2476_v23 = vpop.f32.mrb[13].mxu1  ;;  %v2457_v24 = vpop.f32.mrb[15].mxu0 }
 0x15a   :  { %v1453_v25 = vadd.f32 %v2455_v21, %v1413_v17  ;;  %v2477_v26 = vadd.f32 %v2476_v23, %v2475_v20  ;;  %v2478_v27 = vpop.f32.mrb[14].mxu1 }
 0x15b   :  { %v2479_v28 = vpop.f32.mrb[15].mxu1 }
 0x15c   :  { %v1493_v29 = vadd.f32 %v2477_v26, %v1453_v25 }
 0x15e   :  { %v1499_v30 = vmul.f32 0.5, %v1493_v29  ;;  %1526 = vst.msk [vmem:[#allocation2] sm:$0x3] %vm1525_vm0, %v1493_v29 }
 0x160   :  { %v1500_v31 = vmul.f32 1.442695, %v1499_v30 }
 0x162   :  { %2617 = vpow2.f32 %v1500_v31 }
 0x16c   :  { %v2618_v42 = vpop.eup %2617 }
 0x16d   :  { %1503 = vrot.lane.b32.xlu0 %v2618_v42, %s2669_s13 }
 0x171   :  { %1528 = vrot.lane.b32.xlu0 %v1493_v29, %s2669_s13 }
 0x1df   :  { %v1504_v44 = vpop.permute.xlu0 %1503 }
 0x1e0   :  { %v1506_v45 = vmul.f32 %v1504_v44, %v1498_v43 }
 0x1e2   :  { %v1507_v47 = vadd.f32 %v1506_v45, %v1493_v29 }
 0x1e3   :  { %v1529_v51 = vpop.permute.xlu0 %1528 }
 0x1e4   :  { %v1508_v52 = vpack.c.bf16 %v1507_v47, %v1507_v47  ;;  %1531 = vst.msk [vmem:[#allocation4] sm:$0x3] %vm1525_vm0, %v1529_v51 }
 0x1e6   :  { %2297 = vmatmul.mubr.msk.bf16.vlgmr.msra.gmra.mrb[16].mxu0 %vm1696_vm1, %v1508_v52  ;;  %2298 = vmatmul.mubr.msk.bf16.vlgmr.msra.gmra.mrb[16].mxu1 %vm1696_vm1, %v1508_v52 }
 0x1e7   :  { %1783 = vmatpush1.bf16.msra.mxu0 %v2285_v37  ;;  %1824 = vmatpush1.bf16.msra.mxu1 %v2287_v39 }
 0x1e8   :  { %1814 = vmatprep.mubr.bf16.mxu0 %v2668_v36  ;;  %1855 = vmatprep.mubr.bf16.mxu1 %v2668_v36 }
 0x1e9   :  { %1864 = vmatprep.subr.bf16.mxu0 %v2290_v53  ;;  %1905 = vmatprep.subr.bf16.mxu1 %v2292_v54 }
 0x1ee   :  { %2299 = vmatmul.mubr.msk.bf16.vlgmr.msra.gmra.mrb[20].mxu0 %vm1696_vm1, %v1508_v52  ;;  %2300 = vmatmul.mubr.msk.bf16.vlgmr.msra.gmra.mrb[20].mxu1 %vm1696_vm1, %v1508_v52 }
 0x1ef   :  { %1865 = vmatpush1.bf16.msra.mxu0 %v2289_v59  ;;  %1906 = vmatpush1.bf16.msra.mxu1 %v2291_v60 }
 0x1f0   :  { %1896 = vmatprep.mubr.bf16.mxu0 %v2668_v36  ;;  %1937 = vmatprep.mubr.bf16.mxu1 %v2668_v36 }
 0x1f1   :  { %1946 = vmatprep.subr.bf16.mxu0 %v2294_v61  ;;  %1987 = vmatprep.subr.bf16.mxu1 %v2296_v62 }
 0x1f6   :  { %2301 = vmatmul.mubr.msk.bf16.vlgmr.msra.gmra.mrb[24].mxu0 %vm1696_vm1, %v1508_v52  ;;  %2302 = vmatmul.mubr.msk.bf16.vlgmr.msra.gmra.mrb[24].mxu1 %vm1696_vm1, %v1508_v52 }
 0x1f7   :  { %1947 = vmatpush1.bf16.msra.mxu0 %v2293_v63  ;;  %1988 = vmatpush1.bf16.msra.mxu1 %v2295_v0 }
 0x1f8   :  { %1978 = vmatprep.mubr.bf16.mxu0 %v2668_v36  ;;  %2019 = vmatprep.mubr.bf16.mxu1 %v2668_v36 }
 0x1fe   :  { %2303 = vmatmul.mubr.msk.bf16.vlgmr.msra.gmra.mrb[28].mxu0 %vm1696_vm1, %v1508_v52  ;;  %2304 = vmatmul.mubr.msk.bf16.vlgmr.msra.gmra.mrb[28].mxu1 %vm1696_vm1, %v1508_v52 }
 0x1ff   :  { %2630 = shalt.err (!%p2627_p4)
}
 0x200   :  { %s2631_s12 = scalar_lea.hbm %s3266_s6, 32 }
 0x201   :  { %p2632_p5 = scmp.ne.s32.totalorder %s3266_s6, %s2631_s12  ;;  %p2635_p6 = scmp.lt.u32.totalorder %s2631_s12, %s3266_s6 }
 0x203   :  { %p2637_p7 = pnand %p2635_p6, %p2632_p5 }
 0x205   :  { %2640 = shalt.err (!%p2637_p7)
}
 0x206   :  { %2129 = dma.vmem_to_hbm [thread:$0]  %s2127_s28, 32, %s3266_s6, [#allocation3]  }
 0x207   :  { %s2641_s18 = scalar_lea.vmem %s2137_s30, 32  ;;  %p2646_p9 = scmp.lt.s32.totalorder %s2137_s30, %s2137_s30 }
 0x208   :  { %p2642_p8 = scmp.ne.s32.totalorder %s2137_s30, %s2641_s18  ;;  %p2647_p10 = scmp.lt.s32.totalorder %s2641_s18, %s2641_s18 }
 0x20a   :  { %p2648_p11 = por %p2647_p10, %p2646_p9 }
 0x20c   :  { %p2649_p12 = pnand %p2648_p11, %p2642_p8 }
 0x20e   :  { %2652 = shalt.err (!%p2649_p12)
}
 0x20f   :  { %s2653_s21 = scalar_lea.hbm %s3267_s7, 32 }
 0x210   :  { %p2654_p13 = scmp.ne.s32.totalorder %s3267_s7, %s2653_s21  ;;  %p2657_p0 = scmp.lt.u32.totalorder %s2653_s21, %s3267_s7 }
 0x212   :  { %p2659_p1 = pnand %p2657_p0, %p2654_p13 }
 0x214   :  { %2662 = shalt.err (!%p2659_p1)
}
 0x215   :  { %2139 = dma.vmem_to_hbm [thread:$0]  %s2137_s30, 32, %s3267_s7, [#allocation5]   ;;  %v2672_v1 = vmov 1983009808   ;;  %v1538_v3 = vsub.s32 0, %v2814_v33  ;;  %v1546_v4 = vsub.s32 2, %v2814_v33 }
 0x216   :  { %v2047_v2 = vunpack.c.l.s4 %v2672_v1  ;;  %v1532_v5 = vld [vmem:[%s3265_s5] sm:$0xff]  ;;  %v1542_v6 = vsub.s32 1, %v2814_v33  ;;  %v1550_v7 = vsub.s32 3, %v2814_v33  ;;  %v1554_v20 = vsub.s32 4, %v2814_v33  ;;  %v1533_v49 = vld [vmem:[%s3265_s5 + $0x8] sm:$0xff] }
 0x217   :  { %v1539_v9 = vrot.slane %v1532_v5, %v1538_v3  ;;  %v1547_v10 = vrot.slane %v1532_v5, %v1546_v4  ;;  %v1562_v21 = vsub.s32 6, %v2814_v33  ;;  %v1558_v26 = vsub.s32 5, %v2814_v33 }
 0x218   :  { %v2048_v8 = vunpack.c.0.s8 %v2047_v2  ;;  %v1543_v11 = vrot.slane %v1532_v5, %v1542_v6  ;;  %v1551_v12 = vrot.slane %v1532_v5, %v1550_v7  ;;  %v1566_v27 = vsub.s32 7, %v2814_v33 }
 0x219   :  { %v1555_v32 = vrot.slane %v1532_v5, %v1554_v20  ;;  %v1563_v34 = vrot.slane %v1532_v5, %v1562_v21  ;;  %v1559_v37 = vrot.slane %v1532_v5, %v1558_v26  ;;  %v1571_v54 = vrot.slane %v1533_v49, %v1538_v3 }
 0x21a   :  { %v3231_v15 = vsub.s32 %v2048_v8, %v2814_v33  ;;  %v1567_v38 = vrot.slane %v1532_v5, %v1566_v27  ;;  %v1579_v55 = vrot.slane %v1533_v49, %v1546_v4  ;;  %v1575_v58 = vrot.slane %v1533_v49, %v1542_v6 }
 0x21b   :  { %v1583_v59 = vrot.slane %v1533_v49, %v1550_v7  ;;  %v1587_v7 = vrot.slane %v1533_v49, %v1554_v20 }
 0x2b9   :  { %v1734_v13 = vpop.f32.mrb[16].mxu0  ;;  %v1775_v14 = vpop.f32.mrb[16].mxu1 }
 0x2ba   :  { %v1735_v16 = vadd.f32 %v1734_v13, %v1539_v9  ;;  %v1776_v17 = vadd.f32 %v1775_v14, %v1547_v10  ;;  %v1736_v18 = vpop.f32.mrb[17].mxu0  ;;  %v1777_v19 = vpop.f32.mrb[17].mxu1 }
 0x2bb   :  { %v1737_v22 = vadd.f32 %v1736_v18, %v1543_v11  ;;  %v1778_v23 = vadd.f32 %v1777_v19, %v1551_v12  ;;  %v1738_v24 = vpop.f32.mrb[18].mxu0  ;;  %v1779_v25 = vpop.f32.mrb[18].mxu1  ;;  %v1595_v12 = vrot.slane %v1533_v49, %v1562_v21 }
 0x2bc   :  { %v1739_v28 = vpop.f32.mrb[19].mxu0  ;;  %v1780_v29 = vpop.f32.mrb[19].mxu1 }
 0x2bd   :  { %v2044_v30 = vcombine.low %v1735_v16, %v1737_v22  ;;  %v2045_v31 = vcombine.low %v1776_v17, %v1778_v23  ;;  %v1591_v16 = vrot.slane %v1533_v49, %v1558_v26  ;;  %v1599_v17 = vrot.slane %v1533_v49, %v1566_v27 }
 0x2bf   :  { %v2052_v35 = vrot.slane %v2044_v30, %v3231_v15  ;;  %v2059_v36 = vrot.slane %v2045_v31, %v3231_v15 }
 0x2c1   :  { %v2060_v41 = vcombine.low %v2052_v35, %v2059_v36  ;;  %v1816_v39 = vpop.f32.mrb[20].mxu0  ;;  %v1857_v40 = vpop.f32.mrb[20].mxu1 }
 0x2c2   :  { %v1817_v42 = vadd.f32 %v1816_v39, %v1555_v32  ;;  %v1858_v43 = vadd.f32 %v1857_v40, %v1563_v34  ;;  %v1818_v44 = vpop.f32.mrb[21].mxu0  ;;  %v1859_v45 = vpop.f32.mrb[21].mxu1 }
 0x2c3   :  { %2116 = vst [vmem:[%s3268_s8] sm:$0xff] %v2060_v41  ;;  %v1819_v33 = vadd.f32 %v1818_v44, %v1559_v37  ;;  %v1860_v46 = vadd.f32 %v1859_v45, %v1567_v38  ;;  %v1820_v47 = vpop.f32.mrb[22].mxu0  ;;  %v1861_v48 = vpop.f32.mrb[22].mxu1 }
 0x2c4   :  { %v1821_v50 = vpop.f32.mrb[23].mxu0  ;;  %v1862_v51 = vpop.f32.mrb[23].mxu1 }
 0x2c5   :  { %v2061_v52 = vcombine.low %v1817_v42, %v1819_v33  ;;  %v2062_v53 = vcombine.low %v1858_v43, %v1860_v46 }
 0x2c7   :  { %v2069_v56 = vrot.slane %v2061_v52, %v3231_v15  ;;  %v2076_v57 = vrot.slane %v2062_v53, %v3231_v15 }
 0x2c9   :  { %v2077_v60 = vcombine.low %v2069_v56, %v2076_v57  ;;  %v1898_v61 = vpop.f32.mrb[24].mxu0  ;;  %v1939_v62 = vpop.f32.mrb[24].mxu1 }
 0x2ca   :  { %v1899_v63 = vadd.f32 %v1898_v61, %v1571_v54  ;;  %v1940_v0 = vadd.f32 %v1939_v62, %v1579_v55  ;;  %v1900_v1 = vpop.f32.mrb[25].mxu0  ;;  %v1941_v2 = vpop.f32.mrb[25].mxu1 }
 0x2cb   :  { %2117 = vst [vmem:[%s3268_s8 + $0x8] sm:$0xff] %v2077_v60  ;;  %v1901_v5 = vadd.f32 %v1900_v1, %v1575_v58  ;;  %v1942_v3 = vadd.f32 %v1941_v2, %v1583_v59  ;;  %v1902_v4 = vpop.f32.mrb[26].mxu0  ;;  %v1943_v8 = vpop.f32.mrb[26].mxu1 }
 0x2cc   :  { %v1903_v9 = vpop.f32.mrb[27].mxu0  ;;  %v1944_v10 = vpop.f32.mrb[27].mxu1 }
 0x2cd   :  { %v2078_v11 = vcombine.low %v1899_v63, %v1901_v5  ;;  %v2079_v6 = vcombine.low %v1940_v0, %v1942_v3 }
 0x2cf   :  { %v2086_v13 = vrot.slane %v2078_v11, %v3231_v15  ;;  %v2093_v14 = vrot.slane %v2079_v6, %v3231_v15 }
 0x2d1   :  { %v2094_v18 = vcombine.low %v2086_v13, %v2093_v14  ;;  %v1980_v19 = vpop.f32.mrb[28].mxu0  ;;  %v2021_v22 = vpop.f32.mrb[28].mxu1 }
 0x2d2   :  { %v1981_v23 = vadd.f32 %v1980_v19, %v1587_v7  ;;  %v2022_v24 = vadd.f32 %v2021_v22, %v1595_v12  ;;  %v1982_v25 = vpop.f32.mrb[29].mxu0  ;;  %v2023_v28 = vpop.f32.mrb[29].mxu1 }
 0x2d3   :  { %2118 = vst [vmem:[%s3268_s8 + $0x10] sm:$0xff] %v2094_v18  ;;  %v1983_v29 = vadd.f32 %v1982_v25, %v1591_v16  ;;  %v2024_v20 = vadd.f32 %v2023_v28, %v1599_v17  ;;  %v1984_v21 = vpop.f32.mrb[30].mxu0  ;;  %v2025_v30 = vpop.f32.mrb[30].mxu1 }
 0x2d4   :  { %v1985_v31 = vpop.f32.mrb[31].mxu0  ;;  %v2026_v32 = vpop.f32.mrb[31].mxu1 }
 0x2d5   :  { %v2095_v34 = vcombine.low %v1981_v23, %v1983_v29  ;;  %v2096_v26 = vcombine.low %v2022_v24, %v2024_v20 }
 0x2d7   :  { %v2103_v27 = vrot.slane %v2095_v34, %v3231_v15  ;;  %v2110_v35 = vrot.slane %v2096_v26, %v3231_v15 }
 0x2d9   :  { %v2111_v36 = vcombine.low %v2103_v27, %v2110_v35 }
 0x2db   :  { %2119 = vst [vmem:[%s3268_s8 + $0x18] sm:$0xff] %v2111_v36 }
 0x2dc   :  { %2663 = dma.done.wait [#allocation3], 32  }
 0x2dd   :  { %2664 = vsyncadd [#allocation3], 4294967264 }
 0x2de   :  { %2665 = dma.done.wait [#allocation5], 32  }
 0x2df   :  { %2666 = vsyncadd [#allocation5], 4294967264 }
 0x2e0   :  { %2150 = vsyncpa [#allocation3], 1 }
 0x2e1   :  { %2151 = vsyncpa [#allocation5], 1 }

// kernel: tile.33
= control target key start
LH: loop header
LB: loop body
LE: loop exit
PB: predicated region body
PF: predicated region fallthrough
CT: control target
= control target key end

     0   :  { %s22_s0 = inlined_call_operand.vmem [shape: f32[64], index: 0, kind: input, shape index: {}]   ;;  %s23_s1 = inlined_call_operand.vmem [shape: f32[4,64], index: 1, kind: output, shape index: {}]  }
   0x1   :  { %v4_v0 = vld [vmem:[%s22_s0] ss:$0 sm:$0xff] }
   0x2   :  { %5 = vst [vmem:[%s23_s1] sm:$0xf] %v4_v0 }

// kernel: tile.34
= control target key start
LH: loop header
LB: loop body
LE: loop exit
PB: predicated region body
PF: predicated region fallthrough
CT: control target
= control target key end

     0   :  { %s6_s8 = smov 3  ;;  %vm8_vm0 = vcmask 523264   ;;  %s30_s9 = smov 64   ;;  %vm15_vm1 = vcmask 1048064   ;;  %s50_s0 = inlined_call_operand.vmem [shape: f32[4,64], index: 0, kind: input, shape index: {}]   ;;  %s51_s1 = inlined_call_operand.vmem [shape: f32[1,256], index: 1, kind: output, shape index: {}]  }
   0x1   :  { %v4_v0 = vld [vmem:[%s50_s0] sm:$0xf]  ;;  %s11_s0 = smov 3 }
   0x2   :  { %5 = vst [vmem:[#allocation1] sm:$0xf] %v4_v0 }
   0x9   :  { %v12_v1 = vld [vmem:[#allocation1 + $0x1] ss:$2 sm:%s11_s0]   ;;  %v7_v2 = vld [vmem:[#allocation1] ss:$2 sm:%s6_s8]  }
   0xa   :  { %13 = vrot.lane.b32.xlu0 %v12_v1, %s30_s9  ;;  %9 = vst.msk [vmem:[#allocation0] ss:$8 sm:$0x3] %vm8_vm0, %v7_v2  }
  0x7c   :  { %v14_v3 = vpop.permute.xlu0 %13  }
  0x7d   :  { %16 = vst.msk [vmem:[#allocation0] ss:$8 sm:$0x3] %vm15_vm1, %v14_v3  }
  0x84   :  { %v20_v4 = vld [vmem:[#allocation0] sm:$0x1]  ;;  %v24_v5 = vld [vmem:[#allocation0 + $0x8] sm:$0x1] }
  0x85   :  { %22 = vst [vmem:[%s51_s1] sm:$0x1] %v20_v4  ;;  %28 = vst [vmem:[%s51_s1 + $0x1] sm:$0x1] %v24_v5 }

// kernel: vae_forward.11
= control target key start
LH: loop header
LB: loop body
LE: loop exit
PB: predicated region body
PF: predicated region fallthrough
CT: control target
= control target key end

     0   :  { %vm647_vm0 = vcmask 523264   ;;  %s1301_s1 = inlined_call_operand.vmem [shape: bf16[512,256], index: 1, kind: input, shape index: {}]   ;;  %s1302_s0 = inlined_call_operand.vmem [shape: bf16[32,512], index: 0, kind: input, shape index: {}]   ;;  %s1303_s2 = inlined_call_operand.vmem [shape: f32[1,256], index: 2, kind: input, shape index: {}]   ;;  %s1304_s3 = inlined_call_operand.vmem [shape: f32[1,256], index: 3, kind: input, shape index: {}]   ;;  %s1305_s4 = inlined_call_operand.vmem [shape: f32[1,256], index: 4, kind: input, shape index: {}]   ;;  %s1306_s5 = inlined_call_operand.vmem [shape: f32[32,256], index: 5, kind: output, shape index: {}]  }
   0x1   :  { %v843_v0 = vld [vmem:[%s1301_s1 + $0x4] ss:$8 sps:$4 sm:$0xff]   ;;  %v847_v2 = vld [vmem:[%s1301_s1] ss:$8 sps:$4 sm:$0xff]   ;;  %v849_v4 = vld [vmem:[%s1301_s1 + $0x14] ss:$8 sps:$4 sm:$0xff]  }
   0x2   :  { %v845_v1 = vld [vmem:[%s1301_s1 + $0x104] ss:$8 sps:$4 sm:$0xff]   ;;  %464 = vmatprep.subr.bf16.mxu1 %v843_v0  ;;  %v848_v3 = vld [vmem:[%s1301_s1 + $0x100] ss:$8 sps:$4 sm:$0xff]   ;;  %v851_v5 = vld [vmem:[%s1301_s1 + $0x114] ss:$8 sps:$4 sm:$0xff]  }
   0x3   :  { %517 = vmatprep.subr.bf16.mxu0 %v845_v1  ;;  %465 = vmatpush1.bf16.msra.mxu1 %v847_v2  ;;  %v853_v6 = vld [vmem:[%s1301_s1 + $0x10] ss:$8 sps:$4 sm:$0xff]   ;;  %v855_v8 = vld [vmem:[%s1301_s1 + $0x24] ss:$8 sps:$4 sm:$0xff]   ;;  %v859_v10 = vld [vmem:[%s1301_s1 + $0x20] ss:$8 sps:$4 sm:$0xff]  }
   0x4   :  { %518 = vmatpush1.bf16.msra.mxu0 %v848_v3  ;;  %466 = vmatprep.subr.bf16.mxu1 %v849_v4  ;;  %v854_v7 = vld [vmem:[%s1301_s1 + $0x110] ss:$8 sps:$4 sm:$0xff]   ;;  %v857_v9 = vld [vmem:[%s1301_s1 + $0x124] ss:$8 sps:$4 sm:$0xff]   ;;  %v860_v11 = vld [vmem:[%s1301_s1 + $0x120] ss:$8 sps:$4 sm:$0xff]  }
   0x5   :  { %519 = vmatprep.subr.bf16.mxu0 %v851_v5  ;;  %v861_v12 = vld [vmem:[%s1301_s1 + $0x34] ss:$8 sps:$4 sm:$0xff]   ;;  %v865_v14 = vld [vmem:[%s1301_s1 + $0x30] ss:$8 sps:$4 sm:$0xff]   ;;  %v867_v16 = vld [vmem:[%s1301_s1 + $0x44] ss:$8 sps:$4 sm:$0xff]  }
   0x6   :  { %v863_v13 = vld [vmem:[%s1301_s1 + $0x134] ss:$8 sps:$4 sm:$0xff]   ;;  %v866_v15 = vld [vmem:[%s1301_s1 + $0x130] ss:$8 sps:$4 sm:$0xff]   ;;  %v869_v17 = vld [vmem:[%s1301_s1 + $0x144] ss:$8 sps:$4 sm:$0xff]  }
   0x7   :  { %467 = vmatpush1.bf16.msra.mxu1 %v853_v6  ;;  %v871_v18 = vld [vmem:[%s1301_s1 + $0x40] ss:$8 sps:$4 sm:$0xff]   ;;  %v873_v20 = vld [vmem:[%s1301_s1 + $0x54] ss:$8 sps:$4 sm:$0xff]   ;;  %v877_v22 = vld [vmem:[%s1301_s1 + $0x50] ss:$8 sps:$4 sm:$0xff]  }
   0x8   :  { %520 = vmatpush1.bf16.msra.mxu0 %v854_v7  ;;  %468 = vmatprep.subr.bf16.mxu1 %v855_v8  ;;  %v872_v19 = vld [vmem:[%s1301_s1 + $0x140] ss:$8 sps:$4 sm:$0xff]   ;;  %v875_v21 = vld [vmem:[%s1301_s1 + $0x154] ss:$8 sps:$4 sm:$0xff]   ;;  %v878_v23 = vld [vmem:[%s1301_s1 + $0x150] ss:$8 sps:$4 sm:$0xff]   ;;  %v94_v8 = vlaneseq }
   0x9   :  { %521 = vmatprep.subr.bf16.mxu0 %v857_v9  ;;  %v879_v24 = vld [vmem:[%s1301_s1 + $0x64] ss:$8 sps:$4 sm:$0xff]   ;;  %v883_v26 = vld [vmem:[%s1301_s1 + $0x60] ss:$8 sps:$4 sm:$0xff]   ;;  %v885_v28 = vld [vmem:[%s1301_s1 + $0x74] ss:$8 sps:$4 sm:$0xff]  }
   0xa   :  { %v881_v25 = vld [vmem:[%s1301_s1 + $0x164] ss:$8 sps:$4 sm:$0xff]   ;;  %v884_v27 = vld [vmem:[%s1301_s1 + $0x160] ss:$8 sps:$4 sm:$0xff]   ;;  %v887_v29 = vld [vmem:[%s1301_s1 + $0x174] ss:$8 sps:$4 sm:$0xff]  }
   0xb   :  { %469 = vmatpush1.bf16.msra.mxu1 %v859_v10  ;;  %v889_v30 = vld [vmem:[%s1301_s1 + $0x70] ss:$8 sps:$4 sm:$0xff]   ;;  %v891_v32 = vld [vmem:[%s1301_s1 + $0x84] ss:$8 sps:$4 sm:$0xff]   ;;  %v895_v34 = vld [vmem:[%s1301_s1 + $0x80] ss:$8 sps:$4 sm:$0xff]  }
   0xc   :  { %522 = vmatpush1.bf16.msra.mxu0 %v860_v11  ;;  %470 = vmatprep.subr.bf16.mxu1 %v861_v12  ;;  %v890_v31 = vld [vmem:[%s1301_s1 + $0x170] ss:$8 sps:$4 sm:$0xff]   ;;  %v893_v33 = vld [vmem:[%s1301_s1 + $0x184] ss:$8 sps:$4 sm:$0xff]   ;;  %v896_v35 = vld [vmem:[%s1301_s1 + $0x180] ss:$8 sps:$4 sm:$0xff]  }
   0xd   :  { %523 = vmatprep.subr.bf16.mxu0 %v863_v13  ;;  %v897_v36 = vld [vmem:[%s1301_s1 + $0x94] ss:$8 sps:$4 sm:$0xff]   ;;  %v901_v38 = vld [vmem:[%s1301_s1 + $0x90] ss:$8 sps:$4 sm:$0xff]   ;;  %v903_v40 = vld [vmem:[%s1301_s1 + $0xa4] ss:$8 sps:$4 sm:$0xff]  }
   0xe   :  { %v899_v37 = vld [vmem:[%s1301_s1 + $0x194] ss:$8 sps:$4 sm:$0xff]   ;;  %v902_v39 = vld [vmem:[%s1301_s1 + $0x190] ss:$8 sps:$4 sm:$0xff]   ;;  %v905_v41 = vld [vmem:[%s1301_s1 + $0x1a4] ss:$8 sps:$4 sm:$0xff]  }
   0xf   :  { %471 = vmatpush1.bf16.msra.mxu1 %v865_v14  ;;  %v907_v42 = vld [vmem:[%s1301_s1 + $0xa0] ss:$8 sps:$4 sm:$0xff]   ;;  %v909_v44 = vld [vmem:[%s1301_s1 + $0xb4] ss:$8 sps:$4 sm:$0xff]   ;;  %v913_v46 = vld [vmem:[%s1301_s1 + $0xb0] ss:$8 sps:$4 sm:$0xff]  }
  0x10   :  { %524 = vmatpush1.bf16.msra.mxu0 %v866_v15  ;;  %472 = vmatprep.subr.bf16.mxu1 %v867_v16  ;;  %v908_v43 = vld [vmem:[%s1301_s1 + $0x1a0] ss:$8 sps:$4 sm:$0xff]   ;;  %v911_v45 = vld [vmem:[%s1301_s1 + $0x1b4] ss:$8 sps:$4 sm:$0xff]   ;;  %v914_v47 = vld [vmem:[%s1301_s1 + $0x1b0] ss:$8 sps:$4 sm:$0xff]  }
  0x11   :  { %525 = vmatprep.subr.bf16.mxu0 %v869_v17  ;;  %v915_v48 = vld [vmem:[%s1301_s1 + $0xc4] ss:$8 sps:$4 sm:$0xff]   ;;  %v919_v52 = vld [vmem:[%s1301_s1 + $0xc0] ss:$8 sps:$4 sm:$0xff]   ;;  %v921_v54 = vld [vmem:[%s1301_s1 + $0xd4] ss:$8 sps:$4 sm:$0xff]  }
  0x12   :  { %v941_v49 = vld [vmem:[%s1302_s0 + $0x4] ss:$16 sps:$4 sm:$0xff]   ;;  %v944_v51 = vld [vmem:[%s1302_s0 + $0xc] ss:$16 sps:$4 sm:$0xff]   ;;  %v920_v53 = vld [vmem:[%s1301_s1 + $0x1c0] ss:$8 sps:$4 sm:$0xff]  }
  0x13   :  { %473 = vmatpush1.bf16.msra.mxu1 %v871_v18  ;;  %v917_v50 = vld [vmem:[%s1301_s1 + $0x1c4] ss:$8 sps:$4 sm:$0xff]   ;;  %496 = vmatprep.mubr.bf16.mxu1 %v941_v49  ;;  %v923_v55 = vld [vmem:[%s1301_s1 + $0x1d4] ss:$8 sps:$4 sm:$0xff]   ;;  %v925_v56 = vld [vmem:[%s1301_s1 + $0xd0] ss:$8 sps:$4 sm:$0xff]  }
  0x14   :  { %526 = vmatpush1.bf16.msra.mxu0 %v872_v19  ;;  %474 = vmatprep.subr.bf16.mxu1 %v873_v20  ;;  %v926_v57 = vld [vmem:[%s1301_s1 + $0x1d0] ss:$8 sps:$4 sm:$0xff]   ;;  %v927_v58 = vld [vmem:[%s1301_s1 + $0xe4] ss:$8 sps:$4 sm:$0xff]   ;;  %v931_v60 = vld [vmem:[%s1301_s1 + $0xe0] ss:$8 sps:$4 sm:$0xff]  }
  0x15   :  { %527 = vmatprep.subr.bf16.mxu0 %v875_v21  ;;  %549 = vmatprep.mubr.bf16.mxu0 %v944_v51  ;;  %v929_v59 = vld [vmem:[%s1301_s1 + $0x1e4] ss:$8 sps:$4 sm:$0xff]   ;;  %v932_v61 = vld [vmem:[%s1301_s1 + $0x1e0] ss:$8 sps:$4 sm:$0xff]   ;;  %v933_v62 = vld [vmem:[%s1301_s1 + $0xf4] ss:$8 sps:$4 sm:$0xff]  }
  0x16   :  { %v935_v63 = vld [vmem:[%s1301_s1 + $0x1f4] ss:$8 sps:$4 sm:$0xff]   ;;  %v937_v0 = vld [vmem:[%s1301_s1 + $0xf0] ss:$8 sps:$4 sm:$0xff]   ;;  %v95_v9 = vshrl.u32 %v94_v8, 7 }
  0x17   :  { %475 = vmatpush1.bf16.msra.mxu1 %v877_v22  ;;  %v938_v1 = vld [vmem:[%s1301_s1 + $0x1f0] ss:$8 sps:$4 sm:$0xff]   ;;  %v945_v4 = vld [vmem:[%s1302_s0 + $0x24] ss:$16 sps:$4 sm:$0xff]   ;;  %v947_v5 = vld [vmem:[%s1302_s0 + $0x2c] ss:$16 sps:$4 sm:$0xff]  }
  0x18   :  { %528 = vmatpush1.bf16.msra.mxu0 %v878_v23  ;;  %476 = vmatprep.subr.bf16.mxu1 %v879_v24  ;;  %v939_v2 = vld [vmem:[%s1302_s0] ss:$16 sps:$4 sm:$0xff]   ;;  %v942_v3 = vld [vmem:[%s1302_s0 + $0x8] ss:$16 sps:$4 sm:$0xff]   ;;  %v1200_v10 = vsub.s32 0, %v95_v9  ;;  %v1205_v12 = vsub.s32 1, %v95_v9 }
  0x19   :  { %529 = vmatprep.subr.bf16.mxu0 %v881_v25  ;;  %v949_v6 = vld [vmem:[%s1302_s0 + $0x20] ss:$16 sps:$4 sm:$0xff]   ;;  %v950_v7 = vld [vmem:[%s1302_s0 + $0x28] ss:$16 sps:$4 sm:$0xff]   ;;  %s953_s0 = smov 64  }
  0x1a   :  { %v92_v11 = vld [vmem:[%s1303_s2] sm:$0x3] }
  0x1b   :  { %477 = vmatpush1.bf16.msra.mxu1 %v883_v26  ;;  %v97_v13 = vrot.slane %v92_v11, %v1200_v10  ;;  %v101_v14 = vrot.slane %v92_v11, %v1205_v12 }
  0x1c   :  { %530 = vmatpush1.bf16.msra.mxu0 %v884_v27  ;;  %478 = vmatprep.subr.bf16.mxu1 %v885_v28 }
  0x1d   :  { %531 = vmatprep.subr.bf16.mxu0 %v887_v29 }
  0x1f   :  { %479 = vmatpush1.bf16.msra.mxu1 %v889_v30 }
  0x20   :  { %532 = vmatpush1.bf16.msra.mxu0 %v890_v31  ;;  %480 = vmatprep.subr.bf16.mxu1 %v891_v32 }
  0x21   :  { %533 = vmatprep.subr.bf16.mxu0 %v893_v33 }
  0x23   :  { %481 = vmatpush1.bf16.msra.mxu1 %v895_v34 }
  0x24   :  { %534 = vmatpush1.bf16.msra.mxu0 %v896_v35  ;;  %482 = vmatprep.subr.bf16.mxu1 %v897_v36 }
  0x25   :  { %535 = vmatprep.subr.bf16.mxu0 %v899_v37 }
  0x27   :  { %483 = vmatpush1.bf16.msra.mxu1 %v901_v38 }
  0x28   :  { %536 = vmatpush1.bf16.msra.mxu0 %v902_v39  ;;  %484 = vmatprep.subr.bf16.mxu1 %v903_v40 }
  0x29   :  { %537 = vmatprep.subr.bf16.mxu0 %v905_v41 }
  0x2b   :  { %485 = vmatpush1.bf16.msra.mxu1 %v907_v42 }
  0x2c   :  { %538 = vmatpush1.bf16.msra.mxu0 %v908_v43  ;;  %486 = vmatprep.subr.bf16.mxu1 %v909_v44 }
  0x2d   :  { %539 = vmatprep.subr.bf16.mxu0 %v911_v45 }
  0x2f   :  { %487 = vmatpush1.bf16.msra.mxu1 %v913_v46 }
  0x30   :  { %540 = vmatpush1.bf16.msra.mxu0 %v914_v47  ;;  %488 = vmatprep.subr.bf16.mxu1 %v915_v48 }
  0x31   :  { %541 = vmatprep.subr.bf16.mxu0 %v917_v50 }
  0x33   :  { %489 = vmatpush1.bf16.msra.mxu1 %v919_v52 }
  0x34   :  { %542 = vmatpush1.bf16.msra.mxu0 %v920_v53  ;;  %490 = vmatprep.subr.bf16.mxu1 %v921_v54 }
  0x35   :  { %543 = vmatprep.subr.bf16.mxu0 %v923_v55 }
  0x37   :  { %491 = vmatpush1.bf16.msra.mxu1 %v925_v56 }
  0x38   :  { %544 = vmatpush1.bf16.msra.mxu0 %v926_v57  ;;  %492 = vmatprep.subr.bf16.mxu1 %v927_v58 }
  0x39   :  { %545 = vmatprep.subr.bf16.mxu0 %v929_v59 }
  0x3b   :  { %493 = vmatpush1.bf16.msra.mxu1 %v931_v60 }
  0x3c   :  { %546 = vmatpush1.bf16.msra.mxu0 %v932_v61  ;;  %494 = vmatprep.subr.bf16.mxu1 %v933_v62 }
  0x3d   :  { %547 = vmatprep.subr.bf16.mxu0 %v935_v63 }
  0x3f   :  { %495 = vmatpush1.bf16.msra.mxu1 %v937_v0 }
  0x40   :  { %548 = vmatpush1.bf16.msra.mxu0 %v938_v1 }
  0x42   :  { %497 = vmatmul.mubr.bf16.vlgmr.msra.gmra.mrb[0].mxu1 %v939_v2 }
  0x43   :  { %550 = vmatmul.mubr.bf16.vlgmr.msra.gmra.mrb[0].mxu0 %v942_v3  ;;  %506 = vmatprep.mubr.bf16.mxu1 %v945_v4 }
  0x44   :  { %559 = vmatprep.mubr.bf16.mxu0 %v947_v5 }
  0x4a   :  { %507 = vmatmul.mubr.bf16.gmra.mrb[4].mxu1 %v949_v6 }
  0x4b   :  { %560 = vmatmul.mubr.bf16.gmra.mrb[4].mxu0 %v950_v7 }
 0x115   :  { %v498_v15 = vpop.f32.mrb[0].mxu1 }
 0x116   :  { %v551_v16 = vpop.f32.mrb[0].mxu0  ;;  %v499_v17 = vadd.f32 %v498_v15, %v97_v13  ;;  %v500_v18 = vpop.f32.mrb[1].mxu1 }
 0x117   :  { %v553_v19 = vpop.f32.mrb[1].mxu0  ;;  %v501_v20 = vadd.f32 %v500_v18, %v101_v14  ;;  %v502_v21 = vpop.f32.mrb[2].mxu1 }
 0x118   :  { %v555_v22 = vpop.f32.mrb[2].mxu0  ;;  %v1209_v23 = vadd.f32 %v551_v16, %v499_v17  ;;  %v503_v24 = vadd.f32 %v502_v21, %v97_v13  ;;  %v504_v25 = vpop.f32.mrb[3].mxu1 }
 0x119   :  { %v557_v26 = vpop.f32.mrb[3].mxu0  ;;  %v1211_v27 = vadd.f32 %v553_v19, %v501_v20  ;;  %v505_v28 = vadd.f32 %v504_v25, %v101_v14 }
 0x11a   :  { %v1213_v29 = vadd.f32 %v555_v22, %v503_v24  ;;  %v588_v41 = vmul.f32 %v1209_v23, %v1209_v23 }
 0x11b   :  { %v1215_v30 = vadd.f32 %v557_v26, %v505_v28  ;;  %v589_v47 = vmul.f32 %v1211_v27, %v1211_v27 }
 0x11c   :  { %v590_v33 = vmul.f32 %v1213_v29, %v1213_v29  ;;  %v570_v42 = vadd.f32 %v1213_v29, %v1209_v23 }
 0x11d   :  { %v508_v31 = vpop.f32.mrb[4].mxu1  ;;  %v591_v37 = vmul.f32 %v1215_v30, %v1215_v30  ;;  %v579_v48 = vadd.f32 %v1215_v30, %v1211_v27 }
 0x11e   :  { %v561_v32 = vpop.f32.mrb[4].mxu0  ;;  %v509_v34 = vadd.f32 %v508_v31, %v97_v13  ;;  %v510_v35 = vpop.f32.mrb[5].mxu1  ;;  %v596_v51 = vadd.f32 %v590_v33, %v588_v41 }
 0x11f   :  { %v563_v36 = vpop.f32.mrb[5].mxu0  ;;  %v511_v38 = vadd.f32 %v510_v35, %v101_v14  ;;  %v512_v39 = vpop.f32.mrb[6].mxu1  ;;  %v605_v55 = vadd.f32 %v591_v37, %v589_v47 }
 0x120   :  { %v565_v40 = vpop.f32.mrb[6].mxu0  ;;  %v1225_v43 = vadd.f32 %v561_v32, %v509_v34  ;;  %v513_v44 = vadd.f32 %v512_v39, %v97_v13  ;;  %v514_v45 = vpop.f32.mrb[7].mxu1 }
 0x121   :  { %v567_v46 = vpop.f32.mrb[7].mxu0  ;;  %v1231_v49 = vadd.f32 %v563_v36, %v511_v38  ;;  %v515_v50 = vadd.f32 %v514_v45, %v101_v14 }
 0x122   :  { %v571_v52 = vadd.f32 %v570_v42, %v1225_v43  ;;  %v592_v53 = vmul.f32 %v1225_v43, %v1225_v43  ;;  %v1236_v54 = vadd.f32 %v565_v40, %v513_v44 }
 0x123   :  { %v580_v56 = vadd.f32 %v579_v48, %v1231_v49  ;;  %v593_v57 = vmul.f32 %v1231_v49, %v1231_v49  ;;  %v1241_v58 = vadd.f32 %v567_v46, %v515_v50 }
 0x124   :  { %v597_v59 = vadd.f32 %v596_v51, %v592_v53  ;;  %v572_v60 = vadd.f32 %v571_v52, %v1236_v54  ;;  %v594_v61 = vmul.f32 %v1236_v54, %v1236_v54  ;;  %v678_v53 = vld [vmem:[%s1304_s3] sm:$0x3] }
 0x125   :  { %v606_v62 = vadd.f32 %v605_v55, %v593_v57  ;;  %v581_v63 = vadd.f32 %v580_v56, %v1241_v58  ;;  %v595_v0 = vmul.f32 %v1241_v58, %v1241_v58  ;;  %v698_v56 = vld [vmem:[%s1305_s4] sm:$0x3]  ;;  %v683_v57 = vrot.slane %v678_v53, %v1200_v10 }
 0x126   :  { %v573_v1 = vrot.slane %v572_v60, 4  ;;  %v598_v2 = vadd.f32 %v597_v59, %v594_v61  ;;  %v687_v59 = vrot.slane %v678_v53, %v1205_v12  ;;  %v703_v61 = vrot.slane %v698_v56, %v1200_v10 }
 0x127   :  { %v582_v3 = vrot.slane %v581_v63, 4  ;;  %v607_v4 = vadd.f32 %v606_v62, %v595_v0  ;;  %v707_v62 = vrot.slane %v698_v56, %v1205_v12 }
 0x128   :  { %v599_v5 = vrot.slane %v598_v2, 4  ;;  %v574_v6 = vadd.f32 %v573_v1, %v572_v60 }
 0x129   :  { %v608_v7 = vrot.slane %v607_v4, 4  ;;  %v583_v8 = vadd.f32 %v582_v3, %v581_v63 }
 0x12a   :  { %v575_v9 = vrot.slane %v574_v6, 2  ;;  %v600_v11 = vadd.f32 %v599_v5, %v598_v2 }
 0x12b   :  { %v584_v13 = vrot.slane %v583_v8, 2  ;;  %v609_v14 = vadd.f32 %v608_v7, %v607_v4 }
 0x12c   :  { %v576_v15 = vadd.f32 %v575_v9, %v574_v6  ;;  %v601_v16 = vrot.slane %v600_v11, 2 }
 0x12d   :  { %v585_v17 = vadd.f32 %v584_v13, %v583_v8  ;;  %v610_v18 = vrot.slane %v609_v14, 2 }
 0x12e   :  { %v577_v19 = vrot.slane %v576_v15, 1  ;;  %v602_v20 = vadd.f32 %v601_v16, %v600_v11 }
 0x12f   :  { %v586_v21 = vrot.slane %v585_v17, 1  ;;  %v611_v22 = vadd.f32 %v610_v18, %v609_v14 }
 0x130   :  { %v578_v24 = vadd.f32 %v577_v19, %v576_v15  ;;  %v603_v25 = vrot.slane %v602_v20, 1 }
 0x131   :  { %v587_v26 = vadd.f32 %v586_v21, %v585_v17  ;;  %v612_v28 = vrot.slane %v611_v22, 1 }
 0x132   :  { %615 = vrot.lane.b32.xlu0 %v578_v24, %s953_s0  ;;  %v604_v31 = vadd.f32 %v603_v25, %v602_v20 }
 0x133   :  { %621 = vrot.lane.b32.xlu1 %v587_v26, %s953_s0  ;;  %v613_v32 = vadd.f32 %v612_v28, %v611_v22 }
 0x136   :  { %626 = vrot.lane.b32.xlu0 %v604_v31, %s953_s0 }
 0x137   :  { %632 = vrot.lane.b32.xlu1 %v613_v32, %s953_s0 }
 0x1a4   :  { %v616_v33 = vpop.permute.xlu0 %615 }
 0x1a5   :  { %v618_v34 = vadd.f32 %v616_v33, %v578_v24  ;;  %v622_v35 = vpop.permute.xlu1 %621 }
 0x1a7   :  { %v619_v36 = vadd.f32 %v618_v34, %v587_v26 }
 0x1a8   :  { %v627_v37 = vpop.permute.xlu0 %626 }
 0x1a9   :  { %v624_v38 = vadd.f32 %v622_v35, %v619_v36  ;;  %v629_v39 = vadd.f32 %v627_v37, %v604_v31  ;;  %v633_v42 = vpop.permute.xlu1 %632 }
 0x1ab   :  { %v637_v40 = vmul.f32 0.0078125, %v624_v38  ;;  %v630_v41 = vadd.f32 %v629_v39, %v613_v32 }
 0x1ad   :  { %v635_v44 = vadd.f32 %v633_v42, %v630_v41  ;;  %644 = vrot.lane.b32.xlu0 %v637_v40, %s953_s0  ;;  %v639_v46 = vmul.f32 %v637_v40, %v637_v40 }
 0x1af   :  { %v638_v45 = vmul.f32 0.0078125, %v635_v44 }
 0x1b1   :  { %v640_v47 = vsub.f32 %v638_v45, %v639_v46 }
 0x1b3   :  { %v641_v48 = vadd.f32 1e-05, %v640_v47 }
 0x1b5   :  { %951 = vrsqrt.f32 %v641_v48 }
 0x1bf   :  { %v952_v50 = vpop.eup %951 }
 0x1c0   :  { %650 = vrot.lane.b32.xlu1 %v952_v50, %s953_s0 }
 0x21f   :  { %v645_v51 = vpop.permute.xlu0 %644 }
 0x220   :  { %v648_v52 = vsel %vm647_vm0, %v637_v40, %v645_v51 }
 0x221   :  { %v657_v55 = vrot.slane %v648_v52, %v1200_v10 }
 0x223   :  { %v658_v63 = vsub.f32 %v1209_v23, %v657_v55  ;;  %v659_v1 = vsub.f32 %v1211_v27, %v657_v55  ;;  %v660_v2 = vsub.f32 %v1213_v29, %v657_v55  ;;  %v661_v3 = vsub.f32 %v1215_v30, %v657_v55 }
 0x224   :  { %v662_v5 = vsub.f32 %v1225_v43, %v657_v55  ;;  %v663_v6 = vsub.f32 %v1231_v49, %v657_v55  ;;  %v664_v7 = vsub.f32 %v1236_v54, %v657_v55  ;;  %v665_v8 = vsub.f32 %v1241_v58, %v657_v55 }
 0x232   :  { %v651_v60 = vpop.permute.xlu1 %650 }
 0x233   :  { %v653_v0 = vsel %vm647_vm0, %v952_v50, %v651_v60 }
 0x234   :  { %v669_v4 = vrot.slane %v653_v0, %v1200_v10 }
 0x236   :  { %v670_v12 = vmul.f32 %v669_v4, %v658_v63  ;;  %v671_v9 = vmul.f32 %v669_v4, %v659_v1  ;;  %v672_v23 = vmul.f32 %v669_v4, %v660_v2  ;;  %v673_v11 = vmul.f32 %v669_v4, %v661_v3 }
 0x237   :  { %v674_v13 = vmul.f32 %v669_v4, %v662_v5  ;;  %v675_v27 = vmul.f32 %v669_v4, %v663_v6  ;;  %v676_v14 = vmul.f32 %v669_v4, %v664_v7  ;;  %v677_v29 = vmul.f32 %v669_v4, %v665_v8 }
 0x238   :  { %v690_v15 = vmul.f32 %v683_v57, %v670_v12  ;;  %v691_v30 = vmul.f32 %v687_v59, %v671_v9  ;;  %v692_v16 = vmul.f32 %v683_v57, %v672_v23  ;;  %v693_v10 = vmul.f32 %v687_v59, %v673_v11 }
 0x239   :  { %v694_v17 = vmul.f32 %v683_v57, %v674_v13  ;;  %v695_v43 = vmul.f32 %v687_v59, %v675_v27  ;;  %v696_v18 = vmul.f32 %v683_v57, %v676_v14  ;;  %v697_v49 = vmul.f32 %v687_v59, %v677_v29 }
 0x23a   :  { %v710_v19 = vadd.f32 %v703_v61, %v690_v15  ;;  %v711_v54 = vadd.f32 %v707_v62, %v691_v30  ;;  %v712_v20 = vadd.f32 %v703_v61, %v692_v16  ;;  %v713_v58 = vadd.f32 %v707_v62, %v693_v10 }
 0x23b   :  { %v714_v21 = vadd.f32 %v703_v61, %v694_v17  ;;  %v715_v22 = vadd.f32 %v707_v62, %v695_v43  ;;  %v716_v24 = vadd.f32 %v703_v61, %v696_v18  ;;  %v717_v25 = vadd.f32 %v707_v62, %v697_v49 }
 0x23c   :  { %vm718_vm1 = vcmp.gt.f32.partialorder %v710_v19, 0.0  ;;  %vm719_vm2 = vcmp.gt.f32.partialorder %v711_v54, 0.0  ;;  %vm720_vm3 = vcmp.gt.f32.partialorder %v712_v20, 0.0  ;;  %vm721_vm4 = vcmp.gt.f32.partialorder %v713_v58, 0.0 }
 0x23d   :  { %vm722_vm5 = vcmp.gt.f32.partialorder %v714_v21, 0.0  ;;  %vm723_vm6 = vcmp.gt.f32.partialorder %v715_v22, 0.0  ;;  %vm724_vm7 = vcmp.gt.f32.partialorder %v716_v24, 0.0  ;;  %vm725_vm8 = vcmp.gt.f32.partialorder %v717_v25, 0.0 }
 0x23e   :  { %v726_v26 = vmul.f32 0.2, %v710_v19  ;;  %v727_v28 = vmul.f32 0.2, %v711_v54  ;;  %v728_v31 = vmul.f32 0.2, %v712_v20 }
 0x23f   :  { %v729_v32 = vmul.f32 0.2, %v713_v58  ;;  %v730_v33 = vmul.f32 0.2, %v714_v21  ;;  %v731_v34 = vmul.f32 0.2, %v715_v22 }
 0x240   :  { %v732_v35 = vmul.f32 0.2, %v716_v24  ;;  %v733_v36 = vmul.f32 0.2, %v717_v25  ;;  %v734_v37 = vsel %vm718_vm1, %v710_v19, %v726_v26  ;;  %v735_v38 = vsel %vm719_vm2, %v711_v54, %v727_v28 }
 0x241   :  { %v736_v39 = vsel %vm720_vm3, %v712_v20, %v728_v31  ;;  %v737_v40 = vsel %vm721_vm4, %v713_v58, %v729_v32  ;;  %v738_v41 = vsel %vm722_vm5, %v714_v21, %v730_v33  ;;  %v739_v42 = vsel %vm723_vm6, %v715_v22, %v731_v34  ;;  %742 = vst [vmem:[%s1306_s5] sm:$0xff] %v734_v37 }
 0x242   :  { %743 = vst [vmem:[%s1306_s5 + $0x8] sm:$0xff] %v735_v38  ;;  %v740_v44 = vsel %vm724_vm7, %v716_v24, %v732_v35  ;;  %v741_v45 = vsel %vm725_vm8, %v717_v25, %v733_v36  ;;  %744 = vst [vmem:[%s1306_s5 + $0x10] sm:$0xff] %v736_v39 }
 0x243   :  { %745 = vst [vmem:[%s1306_s5 + $0x18] sm:$0xff] %v737_v40  ;;  %746 = vst [vmem:[%s1306_s5 + $0x20] sm:$0xff] %v738_v41 }
 0x244   :  { %747 = vst [vmem:[%s1306_s5 + $0x28] sm:$0xff] %v739_v42  ;;  %748 = vst [vmem:[%s1306_s5 + $0x30] sm:$0xff] %v740_v44 }
 0x245   :  { %749 = vst [vmem:[%s1306_s5 + $0x38] sm:$0xff] %v741_v45 }

// kernel: tile.48
= control target key start
LH: loop header
LB: loop body
LE: loop exit
PB: predicated region body
PF: predicated region fallthrough
CT: control target
= control target key end

     0   :  { %s22_s0 = inlined_call_operand.vmem [shape: f32[32], index: 0, kind: input, shape index: {}]   ;;  %s23_s1 = inlined_call_operand.vmem [shape: f32[4,32], index: 1, kind: output, shape index: {}]  }
   0x1   :  { %v4_v0 = vld [vmem:[%s22_s0] ss:$0 sm:$0xff] }
   0x2   :  { %5 = vst [vmem:[%s23_s1] sm:$0xf] %v4_v0 }

// kernel: tile.49
= control target key start
LH: loop header
LB: loop body
LE: loop exit
PB: predicated region body
PF: predicated region fallthrough
CT: control target
= control target key end

     0   :  { %vm7_vm0 = vcmask 261120   ;;  %s37_s8 = smov 32   ;;  %s38_s9 = smov 64   ;;  %vm13_vm1 = vcmask 1048320   ;;  %vm19_vm2 = vcmask 785920   ;;  %vm25_vm3 = vcmask 523520   ;;  %s55_s0 = inlined_call_operand.vmem [shape: f32[4,32], index: 0, kind: input, shape index: {}]   ;;  %s56_s1 = inlined_call_operand.vmem [shape: f32[1,128], index: 1, kind: output, shape index: {}]  }
   0x1   :  { %v4_v0 = vld [vmem:[%s55_s0] sm:$0xf]  ;;  %s36_s0 = smov 96  }
   0x2   :  { %5 = vst [vmem:[#allocation1] sm:$0xf] %v4_v0 }
   0x9   :  { %v10_v1 = vld [vmem:[#allocation1 + $0x3] sm:$0x1]   ;;  %v22_v2 = vld [vmem:[#allocation1 + $0x1] sm:$0x1]   ;;  %v6_v3 = vld [vmem:[#allocation1] sm:$0x1]  }
   0xa   :  { %11 = vrot.lane.b32.xlu0 %v10_v1, %s36_s0  ;;  %23 = vrot.lane.b32.xlu1 %v22_v2, %s37_s8  ;;  %v16_v4 = vld [vmem:[#allocation1 + $0x2] sm:$0x1]   ;;  %8 = vst.msk [vmem:[#allocation0] sm:$0x1] %vm7_vm0, %v6_v3  }
   0xe   :  { %17 = vrot.lane.b32.xlu0 %v16_v4, %s38_s9 }
  0x7c   :  { %v12_v5 = vpop.permute.xlu0 %11   ;;  %v24_v6 = vpop.permute.xlu1 %23  }
  0x7d   :  { %14 = vst.msk [vmem:[#allocation0] sm:$0x1] %vm13_vm1, %v12_v5  }
  0x80   :  { %v18_v7 = vpop.permute.xlu0 %17  }
  0x81   :  { %20 = vst.msk [vmem:[#allocation0] sm:$0x1] %vm19_vm2, %v18_v7  }
  0x82   :  { %26 = vst.msk [vmem:[#allocation0] sm:$0x1] %vm25_vm3, %v24_v6  }
  0x89   :  { %v30_v8 = vld [vmem:[#allocation0] sm:$0x1] }
  0x8a   :  { %32 = vst [vmem:[%s56_s1] sm:$0x1] %v30_v8 }

// kernel: vae_forward.12
= control target key start
LH: loop header
LB: loop body
LE: loop exit
PB: predicated region body
PF: predicated region fallthrough
CT: control target
= control target key end

     0   :  { %s785_s8 = smov 64   ;;  %vm450_vm0 = vcmask 261120   ;;  %vm452_vm1 = vcmask 523264   ;;  %vm454_vm2 = vcmask 785408   ;;  %s1117_s1 = inlined_call_operand.vmem [shape: bf16[256,128], index: 1, kind: input, shape index: {}]   ;;  %s1118_s0 = inlined_call_operand.vmem [shape: bf16[128,256], index: 0, kind: input, shape index: {}]   ;;  %s1119_s2 = inlined_call_operand.vmem [shape: f32[1,128], index: 2, kind: input, shape index: {}]   ;;  %s1120_s3 = inlined_call_operand.vmem [shape: f32[1,128], index: 3, kind: input, shape index: {}]   ;;  %s1121_s4 = inlined_call_operand.vmem [shape: f32[1,128], index: 4, kind: input, shape index: {}]   ;;  %s1122_s5 = inlined_call_operand.vmem [shape: f32[128,128], index: 5, kind: output, shape index: {}]  }
   0x1   :  { %v741_v0 = vld [vmem:[%s1117_s1 + $0x40] sm:$0xff]   ;;  %v743_v2 = vld [vmem:[%s1117_s1 + $0x48] sm:$0xff]   ;;  %v745_v4 = vld [vmem:[%s1117_s1 + $0x50] sm:$0xff]  }
   0x2   :  { %v742_v1 = vld [vmem:[%s1117_s1] sm:$0xff]   ;;  %658 = vmatprep.subr.bf16.mxu0 %v741_v0  ;;  %722 = vmatprep.subr.bf16.mxu1 %v741_v0  ;;  %v744_v3 = vld [vmem:[%s1117_s1 + $0x8] sm:$0xff]   ;;  %v746_v5 = vld [vmem:[%s1117_s1 + $0x10] sm:$0xff]  }
   0x3   :  { %659 = vmatpush3.bf16.msra.mxu0 %v742_v1  ;;  %730 = vmatpush3.bf16.msra.mxu1 %v742_v1  ;;  %v747_v6 = vld [vmem:[%s1117_s1 + $0x58] sm:$0xff]   ;;  %v749_v8 = vld [vmem:[%s1117_s1 + $0x60] sm:$0xff]   ;;  %v751_v10 = vld [vmem:[%s1117_s1 + $0x68] sm:$0xff]  }
   0x4   :  { %660 = vmatprep.subr.bf16.mxu0 %v743_v2  ;;  %723 = vmatprep.subr.bf16.mxu1 %v743_v2  ;;  %v748_v7 = vld [vmem:[%s1117_s1 + $0x18] sm:$0xff]   ;;  %v750_v9 = vld [vmem:[%s1117_s1 + $0x20] sm:$0xff]   ;;  %v752_v12 = vld [vmem:[%s1117_s1 + $0x28] sm:$0xff]  }
   0x5   :  { %v759_v11 = vld [vmem:[%s1118_s0 + $0x4] ss:$8 sps:$4 sm:$0xff]   ;;  %v753_v14 = vld [vmem:[%s1117_s1 + $0x70] sm:$0xff]   ;;  %v755_v16 = vld [vmem:[%s1117_s1 + $0x78] sm:$0xff]  }
   0x6   :  { %v765_v13 = vld [vmem:[%s1118_s0 + $0x44] ss:$8 sps:$4 sm:$0xff]   ;;  %284 = vmatprep.mubr.bf16.mxu0 %v759_v11  ;;  %v754_v15 = vld [vmem:[%s1117_s1 + $0x30] sm:$0xff]   ;;  %v756_v17 = vld [vmem:[%s1117_s1 + $0x38] sm:$0xff]  }
   0x7   :  { %661 = vmatpush3.bf16.msra.mxu0 %v744_v3  ;;  %731 = vmatpush3.bf16.msra.mxu1 %v744_v3  ;;  %v757_v18 = vld [vmem:[%s1118_s0] ss:$8 sps:$4 sm:$0xff]   ;;  %v760_v20 = vld [vmem:[%s1118_s0 + $0x14] ss:$8 sps:$4 sm:$0xff]   ;;  %v762_v22 = vld [vmem:[%s1118_s0 + $0x10] ss:$8 sps:$4 sm:$0xff]  }
   0x8   :  { %662 = vmatprep.subr.bf16.mxu0 %v745_v4  ;;  %724 = vmatprep.subr.bf16.mxu1 %v745_v4  ;;  %v763_v19 = vld [vmem:[%s1118_s0 + $0x40] ss:$8 sps:$4 sm:$0xff]   ;;  %v769_v21 = vld [vmem:[%s1118_s0 + $0x54] ss:$8 sps:$4 sm:$0xff]   ;;  %v771_v23 = vld [vmem:[%s1118_s0 + $0x50] ss:$8 sps:$4 sm:$0xff]  }
   0x9   :  { %316 = vmatprep.mubr.bf16.mxu1 %v765_v13  ;;  %v766_v24 = vld [vmem:[%s1118_s0 + $0x24] ss:$8 sps:$4 sm:$0xff]   ;;  %v768_v26 = vld [vmem:[%s1118_s0 + $0x20] ss:$8 sps:$4 sm:$0xff]   ;;  %v772_v28 = vld [vmem:[%s1118_s0 + $0x34] ss:$8 sps:$4 sm:$0xff]  }
   0xa   :  { %v775_v25 = vld [vmem:[%s1118_s0 + $0x64] ss:$8 sps:$4 sm:$0xff]   ;;  %v777_v27 = vld [vmem:[%s1118_s0 + $0x60] ss:$8 sps:$4 sm:$0xff]   ;;  %v778_v29 = vld [vmem:[%s1118_s0 + $0x74] ss:$8 sps:$4 sm:$0xff]  }
   0xb   :  { %663 = vmatpush3.bf16.msra.mxu0 %v746_v5  ;;  %732 = vmatpush3.bf16.msra.mxu1 %v746_v5  ;;  %v774_v30 = vld [vmem:[%s1118_s0 + $0x30] ss:$8 sps:$4 sm:$0xff]   ;;  %v919_v44 = vld [vmem:[%s1119_s2] ss:$0 sm:$0xff]  ;;  %s784_s2 = smov 96  }
   0xc   :  { %664 = vmatprep.subr.bf16.mxu0 %v747_v6  ;;  %725 = vmatprep.subr.bf16.mxu1 %v747_v6  ;;  %v780_v31 = vld [vmem:[%s1118_s0 + $0x70] ss:$8 sps:$4 sm:$0xff]   ;;  %s783_s0 = smov 32  }
   0xf   :  { %665 = vmatpush3.bf16.msra.mxu0 %v748_v7  ;;  %733 = vmatpush3.bf16.msra.mxu1 %v748_v7 }
  0x10   :  { %666 = vmatprep.subr.bf16.mxu0 %v749_v8  ;;  %726 = vmatprep.subr.bf16.mxu1 %v749_v8 }
  0x13   :  { %667 = vmatpush3.bf16.msra.mxu0 %v750_v9  ;;  %734 = vmatpush3.bf16.msra.mxu1 %v750_v9 }
  0x14   :  { %668 = vmatprep.subr.bf16.mxu0 %v751_v10  ;;  %727 = vmatprep.subr.bf16.mxu1 %v751_v10 }
  0x17   :  { %669 = vmatpush3.bf16.msra.mxu0 %v752_v12  ;;  %735 = vmatpush3.bf16.msra.mxu1 %v752_v12 }
  0x18   :  { %670 = vmatprep.subr.bf16.mxu0 %v753_v14  ;;  %728 = vmatprep.subr.bf16.mxu1 %v753_v14 }
  0x1b   :  { %671 = vmatpush3.bf16.msra.mxu0 %v754_v15  ;;  %736 = vmatpush3.bf16.msra.mxu1 %v754_v15 }
  0x1c   :  { %672 = vmatprep.subr.bf16.mxu0 %v755_v16  ;;  %729 = vmatprep.subr.bf16.mxu1 %v755_v16 }
  0x1f   :  { %673 = vmatpush3.bf16.msra.mxu0 %v756_v17  ;;  %737 = vmatpush3.bf16.msra.mxu1 %v756_v17 }
  0x22   :  { %285 = vmatmul.mubr.bf16.vlgmr.msra.gmra.mrb[0].mxu0 %v757_v18  ;;  %317 = vmatmul.mubr.bf16.vlgmr.msra.gmra.mrb[0].mxu1 %v763_v19 }
  0x23   :  { %292 = vmatprep.mubr.bf16.mxu0 %v760_v20  ;;  %324 = vmatprep.mubr.bf16.mxu1 %v769_v21 }
  0x2a   :  { %293 = vmatmul.mubr.bf16.gmra.mrb[4].mxu0 %v762_v22  ;;  %325 = vmatmul.mubr.bf16.gmra.mrb[4].mxu1 %v771_v23 }
  0x2b   :  { %300 = vmatprep.mubr.bf16.mxu0 %v766_v24  ;;  %332 = vmatprep.mubr.bf16.mxu1 %v775_v25 }
  0x32   :  { %301 = vmatmul.mubr.bf16.gmra.mrb[8].mxu0 %v768_v26  ;;  %333 = vmatmul.mubr.bf16.gmra.mrb[8].mxu1 %v777_v27 }
  0x33   :  { %308 = vmatprep.mubr.bf16.mxu0 %v772_v28  ;;  %340 = vmatprep.mubr.bf16.mxu1 %v778_v29 }
  0x3a   :  { %309 = vmatmul.mubr.bf16.gmra.mrb[12].mxu0 %v774_v30  ;;  %341 = vmatmul.mubr.bf16.gmra.mrb[12].mxu1 %v780_v31 }
  0xf5   :  { %v674_v32 = vpop.f32.mrb[0].mxu0  ;;  %v698_v33 = vpop.f32.mrb[0].mxu1 }
  0xf6   :  { %v675_v34 = vpop.f32.mrb[1].mxu0  ;;  %v699_v35 = vpop.f32.mrb[1].mxu1 }
  0xf7   :  { %v676_v36 = vadd.f32 %v675_v34, %v674_v32  ;;  %v677_v37 = vpop.f32.mrb[2].mxu0  ;;  %v912_v38 = vadd.f32 %v699_v35, %v698_v33  ;;  %v701_v39 = vpop.f32.mrb[2].mxu1 }
  0xf8   :  { %v678_v40 = vpop.f32.mrb[3].mxu0  ;;  %v702_v41 = vpop.f32.mrb[3].mxu1 }
  0xf9   :  { %v679_v42 = vadd.f32 %v678_v40, %v677_v37  ;;  %v914_v43 = vadd.f32 %v702_v41, %v701_v39  ;;  %v925_v54 = vadd.f32 %v676_v36, %v919_v44  ;;  %v962_v40 = vadd.f32 %v912_v38, %v919_v44 }
  0xfb   :  { %v922_v47 = vadd.f32 %v679_v42, %v919_v44  ;;  %v370_v61 = vmul.f32 %v925_v54, %v925_v54 }
  0xfd   :  { %v680_v45 = vpop.f32.mrb[4].mxu0  ;;  %v704_v46 = vpop.f32.mrb[4].mxu1  ;;  %v371_v60 = vmul.f32 %v922_v47, %v922_v47  ;;  %v349_v63 = vadd.f32 %v922_v47, %v925_v54 }
  0xfe   :  { %v681_v48 = vpop.f32.mrb[5].mxu0  ;;  %v705_v49 = vpop.f32.mrb[5].mxu1 }
  0xff   :  { %v682_v50 = vadd.f32 %v681_v48, %v680_v45  ;;  %v683_v51 = vpop.f32.mrb[6].mxu0  ;;  %v706_v52 = vadd.f32 %v705_v49, %v704_v46  ;;  %v707_v53 = vpop.f32.mrb[6].mxu1  ;;  %v386_v3 = vadd.f32 %v371_v60, %v370_v61  ;;  %v972_v48 = vadd.f32 %v914_v43, %v919_v44 }
 0x100   :  { %v684_v55 = vpop.f32.mrb[7].mxu0  ;;  %v708_v56 = vpop.f32.mrb[7].mxu1 }
 0x101   :  { %v928_v57 = vadd.f32 %v682_v50, %v919_v44  ;;  %v685_v58 = vadd.f32 %v684_v55, %v683_v51  ;;  %v709_v59 = vadd.f32 %v708_v56, %v707_v53  ;;  %v378_v51 = vmul.f32 %v962_v40, %v962_v40 }
 0x102   :  { %v980_v53 = vadd.f32 %v706_v52, %v919_v44 }
 0x103   :  { %v372_v62 = vmul.f32 %v928_v57, %v928_v57  ;;  %v939_v0 = vadd.f32 %v685_v58, %v919_v44  ;;  %v350_v6 = vadd.f32 %v349_v63, %v928_v57  ;;  %v379_v58 = vmul.f32 %v972_v48, %v972_v48 }
 0x104   :  { %v986_v43 = vadd.f32 %v709_v59, %v919_v44 }
 0x105   :  { %v686_v1 = vpop.f32.mrb[8].mxu0  ;;  %v710_v2 = vpop.f32.mrb[8].mxu1  ;;  %v387_v11 = vadd.f32 %v386_v3, %v372_v62  ;;  %v373_v14 = vmul.f32 %v939_v0, %v939_v0  ;;  %v351_v18 = vadd.f32 %v350_v6, %v939_v0  ;;  %v380_v62 = vmul.f32 %v980_v53, %v980_v53 }
 0x106   :  { %v687_v4 = vpop.f32.mrb[9].mxu0  ;;  %v711_v5 = vpop.f32.mrb[9].mxu1  ;;  %v381_v3 = vmul.f32 %v986_v43, %v986_v43 }
 0x107   :  { %v688_v7 = vadd.f32 %v687_v4, %v686_v1  ;;  %v689_v8 = vpop.f32.mrb[10].mxu0  ;;  %v712_v9 = vadd.f32 %v711_v5, %v710_v2  ;;  %v713_v10 = vpop.f32.mrb[10].mxu1  ;;  %v388_v21 = vadd.f32 %v387_v11, %v373_v14 }
 0x108   :  { %v690_v12 = vpop.f32.mrb[11].mxu0  ;;  %v714_v13 = vpop.f32.mrb[11].mxu1 }
 0x109   :  { %v945_v15 = vadd.f32 %v688_v7, %v919_v44  ;;  %v691_v16 = vadd.f32 %v690_v12, %v689_v8  ;;  %v715_v17 = vadd.f32 %v714_v13, %v713_v10  ;;  %v992_v1 = vadd.f32 %v712_v9, %v919_v44 }
 0x10b   :  { %v374_v19 = vmul.f32 %v945_v15, %v945_v15  ;;  %v951_v20 = vadd.f32 %v691_v16, %v919_v44  ;;  %v352_v22 = vadd.f32 %v351_v18, %v945_v15  ;;  %v996_v2 = vadd.f32 %v715_v17, %v919_v44 }
 0x10c   :  { %v382_v7 = vmul.f32 %v992_v1, %v992_v1 }
 0x10d   :  { %v692_v23 = vpop.f32.mrb[12].mxu0  ;;  %v716_v24 = vpop.f32.mrb[12].mxu1  ;;  %v389_v27 = vadd.f32 %v388_v21, %v374_v19  ;;  %v375_v28 = vmul.f32 %v951_v20, %v951_v20  ;;  %v353_v35 = vadd.f32 %v352_v22, %v951_v20  ;;  %v383_v9 = vmul.f32 %v996_v2, %v996_v2 }
 0x10e   :  { %v693_v25 = vpop.f32.mrb[13].mxu0  ;;  %v717_v26 = vpop.f32.mrb[13].mxu1 }
 0x10f   :  { %v694_v29 = vadd.f32 %v693_v25, %v692_v23  ;;  %v695_v30 = vpop.f32.mrb[14].mxu0  ;;  %v718_v31 = vadd.f32 %v717_v26, %v716_v24  ;;  %v719_v32 = vpop.f32.mrb[14].mxu1  ;;  %v390_v41 = vadd.f32 %v389_v27, %v375_v28 }
 0x110   :  { %v696_v33 = vpop.f32.mrb[15].mxu0  ;;  %v720_v34 = vpop.f32.mrb[15].mxu1 }
 0x111   :  { %v958_v36 = vadd.f32 %v694_v29, %v919_v44  ;;  %v697_v37 = vadd.f32 %v696_v33, %v695_v30  ;;  %v721_v39 = vadd.f32 %v720_v34, %v719_v32  ;;  %v1002_v5 = vadd.f32 %v718_v31, %v919_v44 }
 0x113   :  { %v354_v42 = vadd.f32 %v353_v35, %v958_v36  ;;  %v376_v45 = vmul.f32 %v958_v36, %v958_v36  ;;  %v968_v46 = vadd.f32 %v697_v37, %v919_v44  ;;  %v384_v12 = vmul.f32 %v1002_v5, %v1002_v5 }
 0x114   :  { %v1013_v13 = vadd.f32 %v721_v39, %v919_v44 }
 0x115   :  { %v391_v49 = vadd.f32 %v390_v41, %v376_v45  ;;  %v355_v50 = vadd.f32 %v354_v42, %v968_v46  ;;  %v377_v38 = vmul.f32 %v968_v46, %v968_v46 }
 0x116   :  { %v385_v19 = vmul.f32 %v1013_v13, %v1013_v13 }
 0x117   :  { %v356_v55 = vadd.f32 %v355_v50, %v962_v40  ;;  %v392_v56 = vadd.f32 %v391_v49, %v377_v38 }
 0x119   :  { %v357_v60 = vadd.f32 %v356_v55, %v972_v48  ;;  %v393_v61 = vadd.f32 %v392_v56, %v378_v51 }
 0x11b   :  { %v394_v63 = vadd.f32 %v393_v61, %v379_v58  ;;  %v358_v52 = vadd.f32 %v357_v60, %v980_v53 }
 0x11d   :  { %v359_v59 = vadd.f32 %v358_v52, %v986_v43  ;;  %v395_v4 = vadd.f32 %v394_v63, %v380_v62  ;;  %v469_v52 = vlaneseq }
 0x11f   :  { %v360_v6 = vadd.f32 %v359_v59, %v992_v1  ;;  %v396_v8 = vadd.f32 %v395_v4, %v381_v3  ;;  %v470_v3 = vshrl.u32 %v469_v52, 7 }
 0x121   :  { %v397_v10 = vadd.f32 %v396_v8, %v382_v7  ;;  %v361_v11 = vadd.f32 %v360_v6, %v996_v2  ;;  %v471_v8 = vsub.s32 0, %v470_v3 }
 0x123   :  { %v398_v14 = vadd.f32 %v397_v10, %v383_v9  ;;  %v362_v16 = vadd.f32 %v361_v11, %v1002_v5 }
 0x125   :  { %v399_v17 = vadd.f32 %v398_v14, %v384_v12  ;;  %v363_v18 = vadd.f32 %v362_v16, %v1013_v13 }
 0x127   :  { %v364_v21 = vrot.slane %v363_v18, 4  ;;  %v400_v22 = vadd.f32 %v399_v17, %v385_v19 }
 0x129   :  { %v365_v23 = vadd.f32 %v364_v21, %v363_v18  ;;  %v401_v24 = vrot.slane %v400_v22, 4 }
 0x12b   :  { %v366_v25 = vrot.slane %v365_v23, 2  ;;  %v402_v26 = vadd.f32 %v401_v24, %v400_v22 }
 0x12d   :  { %v367_v27 = vadd.f32 %v366_v25, %v365_v23  ;;  %v403_v28 = vrot.slane %v402_v26, 2 }
 0x12f   :  { %v368_v29 = vrot.slane %v367_v27, 1  ;;  %v404_v44 = vadd.f32 %v403_v28, %v402_v26 }
 0x131   :  { %v369_v30 = vadd.f32 %v368_v29, %v367_v27  ;;  %v405_v31 = vrot.slane %v404_v44, 1 }
 0x133   :  { %416 = vrot.lane.b32.xlu1 %v369_v30, %s783_s0  ;;  %408 = vrot.lane.b32.xlu0 %v369_v30, %s784_s2  ;;  %v406_v32 = vadd.f32 %v405_v31, %v404_v44 }
 0x137   :  { %421 = vrot.lane.b32.xlu1 %v406_v32, %s784_s2  ;;  %412 = vrot.lane.b32.xlu0 %v369_v30, %s785_s8 }
 0x13b   :  { %429 = vrot.lane.b32.xlu1 %v406_v32, %s783_s0  ;;  %425 = vrot.lane.b32.xlu0 %v406_v32, %s785_s8 }
 0x1a5   :  { %v417_v33 = vpop.permute.xlu1 %416  ;;  %v409_v34 = vpop.permute.xlu0 %408 }
 0x1a6   :  { %v411_v35 = vadd.f32 %v409_v34, %v369_v30 }
 0x1a9   :  { %v422_v37 = vpop.permute.xlu1 %421  ;;  %v413_v39 = vpop.permute.xlu0 %412 }
 0x1aa   :  { %v415_v41 = vadd.f32 %v413_v39, %v411_v35  ;;  %v424_v42 = vadd.f32 %v422_v37, %v406_v32 }
 0x1ac   :  { %v419_v45 = vadd.f32 %v417_v33, %v415_v41 }
 0x1ad   :  { %v426_v49 = vpop.permute.xlu0 %425  ;;  %v430_v51 = vpop.permute.xlu1 %429 }
 0x1ae   :  { %v434_v50 = vmul.f32 0.001953125, %v419_v45  ;;  %v428_v38 = vadd.f32 %v426_v49, %v424_v42  ;;  %v657_v49 = vld [vmem:[%s1121_s4] ss:$0 sm:$0xff] }
 0x1b0   :  { %v432_v55 = vadd.f32 %v430_v51, %v428_v38  ;;  %444 = vrot.lane.b32.xlu1 %v434_v50, %s785_s8  ;;  %441 = vrot.lane.b32.xlu0 %v434_v50, %s783_s0  ;;  %v436_v56 = vmul.f32 %v434_v50, %v434_v50 }
 0x1b2   :  { %v435_v58 = vmul.f32 0.001953125, %v432_v55 }
 0x1b4   :  { %v437_v60 = vsub.f32 %v435_v58, %v436_v56  ;;  %447 = vrot.lane.b32.xlu0 %v434_v50, %s784_s2 }
 0x1b6   :  { %v438_v61 = vadd.f32 1e-05, %v437_v60 }
 0x1b8   :  { %781 = vrsqrt.f32 %v438_v61 }
 0x1c2   :  { %v782_v62 = vpop.eup %781 }
 0x1c3   :  { %460 = vrot.lane.b32.xlu0 %v782_v62, %s785_s8  ;;  %457 = vrot.lane.b32.xlu1 %v782_v62, %s783_s0 }
 0x1c7   :  { %463 = vrot.lane.b32.xlu1 %v782_v62, %s784_s2 }
 0x222   :  { %v442_v63 = vpop.permute.xlu0 %441  ;;  %v445_v59 = vpop.permute.xlu1 %444 }
 0x223   :  { %v451_v4 = vsel %vm450_vm0, %v434_v50, %v442_v63 }
 0x224   :  { %v453_v7 = vsel %vm452_vm1, %v451_v4, %v445_v59 }
 0x226   :  { %v448_v6 = vpop.permute.xlu0 %447 }
 0x227   :  { %v455_v9 = vsel %vm454_vm2, %v453_v7, %v448_v6 }
 0x228   :  { %v472_v10 = vrot.slane %v455_v9, %v471_v8 }
 0x22a   :  { %v473_v16 = vsub.f32 %v925_v54, %v472_v10  ;;  %v474_v17 = vsub.f32 %v922_v47, %v472_v10  ;;  %v475_v18 = vsub.f32 %v928_v57, %v472_v10  ;;  %v476_v19 = vsub.f32 %v939_v0, %v472_v10 }
 0x22b   :  { %v477_v21 = vsub.f32 %v945_v15, %v472_v10  ;;  %v478_v22 = vsub.f32 %v951_v20, %v472_v10  ;;  %v479_v25 = vsub.f32 %v958_v36, %v472_v10  ;;  %v480_v26 = vsub.f32 %v968_v46, %v472_v10 }
 0x22c   :  { %v481_v27 = vsub.f32 %v962_v40, %v472_v10  ;;  %v482_v47 = vsub.f32 %v972_v48, %v472_v10  ;;  %v483_v57 = vsub.f32 %v980_v53, %v472_v10  ;;  %v484_v0 = vsub.f32 %v986_v43, %v472_v10  ;;  %v656_v48 = vld [vmem:[%s1120_s3] ss:$0 sm:$0xff] }
 0x22d   :  { %v485_v20 = vsub.f32 %v992_v1, %v472_v10  ;;  %v486_v28 = vsub.f32 %v996_v2, %v472_v10  ;;  %v487_v29 = vsub.f32 %v1002_v5, %v472_v10  ;;  %v488_v36 = vsub.f32 %v1013_v13, %v472_v10 }
 0x235   :  { %v458_v11 = vpop.permute.xlu1 %457  ;;  %v461_v14 = vpop.permute.xlu0 %460 }
 0x236   :  { %v466_v12 = vsel %vm450_vm0, %v782_v62, %v458_v11 }
 0x237   :  { %v467_v23 = vsel %vm452_vm1, %v466_v12, %v461_v14 }
 0x239   :  { %v464_v24 = vpop.permute.xlu1 %463 }
 0x23a   :  { %v468_v54 = vsel %vm454_vm2, %v467_v23, %v464_v24 }
 0x23b   :  { %v492_v15 = vrot.slane %v468_v54, %v471_v8 }
 0x23d   :  { %v493_v46 = vmul.f32 %v492_v15, %v473_v16  ;;  %v494_v44 = vmul.f32 %v492_v15, %v474_v17  ;;  %v495_v40 = vmul.f32 %v492_v15, %v475_v18  ;;  %v496_v30 = vmul.f32 %v492_v15, %v476_v19 }
 0x23e   :  { %v497_v53 = vmul.f32 %v492_v15, %v477_v21  ;;  %v498_v31 = vmul.f32 %v492_v15, %v478_v22  ;;  %v499_v43 = vmul.f32 %v492_v15, %v479_v25  ;;  %v500_v32 = vmul.f32 %v492_v15, %v480_v26 }
 0x23f   :  { %v501_v33 = vmul.f32 %v492_v15, %v481_v27  ;;  %v502_v1 = vmul.f32 %v492_v15, %v482_v47  ;;  %v503_v34 = vmul.f32 %v492_v15, %v483_v57  ;;  %v504_v2 = vmul.f32 %v492_v15, %v484_v0 }
 0x240   :  { %v505_v35 = vmul.f32 %v492_v15, %v485_v20  ;;  %v506_v5 = vmul.f32 %v492_v15, %v486_v28  ;;  %v507_v37 = vmul.f32 %v492_v15, %v487_v29  ;;  %v508_v13 = vmul.f32 %v492_v15, %v488_v36 }
 0x241   :  { %v516_v39 = vmul.f32 %v656_v48, %v493_v46  ;;  %v517_v41 = vmul.f32 %v656_v48, %v494_v44  ;;  %v518_v42 = vmul.f32 %v656_v48, %v495_v40  ;;  %v519_v45 = vmul.f32 %v656_v48, %v496_v30 }
 0x242   :  { %v520_v50 = vmul.f32 %v656_v48, %v497_v53  ;;  %v521_v38 = vmul.f32 %v656_v48, %v498_v31  ;;  %v522_v51 = vmul.f32 %v656_v48, %v499_v43  ;;  %v523_v55 = vmul.f32 %v656_v48, %v500_v32 }
 0x243   :  { %v524_v56 = vmul.f32 %v656_v48, %v501_v33  ;;  %v525_v58 = vmul.f32 %v656_v48, %v502_v1  ;;  %v526_v60 = vmul.f32 %v656_v48, %v503_v34  ;;  %v527_v61 = vmul.f32 %v656_v48, %v504_v2 }
 0x244   :  { %v528_v62 = vmul.f32 %v656_v48, %v505_v35  ;;  %v529_v63 = vmul.f32 %v656_v48, %v506_v5  ;;  %v530_v52 = vmul.f32 %v656_v48, %v507_v37  ;;  %v531_v3 = vmul.f32 %v656_v48, %v508_v13 }
 0x245   :  { %v539_v59 = vadd.f32 %v657_v49, %v516_v39  ;;  %v540_v4 = vadd.f32 %v657_v49, %v517_v41  ;;  %v541_v6 = vadd.f32 %v657_v49, %v518_v42  ;;  %v542_v7 = vadd.f32 %v657_v49, %v519_v45 }
 0x246   :  { %v543_v8 = vadd.f32 %v657_v49, %v520_v50  ;;  %v544_v9 = vadd.f32 %v657_v49, %v521_v38  ;;  %v545_v10 = vadd.f32 %v657_v49, %v522_v51  ;;  %v546_v11 = vadd.f32 %v657_v49, %v523_v55 }
 0x247   :  { %v547_v12 = vadd.f32 %v657_v49, %v524_v56  ;;  %v548_v14 = vadd.f32 %v657_v49, %v525_v58  ;;  %v549_v16 = vadd.f32 %v657_v49, %v526_v60  ;;  %v550_v17 = vadd.f32 %v657_v49, %v527_v61 }
 0x248   :  { %v551_v18 = vadd.f32 %v657_v49, %v528_v62  ;;  %v552_v19 = vadd.f32 %v657_v49, %v529_v63  ;;  %v553_v21 = vadd.f32 %v657_v49, %v530_v52  ;;  %v554_v22 = vadd.f32 %v657_v49, %v531_v3 }
 0x249   :  { %vm555_vm3 = vcmp.gt.f32.partialorder %v539_v59, 0.0  ;;  %vm556_vm4 = vcmp.gt.f32.partialorder %v540_v4, 0.0  ;;  %vm557_vm5 = vcmp.gt.f32.partialorder %v541_v6, 0.0  ;;  %vm558_vm6 = vcmp.gt.f32.partialorder %v542_v7, 0.0 }
 0x24a   :  { %vm559_vm7 = vcmp.gt.f32.partialorder %v543_v8, 0.0  ;;  %vm560_vm8 = vcmp.gt.f32.partialorder %v544_v9, 0.0  ;;  %vm561_vm9 = vcmp.gt.f32.partialorder %v545_v10, 0.0  ;;  %vm562_vm10 = vcmp.gt.f32.partialorder %v546_v11, 0.0 }
 0x24b   :  { %vm563_vm11 = vcmp.gt.f32.partialorder %v547_v12, 0.0  ;;  %vm564_vm12 = vcmp.gt.f32.partialorder %v548_v14, 0.0  ;;  %vm565_vm13 = vcmp.gt.f32.partialorder %v549_v16, 0.0  ;;  %vm566_vm14 = vcmp.gt.f32.partialorder %v550_v17, 0.0 }
 0x24c   :  { %vm567_vm15 = vcmp.gt.f32.partialorder %v551_v18, 0.0  ;;  %vm568_vm0 = vcmp.gt.f32.partialorder %v552_v19, 0.0  ;;  %vm569_vm1 = vcmp.gt.f32.partialorder %v553_v21, 0.0  ;;  %vm570_vm2 = vcmp.gt.f32.partialorder %v554_v22, 0.0 }
 0x24d   :  { %v571_v23 = vmul.f32 0.2, %v539_v59  ;;  %v572_v24 = vmul.f32 0.2, %v540_v4  ;;  %v573_v25 = vmul.f32 0.2, %v541_v6 }
 0x24e   :  { %v574_v26 = vmul.f32 0.2, %v542_v7  ;;  %v575_v27 = vmul.f32 0.2, %v543_v8  ;;  %v576_v54 = vmul.f32 0.2, %v544_v9 }
 0x24f   :  { %v577_v47 = vmul.f32 0.2, %v545_v10  ;;  %v578_v57 = vmul.f32 0.2, %v546_v11  ;;  %v579_v0 = vmul.f32 0.2, %v547_v12  ;;  %v587_v15 = vsel %vm555_vm3, %v539_v59, %v571_v23 }
 0x250   :  { %v580_v20 = vmul.f32 0.2, %v548_v14  ;;  %v581_v28 = vmul.f32 0.2, %v549_v16  ;;  %v582_v29 = vmul.f32 0.2, %v550_v17  ;;  %v588_v36 = vsel %vm556_vm4, %v540_v4, %v572_v24  ;;  %603 = vst [vmem:[%s1122_s5] sm:$0xff] %v587_v15 }
 0x251   :  { %v583_v46 = vmul.f32 0.2, %v551_v18  ;;  %v584_v44 = vmul.f32 0.2, %v552_v19  ;;  %v585_v40 = vmul.f32 0.2, %v553_v21  ;;  %v589_v30 = vsel %vm557_vm5, %v541_v6, %v573_v25 }
 0x252   :  { %604 = vst [vmem:[%s1122_s5 + $0x8] sm:$0xff] %v588_v36  ;;  %v586_v48 = vmul.f32 0.2, %v554_v22  ;;  %v590_v53 = vsel %vm558_vm6, %v542_v7, %v574_v26  ;;  %v591_v31 = vsel %vm559_vm7, %v543_v8, %v575_v27  ;;  %v592_v43 = vsel %vm560_vm8, %v544_v9, %v576_v54  ;;  %605 = vst [vmem:[%s1122_s5 + $0x10] sm:$0xff] %v589_v30 }
 0x253   :  { %v593_v32 = vsel %vm561_vm9, %v545_v10, %v577_v47  ;;  %v594_v33 = vsel %vm562_vm10, %v546_v11, %v578_v57  ;;  %v595_v1 = vsel %vm563_vm11, %v547_v12, %v579_v0  ;;  %v596_v34 = vsel %vm564_vm12, %v548_v14, %v580_v20  ;;  %606 = vst [vmem:[%s1122_s5 + $0x18] sm:$0xff] %v590_v53 }
 0x254   :  { %607 = vst [vmem:[%s1122_s5 + $0x20] sm:$0xff] %v591_v31  ;;  %608 = vst [vmem:[%s1122_s5 + $0x28] sm:$0xff] %v592_v43  ;;  %v597_v2 = vsel %vm565_vm13, %v549_v16, %v581_v28  ;;  %v598_v35 = vsel %vm566_vm14, %v550_v17, %v582_v29  ;;  %v599_v5 = vsel %vm567_vm15, %v551_v18, %v583_v46 }
 0x255   :  { %v600_v37 = vsel %vm568_vm0, %v552_v19, %v584_v44  ;;  %609 = vst [vmem:[%s1122_s5 + $0x30] sm:$0xff] %v593_v32  ;;  %610 = vst [vmem:[%s1122_s5 + $0x38] sm:$0xff] %v594_v33  ;;  %v601_v13 = vsel %vm569_vm1, %v553_v21, %v585_v40  ;;  %v602_v39 = vsel %vm570_vm2, %v554_v22, %v586_v48 }
 0x256   :  { %611 = vst [vmem:[%s1122_s5 + $0x40] sm:$0xff] %v595_v1  ;;  %612 = vst [vmem:[%s1122_s5 + $0x48] sm:$0xff] %v596_v34 }
 0x257   :  { %613 = vst [vmem:[%s1122_s5 + $0x50] sm:$0xff] %v597_v2  ;;  %614 = vst [vmem:[%s1122_s5 + $0x58] sm:$0xff] %v598_v35 }
 0x258   :  { %615 = vst [vmem:[%s1122_s5 + $0x60] sm:$0xff] %v599_v5  ;;  %616 = vst [vmem:[%s1122_s5 + $0x68] sm:$0xff] %v600_v37 }
 0x259   :  { %617 = vst [vmem:[%s1122_s5 + $0x70] sm:$0xff] %v601_v13  ;;  %618 = vst [vmem:[%s1122_s5 + $0x78] sm:$0xff] %v602_v39 }

// kernel: vae_forward.13
= control target key start
LH: loop header
LB: loop body
LE: loop exit
PB: predicated region body
PF: predicated region fallthrough
CT: control target
= control target key end

     0   :  { %s669_s0 = inlined_call_operand.vmem [shape: bf16[4,128], index: 0, kind: input, shape index: {}]   ;;  %s670_s1 = inlined_call_operand.vmem [shape: bf16[128,512], index: 1, kind: input, shape index: {}]   ;;  %s671_s2 = inlined_call_operand.<no memory space> [shape: f32[1,1], index: 2, kind: input, shape index: {}]   ;;  %s672_s3 = inlined_call_operand.vmem [shape: f32[4,512], index: 3, kind: output, shape index: {}]  }
   0x1   :  { %v8_v0 = vstv %s671_s2 }
   0x2   :  { %9 = vst [vmem:[#allocation2] sm:$0x1] %v8_v0 }
   0x3   :  { %s594_s14 = smov 0   ;;  %s596_s15 = smov 0  }
   0x4   :  { %s598_s16 = smov 0  }
   0x5 LB: > { %s454_s2 = sadd.s32 4294967295, %s566_s16   ;;  %s611_s17 = sadd.s32 1, %s566_s16   ;;  %s566_s16 = sphi %s598_s16, %s675_s16   ;;  %s562_s15 = sphi %s596_s15, %s674_s15   ;;  %s558_s14 = sphi %s594_s14, %s673_s14  }
   0x6   : > { %s40_s18 = ssub.s32 %s566_s16, %s611_s17  ;;  %s43_s19 = sadd.s32 1, %s562_s15 }
   0x7   : > { %p41_p0 = scmp.eq.s32.totalorder %s40_s18, 0  ;;  %p50_p1 = scmp.ne.s32.totalorder %s562_s15, %s558_s14 }
   0x8   : > { %p51_p2 = scmp.eq.s32.totalorder %s566_s16, 0  ;;  %p457_p4 = scmp.ge.s32.totalorder %s566_s16, 4 }
   0x9   : > { %s620_s20 = scalar_select %p41_p0, %s562_s15, %s43_s19  }
   0xa   : > { %p52_p3 = por %p51_p2, %p50_p1  ;;  %129 = sbr.rel (%p457_p4) target bundleno = 32 (0x20), region = 24 }
  0x11   : > { %132 = sbr.rel (!%p52_p3) target bundleno = 32 (0x20), region = 28  ;;  %s134_s21 = sand.u32 (%p52_p3), 1, %s562_s15  }
  0x12   : > { %s459_s22 = sshll.u32 (%p52_p3), %s566_s16, 2  ;;  %s458_s23 = sshll.u32 (%p52_p3), %s134_s21, 6 }
  0x13   : > { %s628_s26 = scalar_lea.vmem (%p52_p3), %s670_s1, %s459_s22  ;;  %s136_s27 = scalar_lea.vmem (%p52_p3), [#allocation3], %s458_s23 }
  0x14   : > { %v154_v1 = vld [vmem:[%s628_s26] sm:$0xf] (%p52_p3)  ;;  %v156_v2 = vld [vmem:[%s628_s26 + $0x10] sm:$0xf] (%p52_p3) }
  0x15   : > { %155 = vst [vmem:[%s136_s27] sm:$0xf] (%p52_p3), %v154_v1  ;;  %157 = vst [vmem:[%s136_s27 + $0x4] sm:$0xf] (%p52_p3), %v156_v2  ;;  %v158_v3 = vld [vmem:[%s628_s26 + $0x20] sm:$0xf] (%p52_p3) }
  0x16   : > { %v160_v4 = vld [vmem:[%s628_s26 + $0x30] sm:$0xf] (%p52_p3)  ;;  %v162_v5 = vld [vmem:[%s628_s26 + $0x40] sm:$0xf] (%p52_p3)  ;;  %159 = vst [vmem:[%s136_s27 + $0x8] sm:$0xf] (%p52_p3), %v158_v3 }
  0x17   : > { %161 = vst [vmem:[%s136_s27 + $0xc] sm:$0xf] (%p52_p3), %v160_v4  ;;  %163 = vst [vmem:[%s136_s27 + $0x10] sm:$0xf] (%p52_p3), %v162_v5  ;;  %v164_v6 = vld [vmem:[%s628_s26 + $0x50] sm:$0xf] (%p52_p3) }
  0x18   : > { %v166_v7 = vld [vmem:[%s628_s26 + $0x60] sm:$0xf]  ;;  %v168_v8 = vld [vmem:[%s628_s26 + $0x70] sm:$0xf]  ;;  %165 = vst [vmem:[%s136_s27 + $0x14] sm:$0xf] %v164_v6 }
  0x19   : > { %167 = vst [vmem:[%s136_s27 + $0x18] sm:$0xf] %v166_v7  ;;  %169 = vst [vmem:[%s136_s27 + $0x1c] sm:$0xf] %v168_v8  ;;  %v170_v9 = vld [vmem:[%s628_s26 + $0x80] sm:$0xf] }
  0x1a   : > { %v172_v10 = vld [vmem:[%s628_s26 + $0x90] sm:$0xf]  ;;  %v174_v11 = vld [vmem:[%s628_s26 + $0xa0] sm:$0xf]  ;;  %171 = vst [vmem:[%s136_s27 + $0x20] sm:$0xf] %v170_v9 }
  0x1b   : > { %173 = vst [vmem:[%s136_s27 + $0x24] sm:$0xf] %v172_v10  ;;  %175 = vst [vmem:[%s136_s27 + $0x28] sm:$0xf] %v174_v11  ;;  %v176_v12 = vld [vmem:[%s628_s26 + $0xb0] sm:$0xf] }
  0x1c   : > { %v178_v13 = vld [vmem:[%s628_s26 + $0xc0] sm:$0xf]  ;;  %v180_v14 = vld [vmem:[%s628_s26 + $0xd0] sm:$0xf]  ;;  %177 = vst [vmem:[%s136_s27 + $0x2c] sm:$0xf] %v176_v12 }
  0x1d   : > { %179 = vst [vmem:[%s136_s27 + $0x30] sm:$0xf] %v178_v13  ;;  %181 = vst [vmem:[%s136_s27 + $0x34] sm:$0xf] %v180_v14  ;;  %v182_v15 = vld [vmem:[%s628_s26 + $0xe0] sm:$0xf] }
  0x1e   : > { %v184_v16 = vld [vmem:[%s628_s26 + $0xf0] sm:$0xf]  ;;  %183 = vst [vmem:[%s136_s27 + $0x38] sm:$0xf] %v182_v15 }
  0x1f   : > { %185 = vst [vmem:[%s136_s27 + $0x3c] sm:$0xf] %v184_v16 }
  0x20 PF: > { %p460_p5 = scmp.ge.s32.totalorder %s566_s16, 1  ;;  %p239_p6 = scmp.lt.s32.totalorder %s566_s16, 5 }
  0x22   : > { %p240_p7 = pnand %p460_p5, %p239_p6 }
  0x23   : > { %s246_s28 = sand.u32 (!%p240_p7), 1, %s558_s14   ;;  %v568_v17 = vmov (!%p240_p7), 0.0   ;;  %vm569_vm0 = vmmov (!%p240_p7), 0   ;;  %v463_v18 = vld [vmem:[#allocation2] ss:$0 sm:$0xff] (!%p240_p7)  ;;  %v570_v19 = vmov (!%p240_p7), 0  }
  0x24   : > { %243 = sbr.rel (%p240_p7) target bundleno = 311 (0x137), region = 69  ;;  %484 = vmatprep.subr.bf16.mxu0 (!%p240_p7), %v568_v17  ;;  %s461_s29 = sshll.u32 (!%p240_p7), %s246_s28, 6  ;;  %500 = vmatprep.mubr.msk.bf16.mxu0 (!%p240_p7), %vm569_vm0, %v568_v17  ;;  %v273_v28 = vld [vmem:[%s669_s0] sm:$0x3] (!%p240_p7) }
  0x25   : > { %531 = vset.pattern.permute.xlu0 (!%p240_p7), %v570_v19  ;;  %s248_s30 = scalar_lea.vmem (!%p240_p7), [#allocation3], %s461_s29  ;;  %p268_p8 = scmp.lt.s32.totalorder (!%p240_p7), %s454_s2, 3 }
  0x26   : > { %v532_v20 = vld [vmem:[%s248_s30] sm:$0xff] (!%p240_p7)   ;;  %297 = vperm.xlu0 (!%p240_p7), %531, %v463_v18   ;;  %v533_v21 = vld [vmem:[%s248_s30 + $0x8] sm:$0xff] (!%p240_p7)   ;;  %v534_v22 = vld [vmem:[%s248_s30 + $0x10] sm:$0xff] (!%p240_p7)  }
  0x27   : > { %485 = vmatpush3.bf16.msra.mxu0 (!%p240_p7), %v532_v20  ;;  %v535_v23 = vld [vmem:[%s248_s30 + $0x18] sm:$0xff] (!%p240_p7)   ;;  %v536_v24 = vld [vmem:[%s248_s30 + $0x20] sm:$0xff] (!%p240_p7)   ;;  %v537_v25 = vld [vmem:[%s248_s30 + $0x28] sm:$0xff] (!%p240_p7)  }
  0x28   : > { %486 = vmatprep.subr.bf16.mxu0 (!%p240_p7), %v568_v17  ;;  %v538_v26 = vld [vmem:[%s248_s30 + $0x30] sm:$0xff] (!%p240_p7)   ;;  %v539_v27 = vld [vmem:[%s248_s30 + $0x38] sm:$0xff] (!%p240_p7)  }
  0x2b   : > { %487 = vmatpush3.bf16.msra.mxu0 %v533_v21  ;;  %s677_s2 = smov (!%p268_p8, %s454_s2), 3 }
  0x2c   : > { %488 = vmatprep.subr.bf16.mxu0 %v568_v17  ;;  %s462_s6 = sshll.u32 %s677_s2, 2 }
  0x2d   : > { %s271_s9 = scalar_lea.vmem %s672_s3, %s462_s6 }
  0x2f   : > { %489 = vmatpush3.bf16.msra.mxu0 %v534_v22 }
  0x30   : > { %490 = vmatprep.subr.bf16.mxu0 %v568_v17 }
  0x33   : > { %491 = vmatpush3.bf16.msra.mxu0 %v535_v23 }
  0x34   : > { %492 = vmatprep.subr.bf16.mxu0 %v568_v17 }
  0x37   : > { %493 = vmatpush3.bf16.msra.mxu0 %v536_v24 }
  0x38   : > { %494 = vmatprep.subr.bf16.mxu0 %v568_v17 }
  0x3b   : > { %495 = vmatpush3.bf16.msra.mxu0 %v537_v25 }
  0x3c   : > { %496 = vmatprep.subr.bf16.mxu0 %v568_v17 }
  0x3f   : > { %497 = vmatpush3.bf16.msra.mxu0 %v538_v26 }
  0x40   : > { %498 = vmatprep.subr.bf16.mxu0 %v568_v17 }
  0x43   : > { %499 = vmatpush3.bf16.msra.mxu0 %v539_v27 }
  0x46   : > { %501 = vmatmul.mubr.bf16.vlgmr.msra.gmra.mrb[0].mxu0 %v273_v28 }
  0xa5   : > { %v298_v29 = vpop.permute.xlu0 %297 }
 0x119   : > { %v382_v30 = vpop.f32.mrb[0].mxu0 }
 0x11a   : > { %v383_v31 = vadd.f32 %v382_v30, %v298_v29  ;;  %v502_v32 = vpop.f32.mrb[1].mxu0 }
 0x11b   : > { %v385_v33 = vpop.f32.mrb[2].mxu0 }
 0x11c   : > { %v472_v34 = vmul.f32 -1.442695, %v383_v31  ;;  %v503_v35 = vpop.f32.mrb[3].mxu0 }
 0x11e   : > { %540 = vpow2.f32 %v472_v34 }
 0x128   : > { %v541_v36 = vpop.eup %540 }
 0x129   : > { %v391_v37 = vadd.f32 1.0, %v541_v36 }
 0x12b   : > { %542 = vrcp.f32 %v391_v37 }
 0x135   : > { %v543_v38 = vpop.eup %542 }
 0x136   : > { %394 = vst [vmem:[%s271_s9] sm:$0xf] %v543_v38 }
 0x137 PF: > { %p12_p9 = scmp.ge.s32.totalorder %s611_s17, 6   ;;  %s673_s14 = smov %s562_s15 }
 0x138   : > { %s674_s15 = smov %s620_s20  ;;  %s675_s16 = smov %s611_s17 }
 0x139   :  { %14 = sbr.rel (!%p12_p9) target bundleno = 5 (0x5), region = 108 }

</bundles_post_ra>
